<compile_context>
chip_gen: v7x
topology: tpu7x:2x2x1
jax: 0.10.0
libtpu: 0.0.40
codegen_flags: <defaults>
</compile_context>

<pallas_src>
from functools import partial

import jax
import jax.numpy as jnp
from jax.experimental import pallas as pl
from jax.experimental.pallas import tpu as pltpu

ACT_DTYPE = jnp.bfloat16          # MXU operand / inter-stage activation dtype
_EPS = 1e-5                       # BatchNorm2d default eps
_LANE = 128                       # TPU lane width


def _vmem_caps():
    """Generation-aware (scoped VMEM limit, per-tile working-set budget)."""
    try:
        info = pltpu.get_tpu_info()
        phys = int(getattr(info, "vmem_capacity_bytes", 0)) or (64 << 20)
    except Exception:
        phys = 64 << 20                       # conservative (v7x-sized) fallback
    if phys <= (64 << 20):                    # v7x: 64 MiB physical per TC
        return 40 << 20, 10 << 20
    return 64 << 20, 20 << 20                 # v5e / v6e: 128 MiB physical


_VMEM_LIMIT, _TILE_BUDGET = _vmem_caps()

_CPARAMS = pltpu.CompilerParams(
    dimension_semantics=("parallel",),
    vmem_limit_bytes=_VMEM_LIMIT,
)


# ------------------------------ Pallas kernels ------------------------------

def _dual_1x1_kernel(x_ref, w_ref, b_ref, y1_ref, y2_ref):
    """cv1 & cv2 fused into one matmul (weights concatenated along N):
    z = x @ [w1 | w2] + [b1 | b2];  y_k = SiLU(z_k)."""
    cp = y1_ref.shape[-1]
    z = jnp.dot(x_ref[...], w_ref[...], preferred_element_type=jnp.float32) + b_ref[...]
    z1 = z[:, :cp]
    z2 = z[:, cp:]
    y1_ref[...] = (z1 * jax.nn.sigmoid(z1)).astype(y1_ref.dtype)
    y2_ref[...] = (z2 * jax.nn.sigmoid(z2)).astype(y2_ref.dtype)


def _concat_1x1_kernel(a_ref, b_ref, w_ref, bias_ref, o_ref):
    """cv3 with the channel concat fused: SiLU([a | b] @ w3 + bias), K = 2*Cp."""
    ab = jnp.concatenate([a_ref[...], b_ref[...]], axis=-1)
    z = jnp.dot(ab, w_ref[...], preferred_element_type=jnp.float32) + bias_ref[...]
    o_ref[...] = (z * jax.nn.sigmoid(z)).astype(o_ref.dtype)


def _bottleneck_kernel(x_ref, w1_ref, b1_ref, w2_ref, b2_ref, o_ref, tpad_ref,
                       *, add_residual):
    """Whole Bottleneck (1x1 ConvBNSiLU -> 3x3 ConvBNSiLU -> +shortcut) for one
    image, with the zero-padded intermediate kept in a VMEM scratch.

      x_ref    : (H, W, C)       bf16  unpadded input m
      w2_ref   : (3, 3*C, C)     bf16  3x3 weights, dy-major, K index = dx*C + cin
      tpad_ref : (H+2, W+2, C)   bf16  VMEM scratch (halo ring = zero padding)
    """
    H, W, C = x_ref.shape
    x = x_ref[...]

    # 1x1 ConvBNSiLU over the interior rows only (BN folded into w1/b1).
    z = jnp.dot(x.reshape(H * W, C), w1_ref[...],
                preferred_element_type=jnp.float32) + b1_ref[...]
    t = (z * jax.nn.sigmoid(z)).astype(ACT_DTYPE)

    # Zero the scratch (exact zero padding) and write the interior.
    tpad_ref[...] = jnp.zeros(tpad_ref.shape, tpad_ref.dtype)
    tpad_ref[pl.ds(1, H), pl.ds(1, W), :] = t.reshape(H, W, C)
    tp = tpad_ref[...]

    # 3x3 ConvBNSiLU as 3 matmuls with K = 3*C (dx taps packed along K),
    # accumulated in f32. No HBM im2col, no halo MXU work.
    acc = jnp.zeros((H * W, C), jnp.float32)
    for dy in range(3):
        op = jnp.concatenate(
            [tp[dy:dy + H, dx:dx + W, :] for dx in range(3)],
            axis=-1).reshape(H * W, 3 * C)
        acc = acc + jnp.dot(op, w2_ref[dy], preferred_element_type=jnp.float32)
    z2 = acc + b2_ref[...]
    y = z2 * jax.nn.sigmoid(z2)

    if add_residual:
        y = y + x.reshape(H * W, C).astype(jnp.float32)

    o_ref[...] = y.reshape(H, W, C).astype(o_ref.dtype)


# --------------------------- pallas_call wrappers ---------------------------

def _row_tile(n_rows, row_bytes):
    """Row-tile size: largest multiple of 16 whose double-buffered working set
    fits the per-generation budget (cap 1024), keeping >= 4 grid steps for big
    inputs and preferring divisors of n_rows (skips pad/slice round trips)."""
    cap = min(1024, _TILE_BUDGET // max(1, 2 * row_bytes))
    cap = max(16, cap - cap % 16)
    tm = min(cap, max(128, -(-n_rows // 4)))
    tm = max(16, tm - tm % 16)
    if n_rows % tm:
        t = tm - 16
        while t >= max(64, tm // 2):
            if n_rows % t == 0:
                return t
            t -= 16
    return tm


def _pad_rows(x2d, mp):
    m = x2d.shape[0]
    return x2d if m == mp else jnp.pad(x2d, ((0, mp - m), (0, 0)))


def _dual_conv1x1(x2d, w12, b12):
    M, Cin = x2d.shape
    Cp = w12.shape[1] // 2
    tm = _row_tile(M, 2 * Cin + 4 * Cp)
    Mp = -(-M // tm) * tm
    y1, y2 = pl.pallas_call(
        _dual_1x1_kernel,
        out_shape=(jax.ShapeDtypeStruct((Mp, Cp), ACT_DTYPE),
                   jax.ShapeDtypeStruct((Mp, Cp), ACT_DTYPE)),
        grid=(Mp // tm,),
        in_specs=[pl.BlockSpec((tm, Cin), lambda i: (i, 0)),
                  pl.BlockSpec((Cin, 2 * Cp), lambda i: (0, 0)),
                  pl.BlockSpec((1, 2 * Cp), lambda i: (0, 0))],
        out_specs=(pl.BlockSpec((tm, Cp), lambda i: (i, 0)),
                   pl.BlockSpec((tm, Cp), lambda i: (i, 0))),
        compiler_params=_CPARAMS,
    )(_pad_rows(x2d, Mp), w12, b12)
    if Mp != M:
        y1, y2 = y1[:M], y2[:M]
    return y1, y2


def _concat_conv1x1(a2d, b2d, w3, b3):
    M, Cp = a2d.shape
    Cout = w3.shape[1]
    tm = _row_tile(M, 4 * Cp + 2 * Cout)
    Mp = -(-M // tm) * tm
    out = pl.pallas_call(
        _concat_1x1_kernel,
        out_shape=jax.ShapeDtypeStruct((Mp, Cout), ACT_DTYPE),
        grid=(Mp // tm,),
        in_specs=[pl.BlockSpec((tm, Cp), lambda i: (i, 0)),
                  pl.BlockSpec((tm, Cp), lambda i: (i, 0)),
                  pl.BlockSpec((2 * Cp, Cout), lambda i: (0, 0)),
                  pl.BlockSpec((1, Cout), lambda i: (0, 0))],
        out_specs=pl.BlockSpec((tm, Cout), lambda i: (i, 0)),
        compiler_params=_CPARAMS,
    )(_pad_rows(a2d, Mp), _pad_rows(b2d, Mp), w3, b3)
    return out if Mp == M else out[:M]


def _bottleneck_block(m_nhwc, w1, b1, w2, b2, shortcut):
    N, H, W, C = m_nhwc.shape
    return pl.pallas_call(
        partial(_bottleneck_kernel, add_residual=bool(shortcut)),
        out_shape=jax.ShapeDtypeStruct((N, H, W, C), ACT_DTYPE),
        grid=(N,),
        in_specs=[pl.BlockSpec((None, H, W, C), lambda n: (n, 0, 0, 0)),
                  pl.BlockSpec((C, C), lambda n: (0, 0)),
                  pl.BlockSpec((1, C), lambda n: (0, 0)),
                  pl.BlockSpec((3, 3 * C, C), lambda n: (0, 0, 0)),
                  pl.BlockSpec((1, C), lambda n: (0, 0))],
        out_specs=pl.BlockSpec((None, H, W, C), lambda n: (n, 0, 0, 0)),
        scratch_shapes=[pltpu.VMEM((H + 2, W + 2, C), ACT_DTYPE)],
        compiler_params=_CPARAMS,
    )(m_nhwc, w1, b1, w2, b2)


# ------------------------- parameters & C3 forward --------------------------

def _fold_conv_bn(p, eps=_EPS):
    """BN(conv(x) + b) -> conv(x) with scaled weights + new bias (inference)."""
    s = p["gamma"] / jnp.sqrt(p["var"] + eps)
    return p["w"] * s, p["beta"] + s * (p["b"] - p["mean"])


def fold_c3_params(params):
    """Fold BN into the conv weights and quantize weights to the MXU dtype."""
    def fold(p):
        w, b = _fold_conv_bn(p)
        return {"w": w.astype(ACT_DTYPE), "b": b.astype(jnp.float32)}
    return {"cv1": fold(params["cv1"]), "cv2": fold(params["cv2"]),
            "cv3": fold(params["cv3"]),
            "m": [{"cv1": fold(bp["cv1"]), "cv2": fold(bp["cv2"])}
                  for bp in params["m"]]}


def pack_c3_params(fp, lane=_LANE):
    """Repack folded params into the Pallas kernel layout:
         * hidden channels zero-padded to >=128 lanes,
         * cv1/cv2 merged into one (Cin, 2*Cp) weight,
         * 3x3 weights tap-repacked to (3, 3*Cp, Cp),
         * cv3 weight split / padded for the fused [m | y2] concat."""
    _, _, cin, ch = fp["cv1"]["w"].shape
    cout = fp["cv3"]["w"].shape[-1]
    cp = lane if ch < lane else ch

    def padc(a, axis, size):
        pad = size - a.shape[axis]
        if pad <= 0:
            return a
        widths = [(0, 0)] * a.ndim
        widths[axis] = (0, pad)
        return jnp.pad(a, widths)

    w12 = jnp.concatenate([padc(fp["cv1"]["w"].reshape(cin, ch), 1, cp),
                           padc(fp["cv2"]["w"].reshape(cin, ch), 1, cp)], axis=1)
    b12 = jnp.concatenate([padc(fp["cv1"]["b"], 0, cp),
                           padc(fp["cv2"]["b"], 0, cp)])[None, :]

    blocks = []
    for bf in fp["m"]:
        bw1 = padc(padc(bf["cv1"]["w"].reshape(ch, ch), 0, cp), 1, cp)
        bw2 = padc(padc(bf["cv2"]["w"], 2, cp), 3, cp).reshape(3, 3 * cp, cp)
        blocks.append(dict(w1=bw1, b1=padc(bf["cv1"]["b"], 0, cp)[None, :],
                           w2=bw2, b2=padc(bf["cv2"]["b"], 0, cp)[None, :]))

    w3 = fp["cv3"]["w"].reshape(2 * ch, cout)
    w3p = jnp.concatenate([padc(w3[:ch], 0, cp), padc(w3[ch:], 0, cp)], axis=0)
    return dict(w12=w12, b12=b12, m=blocks, w3=w3p, b3=fp["cv3"]["b"][None, :])


def c3_forward(x_nchw, pp, shortcut=True):
    # TODO(synk): keep the surrounding graph NHWC (or fold these transposes into
    #             the first/last kernels) to save two activation HBM round trips.
    x = jnp.transpose(x_nchw, (0, 2, 3, 1)).astype(ACT_DTYPE)    # NCHW -> NHWC
    N, H, W, Cin = x.shape
    M = N * H * W
    Cp = pp["w12"].shape[1] // 2
    Cout = pp["w3"].shape[1]

    # cv1 & cv2 fused: x is streamed from HBM exactly once, one MXU pass.
    y1, y2 = _dual_conv1x1(x.reshape(M, Cin), pp["w12"], pp["b12"])

    m = y1.reshape(N, H, W, Cp)
    for blk in pp["m"]:                       # n Bottleneck blocks, 1 call each
        m = _bottleneck_block(m, blk["w1"], blk["b1"], blk["w2"], blk["b2"],
                              shortcut)

    # cv3 with the channel concat fused (single K = 2*Cp matmul), bf16 output.
    out = _concat_conv1x1(m.reshape(M, Cp), y2, pp["w3"], pp["b3"])
    return jnp.transpose(out.reshape(N, H, W, Cout),
                         (0, 3, 1, 2)).astype(jnp.float32)        # -> NCHW f32


# -------------------------------- init helpers ------------------------------

def init_conv_bn(key, cin, cout, k):
    ks = jax.random.split(key, 6)
    return dict(
        w=0.1 * jax.random.normal(ks[0], (k, k, cin, cout), jnp.float32),
        b=0.1 * jax.random.normal(ks[1], (cout,), jnp.float32),
        gamma=1.0 + 0.1 * jax.random.normal(ks[2], (cout,), jnp.float32),
        beta=0.1 * jax.random.normal(ks[3], (cout,), jnp.float32),
        mean=0.1 * jax.random.normal(ks[4], (cout,), jnp.float32),
        var=0.5 + jax.random.uniform(ks[5], (cout,), jnp.float32),
    )


def init_c3(key, ch_in, ch_out, n=1, e=0.5):
    ch_ = int(ch_out * e)
    keys = jax.random.split(key, 3 + 2 * n)
    return dict(
        cv1=init_conv_bn(keys[0], ch_in, ch_, 1),
        cv2=init_conv_bn(keys[1], ch_in, ch_, 1),
        cv3=init_conv_bn(keys[2], 2 * ch_, ch_out, 1),
        m=[dict(cv1=init_conv_bn(keys[3 + 2 * i], ch_, ch_, 1),
                cv2=init_conv_bn(keys[4 + 2 * i], ch_, ch_, 3))
           for i in range(n)],
    )


# ------------------------------- references ---------------------------------

def _ref_conv_bn_silu(x_nhwc, p, pad):
    """Pure f32 ConvBNSiLU exactly as the PyTorch module (inference BN)."""
    y = jax.lax.conv_general_dilated(
        x_nhwc, p["w"], (1, 1), [(pad, pad), (pad, pad)],
        dimension_numbers=("NHWC", "HWIO", "NHWC")) + p["b"]
    y = p["gamma"] * (y - p["mean"]) / jnp.sqrt(p["var"] + _EPS) + p["beta"]
    return y * jax.nn.sigmoid(y)


def _ref_c3(x_nchw, params, shortcut=True):
    x = jnp.transpose(x_nchw, (0, 2, 3, 1))
    y1 = _ref_conv_bn_silu(x, params["cv1"], 0)
    y2 = _ref_conv_bn_silu(x, params["cv2"], 0)
    m = y1
    for bp in params["m"]:
        t = _ref_conv_bn_silu(m, bp["cv1"], 0)
        y = _ref_conv_bn_silu(t, bp["cv2"], 1)
        m = m + y if shortcut else y
    out = _ref_conv_bn_silu(jnp.concatenate([m, y2], axis=-1), params["cv3"], 0)
    return jnp.transpose(out, (0, 3, 1, 2))


def _matched_ref_c3(x_nchw, fparams, shortcut=True):
    """Reference at the kernel's exact precision (bf16 matmul operands, f32
    accumulate/epilogue, bf16 inter-stage & final activations)."""
    def conv(xa, f, pad):
        y = jax.lax.conv_general_dilated(
            xa, f["w"], (1, 1), [(pad, pad), (pad, pad)],
            dimension_numbers=("NHWC", "HWIO", "NHWC"),
            preferred_element_type=jnp.float32)
        y = y + f["b"].reshape(1, 1, 1, -1)
        return y * jax.nn.sigmoid(y)

    x = jnp.transpose(x_nchw, (0, 2, 3, 1)).astype(ACT_DTYPE)
    y1 = conv(x, fparams["cv1"], 0).astype(ACT_DTYPE)
    y2 = conv(x, fparams["cv2"], 0).astype(ACT_DTYPE)
    m = y1
    for bf in fparams["m"]:
        t = conv(m, bf["cv1"], 0).astype(ACT_DTYPE)
        y = conv(t, bf["cv2"], 1)
        m = ((m.astype(jnp.float32) + y) if shortcut else y).astype(ACT_DTYPE)
    out = conv(jnp.concatenate([m, y2], axis=-1),
               fparams["cv3"], 0).astype(ACT_DTYPE)
    return jnp.transpose(out, (0, 3, 1, 2)).astype(jnp.float32)


# ----------------------------------- main ------------------------------------

if __name__ == "__main__":
    key = jax.random.PRNGKey(0)
    kx, kp = jax.random.split(key)

    N, C_IN, H, W = 2, 8, 16, 16
    C_OUT, N_BOTTLENECK = 8, 1                    # e=0.5 -> hidden ch_ = 4

    x = jax.random.normal(kx, (N, C_IN, H, W), jnp.float32)     # NCHW like PyTorch
    params = init_c3(kp, C_IN, C_OUT, n=N_BOTTLENECK, e=0.5)
    folded = fold_c3_params(params)               # BN folded (shared with matched ref)
    packed = pack_c3_params(folded)               # Pallas layout (lane pad, tap repack)

    fwd = jax.jit(partial(c3_forward, shortcut=True))
    out = jax.block_until_ready(fwd(x, packed))

    ref_matched = jax.block_until_ready(_matched_ref_c3(x, folded, shortcut=True))
    ref_f32 = jax.block_until_ready(_ref_c3(x, params, shortcut=True))

    assert out.shape == (N, C_OUT, H, W), out.shape
    err_matched = float(jnp.max(jnp.abs(out - ref_matched)))   # kernel correctness
    err_f32 = float(jnp.max(jnp.abs(out - ref_f32)))           # bf16 quantization budget

    if err_matched < 2e-3 and err_f32 < 5e-2:
        print("KERNEL_OK")
    else:
        raise SystemExit(
            f"mismatch: matched-precision err={err_matched:.3e}, "
            f"f32 err={err_f32:.3e}")
</pallas_src>

<mosaic_0001>
module attributes {stable_mosaic.version = 11 : i64} {
  func.func @_dual_1x1_kernel(%arg0: i32, %arg1: memref<128x8xbf16, #tpu.memory_space<vmem>>, %arg2: memref<8x256xbf16, #tpu.memory_space<vmem>>, %arg3: memref<1x256xf32, #tpu.memory_space<vmem>>, %arg4: memref<128x128xbf16, #tpu.memory_space<vmem>>, %arg5: memref<128x128xbf16, #tpu.memory_space<vmem>>) attributes {dimension_semantics = [#tpu.dimension_semantics<parallel>], iteration_bounds = array<i64: 4>, scalar_prefetch = 0 : i64, scratch_operands = 0 : i64, tpu.core_type = #tpu.core_type<tc>, window_params = [{transform_indices = @transform_0, window_bounds = array<i64: 128, 8>}, {pipeline_mode = #tpu.pipeline_mode<synchronous>, transform_indices = @transform_1, window_bounds = array<i64: 8, 256>}, {pipeline_mode = #tpu.pipeline_mode<synchronous>, transform_indices = @transform_2, window_bounds = array<i64: 1, 256>}, {transform_indices = @transform_3, window_bounds = array<i64: 128, 128>}, {transform_indices = @transform_4, window_bounds = array<i64: 128, 128>}]} {
    %c0 = arith.constant 0 : index
    %c0_0 = arith.constant 0 : index
    %0 = vector.load %arg1[%c0, %c0_0] : memref<128x8xbf16, #tpu.memory_space<vmem>>, vector<128x8xbf16>
    %c0_1 = arith.constant 0 : index
    %c0_2 = arith.constant 0 : index
    %1 = vector.load %arg2[%c0_1, %c0_2] : memref<8x256xbf16, #tpu.memory_space<vmem>>, vector<8x256xbf16>
    %cst = arith.constant dense<0.000000e+00> : vector<128x256xf32>
    %2 = tpu.matmul %0, %1, %cst {dimension_numbers = #tpu.dot_dimension_numbers<[1], [0], [0], [1], [0, 0, 1, 1], [], []>} : vector<128x8xbf16>, vector<8x256xbf16>, vector<128x256xf32> -> vector<128x256xf32>
    %c0_3 = arith.constant 0 : index
    %c0_4 = arith.constant 0 : index
    %3 = vector.load %arg3[%c0_3, %c0_4] : memref<1x256xf32, #tpu.memory_space<vmem>>, vector<1x256xf32>
    %4 = vector.broadcast %3 : vector<1x256xf32> to vector<128x256xf32>
    %5 = arith.addf %2, %4 : vector<128x256xf32>
    %6 = vector.extract_strided_slice %5 {offsets = [0, 0], sizes = [128, 128], strides = [1, 1]} : vector<128x256xf32> to vector<128x128xf32>
    %7 = vector.extract_strided_slice %5 {offsets = [0, 128], sizes = [128, 128], strides = [1, 1]} : vector<128x256xf32> to vector<128x128xf32>
    %8 = arith.negf %6 : vector<128x128xf32>
    %9 = math.exp %8 : vector<128x128xf32>
    %cst_5 = arith.constant 1.000000e+00 : f32
    %10 = vector.broadcast %cst_5 : f32 to vector<128x128xf32>
    %11 = arith.addf %10, %9 : vector<128x128xf32>
    %12 = arith.divf %10, %11 : vector<128x128xf32>
    %13 = arith.mulf %6, %12 : vector<128x128xf32>
    %14 = arith.truncf %13 : vector<128x128xf32> to vector<128x128xbf16>
    %c0_6 = arith.constant 0 : index
    %c0_7 = arith.constant 0 : index
    %15 = vector.load %arg4[%c0_6, %c0_7] : memref<128x128xbf16, #tpu.memory_space<vmem>>, vector<128x128xbf16>
    tpu.vector_store %arg4[%c0_6, %c0_7], %14 {strides = array<i32>} : memref<128x128xbf16, #tpu.memory_space<vmem>>, vector<128x128xbf16>,
    %16 = arith.negf %7 : vector<128x128xf32>
    %17 = math.exp %16 : vector<128x128xf32>
    %cst_8 = arith.constant 1.000000e+00 : f32
    %18 = vector.broadcast %cst_8 : f32 to vector<128x128xf32>
    %19 = arith.addf %18, %17 : vector<128x128xf32>
    %20 = arith.divf %18, %19 : vector<128x128xf32>
    %21 = arith.mulf %7, %20 : vector<128x128xf32>
    %22 = arith.truncf %21 : vector<128x128xf32> to vector<128x128xbf16>
    %c0_9 = arith.constant 0 : index
    %c0_10 = arith.constant 0 : index
    %23 = vector.load %arg5[%c0_9, %c0_10] : memref<128x128xbf16, #tpu.memory_space<vmem>>, vector<128x128xbf16>
    tpu.vector_store %arg5[%c0_9, %c0_10], %22 {strides = array<i32>} : memref<128x128xbf16, #tpu.memory_space<vmem>>, vector<128x128xbf16>,
    return
  }
  func.func @transform_0(%arg0: i32) -> (i32, i32) {
    %c0_i32 = arith.constant 0 : i32
    %c0_i32_0 = arith.constant 0 : i32
    return %arg0, %c0_i32 : i32, i32
  }
  func.func @transform_1(%arg0: i32) -> (i32, i32) {
    %c0_i32 = arith.constant 0 : i32
    %c0_i32_0 = arith.constant 0 : i32
    %c0_i32_1 = arith.constant 0 : i32
    return %c0_i32, %c0_i32_0 : i32, i32
  }
  func.func @transform_2(%arg0: i32) -> (i32, i32) {
    %c0_i32 = arith.constant 0 : i32
    %c0_i32_0 = arith.constant 0 : i32
    %c0_i32_1 = arith.constant 0 : i32
    return %c0_i32, %c0_i32_0 : i32, i32
  }
  func.func @transform_3(%arg0: i32) -> (i32, i32) {
    %c0_i32 = arith.constant 0 : i32
    %c0_i32_0 = arith.constant 0 : i32
    return %arg0, %c0_i32 : i32, i32
  }
  func.func @transform_4(%arg0: i32) -> (i32, i32) {
    %c0_i32 = arith.constant 0 : i32
    %c0_i32_0 = arith.constant 0 : i32
    return %arg0, %c0_i32 : i32, i32
  }
}

module attributes {stable_mosaic.version = 11 : i64} {
  func.func @_bottleneck_kernel(%arg0: i32, %arg1: memref<1x16x16x128xbf16, #tpu.memory_space<vmem>>, %arg2: memref<128x128xbf16, #tpu.memory_space<vmem>>, %arg3: memref<1x128xf32, #tpu.memory_space<vmem>>, %arg4: memref<3x384x128xbf16, #tpu.memory_space<vmem>>, %arg5: memref<1x128xf32, #tpu.memory_space<vmem>>, %arg6: memref<1x16x16x128xbf16, #tpu.memory_space<vmem>>, %arg7: memref<18x18x128xbf16, #tpu.memory_space<vmem>>) attributes {dimension_semantics = [#tpu.dimension_semantics<parallel>], iteration_bounds = array<i64: 2>, scalar_prefetch = 0 : i64, scratch_operands = 1 : i64, tpu.core_type = #tpu.core_type<tc>, window_params = [{transform_indices = @transform_0, window_bounds = array<i64: 1, 16, 16, 128>}, {pipeline_mode = #tpu.pipeline_mode<synchronous>, transform_indices = @transform_1, window_bounds = array<i64: 128, 128>}, {pipeline_mode = #tpu.pipeline_mode<synchronous>, transform_indices = @transform_2, window_bounds = array<i64: 1, 128>}, {pipeline_mode = #tpu.pipeline_mode<synchronous>, transform_indices = @transform_3, window_bounds = array<i64: 3, 384, 128>}, {pipeline_mode = #tpu.pipeline_mode<synchronous>, transform_indices = @transform_4, window_bounds = array<i64: 1, 128>}, {transform_indices = @transform_5, window_bounds = array<i64: 1, 16, 16, 128>}]} {
    %c0 = arith.constant 0 : index
    %c0_0 = arith.constant 0 : index
    %c0_1 = arith.constant 0 : index
    %c0_2 = arith.constant 0 : index
    %0 = vector.load %arg1[%c0, %c0_0, %c0_1, %c0_2] : memref<1x16x16x128xbf16, #tpu.memory_space<vmem>>, vector<1x16x16x128xbf16>
    %1 = vector.shape_cast %0 : vector<1x16x16x128xbf16> to vector<16x16x128xbf16>
    %2 = vector.shape_cast %1 : vector<16x16x128xbf16> to vector<256x128xbf16>
    %c0_3 = arith.constant 0 : index
    %c0_4 = arith.constant 0 : index
    %3 = vector.load %arg2[%c0_3, %c0_4] : memref<128x128xbf16, #tpu.memory_space<vmem>>, vector<128x128xbf16>
    %cst = arith.constant dense<0.000000e+00> : vector<256x128xf32>
    %4 = tpu.matmul %2, %3, %cst {dimension_numbers = #tpu.dot_dimension_numbers<[1], [0], [0], [1], [0, 0, 1, 1], [], []>} : vector<256x128xbf16>, vector<128x128xbf16>, vector<256x128xf32> -> vector<256x128xf32>
    %c0_5 = arith.constant 0 : index
    %c0_6 = arith.constant 0 : index
    %5 = vector.load %arg3[%c0_5, %c0_6] : memref<1x128xf32, #tpu.memory_space<vmem>>, vector<1x128xf32>
    %6 = vector.broadcast %5 : vector<1x128xf32> to vector<256x128xf32>
    %7 = arith.addf %4, %6 : vector<256x128xf32>
    %8 = arith.negf %7 : vector<256x128xf32>
    %9 = math.exp %8 : vector<256x128xf32>
    %cst_7 = arith.constant 1.000000e+00 : f32
    %10 = vector.broadcast %cst_7 : f32 to vector<256x128xf32>
    %11 = arith.addf %10, %9 : vector<256x128xf32>
    %12 = arith.divf %10, %11 : vector<256x128xf32>
    %13 = arith.mulf %7, %12 : vector<256x128xf32>
    %14 = arith.truncf %13 : vector<256x128xf32> to vector<256x128xbf16>
    %cst_8 = arith.constant 0.000000e+00 : bf16
    %15 = vector.broadcast %cst_8 : bf16 to vector<18x18x128xbf16>
    %c0_9 = arith.constant 0 : index
    %c0_10 = arith.constant 0 : index
    %c0_11 = arith.constant 0 : index
    %16 = vector.load %arg7[%c0_9, %c0_10, %c0_11] : memref<18x18x128xbf16, #tpu.memory_space<vmem>>, vector<18x18x128xbf16>
    tpu.vector_store %arg7[%c0_9, %c0_10, %c0_11], %15 {strides = array<i32>} : memref<18x18x128xbf16, #tpu.memory_space<vmem>>, vector<18x18x128xbf16>,
    %17 = vector.shape_cast %14 : vector<256x128xbf16> to vector<16x16x128xbf16>
    %c1 = arith.constant 1 : index
    %c1_12 = arith.constant 1 : index
    %c0_13 = arith.constant 0 : index
    %18 = vector.load %arg7[%c1, %c1_12, %c0_13] : memref<18x18x128xbf16, #tpu.memory_space<vmem>>, vector<16x16x128xbf16>
    tpu.vector_store %arg7[%c1, %c1_12, %c0_13], %17 {strides = array<i32>} : memref<18x18x128xbf16, #tpu.memory_space<vmem>>, vector<16x16x128xbf16>,
    %c0_14 = arith.constant 0 : index
    %c0_15 = arith.constant 0 : index
    %c0_16 = arith.constant 0 : index
    %19 = vector.load %arg7[%c0_14, %c0_15, %c0_16] : memref<18x18x128xbf16, #tpu.memory_space<vmem>>, vector<18x18x128xbf16>
    %cst_17 = arith.constant 0.000000e+00 : f32
    %20 = vector.broadcast %cst_17 : f32 to vector<256x128xf32>
    %21 = vector.extract_strided_slice %19 {offsets = [0, 0, 0], sizes = [16, 16, 128], strides = [1, 1, 1]} : vector<18x18x128xbf16> to vector<16x16x128xbf16>
    %22 = vector.extract_strided_slice %19 {offsets = [0, 1, 0], sizes = [16, 16, 128], strides = [1, 1, 1]} : vector<18x18x128xbf16> to vector<16x16x128xbf16>
    %23 = vector.extract_strided_slice %19 {offsets = [0, 2, 0], sizes = [16, 16, 128], strides = [1, 1, 1]} : vector<18x18x128xbf16> to vector<16x16x128xbf16>
    %24 = tpu.concatenate %21, %22, %23 in 2 : vector<16x16x128xbf16>, vector<16x16x128xbf16>, vector<16x16x128xbf16> -> vector<16x16x384xbf16>
    %25 = vector.shape_cast %24 : vector<16x16x384xbf16> to vector<256x384xbf16>
    %c0_18 = arith.constant 0 : index
    %c0_19 = arith.constant 0 : index
    %c0_20 = arith.constant 0 : index
    %26 = vector.load %arg4[%c0_18, %c0_19, %c0_20] : memref<3x384x128xbf16, #tpu.memory_space<vmem>>, vector<1x384x128xbf16>
    %27 = vector.shape_cast %26 : vector<1x384x128xbf16> to vector<384x128xbf16>
    %cst_21 = arith.constant dense<0.000000e+00> : vector<256x128xf32>
    %28 = tpu.matmul %25, %27, %cst_21 {dimension_numbers = #tpu.dot_dimension_numbers<[1], [0], [0], [1], [0, 0, 1, 1], [], []>} : vector<256x384xbf16>, vector<384x128xbf16>, vector<256x128xf32> -> vector<256x128xf32>
    %29 = arith.addf %20, %28 : vector<256x128xf32>
    %30 = vector.extract_strided_slice %19 {offsets = [1, 0, 0], sizes = [16, 16, 128], strides = [1, 1, 1]} : vector<18x18x128xbf16> to vector<16x16x128xbf16>
    %31 = vector.extract_strided_slice %19 {offsets = [1, 1, 0], sizes = [16, 16, 128], strides = [1, 1, 1]} : vector<18x18x128xbf16> to vector<16x16x128xbf16>
    %32 = vector.extract_strided_slice %19 {offsets = [1, 2, 0], sizes = [16, 16, 128], strides = [1, 1, 1]} : vector<18x18x128xbf16> to vector<16x16x128xbf16>
    %33 = tpu.concatenate %30, %31, %32 in 2 : vector<16x16x128xbf16>, vector<16x16x128xbf16>, vector<16x16x128xbf16> -> vector<16x16x384xbf16>
    %34 = vector.shape_cast %33 : vector<16x16x384xbf16> to vector<256x384xbf16>
    %c1_22 = arith.constant 1 : index
    %c0_23 = arith.constant 0 : index
    %c0_24 = arith.constant 0 : index
    %35 = vector.load %arg4[%c1_22, %c0_23, %c0_24] : memref<3x384x128xbf16, #tpu.memory_space<vmem>>, vector<1x384x128xbf16>
    %36 = vector.shape_cast %35 : vector<1x384x128xbf16> to vector<384x128xbf16>
    %cst_25 = arith.constant dense<0.000000e+00> : vector<256x128xf32>
    %37 = tpu.matmul %34, %36, %cst_25 {dimension_numbers = #tpu.dot_dimension_numbers<[1], [0], [0], [1], [0, 0, 1, 1], [], []>} : vector<256x384xbf16>, vector<384x128xbf16>, vector<256x128xf32> -> vector<256x128xf32>
    %38 = arith.addf %29, %37 : vector<256x128xf32>
    %39 = vector.extract_strided_slice %19 {offsets = [2, 0, 0], sizes = [16, 16, 128], strides = [1, 1, 1]} : vector<18x18x128xbf16> to vector<16x16x128xbf16>
    %40 = vector.extract_strided_slice %19 {offsets = [2, 1, 0], sizes = [16, 16, 128], strides = [1, 1, 1]} : vector<18x18x128xbf16> to vector<16x16x128xbf16>
    %41 = vector.extract_strided_slice %19 {offsets = [2, 2, 0], sizes = [16, 16, 128], strides = [1, 1, 1]} : vector<18x18x128xbf16> to vector<16x16x128xbf16>
    %42 = tpu.concatenate %39, %40, %41 in 2 : vector<16x16x128xbf16>, vector<16x16x128xbf16>, vector<16x16x128xbf16> -> vector<16x16x384xbf16>
    %43 = vector.shape_cast %42 : vector<16x16x384xbf16> to vector<256x384xbf16>
    %c2 = arith.constant 2 : index
    %c0_26 = arith.constant 0 : index
    %c0_27 = arith.constant 0 : index
    %44 = vector.load %arg4[%c2, %c0_26, %c0_27] : memref<3x384x128xbf16, #tpu.memory_space<vmem>>, vector<1x384x128xbf16>
    %45 = vector.shape_cast %44 : vector<1x384x128xbf16> to vector<384x128xbf16>
    %cst_28 = arith.constant dense<0.000000e+00> : vector<256x128xf32>
    %46 = tpu.matmul %43, %45, %cst_28 {dimension_numbers = #tpu.dot_dimension_numbers<[1], [0], [0], [1], [0, 0, 1, 1], [], []>} : vector<256x384xbf16>, vector<384x128xbf16>, vector<256x128xf32> -> vector<256x128xf32>
    %47 = arith.addf %38, %46 : vector<256x128xf32>
    %c0_29 = arith.constant 0 : index
    %c0_30 = arith.constant 0 : index
    %48 = vector.load %arg5[%c0_29, %c0_30] : memref<1x128xf32, #tpu.memory_space<vmem>>, vector<1x128xf32>
    %49 = vector.broadcast %48 : vector<1x128xf32> to vector<256x128xf32>
    %50 = arith.addf %47, %49 : vector<256x128xf32>
    %51 = arith.negf %50 : vector<256x128xf32>
    %52 = math.exp %51 : vector<256x128xf32>
    %cst_31 = arith.constant 1.000000e+00 : f32
    %53 = vector.broadcast %cst_31 : f32 to vector<256x128xf32>
    %54 = arith.addf %53, %52 : vector<256x128xf32>
    %55 = arith.divf %53, %54 : vector<256x128xf32>
    %56 = arith.mulf %50, %55 : vector<256x128xf32>
    %57 = vector.shape_cast %1 : vector<16x16x128xbf16> to vector<256x128xbf16>
    %58 = arith.extf %57 : vector<256x128xbf16> to vector<256x128xf32>
    %59 = arith.addf %56, %58 : vector<256x128xf32>
    %60 = vector.shape_cast %59 : vector<256x128xf32> to vector<16x16x128xf32>
    %61 = arith.truncf %60 : vector<16x16x128xf32> to vector<16x16x128xbf16>
    %c0_32 = arith.constant 0 : index
    %c0_33 = arith.constant 0 : index
    %c0_34 = arith.constant 0 : index
    %c0_35 = arith.constant 0 : index
    %62 = vector.load %arg6[%c0_32, %c0_33, %c0_34, %c0_35] : memref<1x16x16x128xbf16, #tpu.memory_space<vmem>>, vector<1x16x16x128xbf16>
    %63 = vector.shape_cast %62 : vector<1x16x16x128xbf16> to vector<16x16x128xbf16>
    %64 = vector.shape_cast %61 : vector<16x16x128xbf16> to vector<1x16x16x128xbf16>
    tpu.vector_store %arg6[%c0_32, %c0_33, %c0_34, %c0_35], %64 {strides = array<i32>} : memref<1x16x16x128xbf16, #tpu.memory_space<vmem>>, vector<1x16x16x128xbf16>,
    return
  }
  func.func @transform_0(%arg0: i32) -> (i32, i32, i32, i32) {
    %c0_i32 = arith.constant 0 : i32
    %c0_i32_0 = arith.constant 0 : i32
    %c0_i32_1 = arith.constant 0 : i32
    %c0_i32_2 = arith.constant 0 : i32
    return %arg0, %c0_i32, %c0_i32_0, %c0_i32_1 : i32, i32, i32, i32
  }
  func.func @transform_1(%arg0: i32) -> (i32, i32) {
    %c0_i32 = arith.constant 0 : i32
    %c0_i32_0 = arith.constant 0 : i32
    %c0_i32_1 = arith.constant 0 : i32
    return %c0_i32, %c0_i32_0 : i32, i32
  }
  func.func @transform_2(%arg0: i32) -> (i32, i32) {
    %c0_i32 = arith.constant 0 : i32
    %c0_i32_0 = arith.constant 0 : i32
    %c0_i32_1 = arith.constant 0 : i32
    return %c0_i32, %c0_i32_0 : i32, i32
  }
  func.func @transform_3(%arg0: i32) -> (i32, i32, i32) {
    %c0_i32 = arith.constant 0 : i32
    %c0_i32_0 = arith.constant 0 : i32
    %c0_i32_1 = arith.constant 0 : i32
    %c0_i32_2 = arith.constant 0 : i32
    return %c0_i32, %c0_i32_0, %c0_i32_1 : i32, i32, i32
  }
  func.func @transform_4(%arg0: i32) -> (i32, i32) {
    %c0_i32 = arith.constant 0 : i32
    %c0_i32_0 = arith.constant 0 : i32
    %c0_i32_1 = arith.constant 0 : i32
    return %c0_i32, %c0_i32_0 : i32, i32
  }
  func.func @transform_5(%arg0: i32) -> (i32, i32, i32, i32) {
    %c0_i32 = arith.constant 0 : i32
    %c0_i32_0 = arith.constant 0 : i32
    %c0_i32_1 = arith.constant 0 : i32
    %c0_i32_2 = arith.constant 0 : i32
    return %arg0, %c0_i32, %c0_i32_0, %c0_i32_1 : i32, i32, i32, i32
  }
}

module attributes {stable_mosaic.version = 11 : i64} {
  func.func @_concat_1x1_kernel(%arg0: i32, %arg1: memref<128x128xbf16, #tpu.memory_space<vmem>>, %arg2: memref<128x128xbf16, #tpu.memory_space<vmem>>, %arg3: memref<256x8xbf16, #tpu.memory_space<vmem>>, %arg4: memref<1x8xf32, #tpu.memory_space<vmem>>, %arg5: memref<128x8xbf16, #tpu.memory_space<vmem>>) attributes {dimension_semantics = [#tpu.dimension_semantics<parallel>], iteration_bounds = array<i64: 4>, scalar_prefetch = 0 : i64, scratch_operands = 0 : i64, tpu.core_type = #tpu.core_type<tc>, window_params = [{transform_indices = @transform_0, window_bounds = array<i64: 128, 128>}, {transform_indices = @transform_1, window_bounds = array<i64: 128, 128>}, {pipeline_mode = #tpu.pipeline_mode<synchronous>, transform_indices = @transform_2, window_bounds = array<i64: 256, 8>}, {pipeline_mode = #tpu.pipeline_mode<synchronous>, transform_indices = @transform_3, window_bounds = array<i64: 1, 8>}, {transform_indices = @transform_4, window_bounds = array<i64: 128, 8>}]} {
    %c0 = arith.constant 0 : index
    %c0_0 = arith.constant 0 : index
    %0 = vector.load %arg1[%c0, %c0_0] : memref<128x128xbf16, #tpu.memory_space<vmem>>, vector<128x128xbf16>
    %c0_1 = arith.constant 0 : index
    %c0_2 = arith.constant 0 : index
    %1 = vector.load %arg2[%c0_1, %c0_2] : memref<128x128xbf16, #tpu.memory_space<vmem>>, vector<128x128xbf16>
    %2 = tpu.concatenate %0, %1 in 1 : vector<128x128xbf16>, vector<128x128xbf16> -> vector<128x256xbf16>
    %c0_3 = arith.constant 0 : index
    %c0_4 = arith.constant 0 : index
    %3 = vector.load %arg3[%c0_3, %c0_4] : memref<256x8xbf16, #tpu.memory_space<vmem>>, vector<256x8xbf16>
    %cst = arith.constant dense<0.000000e+00> : vector<128x8xf32>
    %4 = tpu.matmul %2, %3, %cst {dimension_numbers = #tpu.dot_dimension_numbers<[1], [0], [0], [1], [0, 0, 1, 1], [], []>} : vector<128x256xbf16>, vector<256x8xbf16>, vector<128x8xf32> -> vector<128x8xf32>
    %c0_5 = arith.constant 0 : index
    %c0_6 = arith.constant 0 : index
    %5 = vector.load %arg4[%c0_5, %c0_6] : memref<1x8xf32, #tpu.memory_space<vmem>>, vector<1x8xf32>
    %6 = vector.broadcast %5 : vector<1x8xf32> to vector<128x8xf32>
    %7 = arith.addf %4, %6 : vector<128x8xf32>
    %8 = arith.negf %7 : vector<128x8xf32>
    %9 = math.exp %8 : vector<128x8xf32>
    %cst_7 = arith.constant 1.000000e+00 : f32
    %10 = vector.broadcast %cst_7 : f32 to vector<128x8xf32>
    %11 = arith.addf %10, %9 : vector<128x8xf32>
    %12 = arith.divf %10, %11 : vector<128x8xf32>
    %13 = arith.mulf %7, %12 : vector<128x8xf32>
    %14 = arith.truncf %13 : vector<128x8xf32> to vector<128x8xbf16>
    %c0_8 = arith.constant 0 : index
    %c0_9 = arith.constant 0 : index
    %15 = vector.load %arg5[%c0_8, %c0_9] : memref<128x8xbf16, #tpu.memory_space<vmem>>, vector<128x8xbf16>
    tpu.vector_store %arg5[%c0_8, %c0_9], %14 {strides = array<i32>} : memref<128x8xbf16, #tpu.memory_space<vmem>>, vector<128x8xbf16>,
    return
  }
  func.func @transform_0(%arg0: i32) -> (i32, i32) {
    %c0_i32 = arith.constant 0 : i32
    %c0_i32_0 = arith.constant 0 : i32
    return %arg0, %c0_i32 : i32, i32
  }
  func.func @transform_1(%arg0: i32) -> (i32, i32) {
    %c0_i32 = arith.constant 0 : i32
    %c0_i32_0 = arith.constant 0 : i32
    return %arg0, %c0_i32 : i32, i32
  }
  func.func @transform_2(%arg0: i32) -> (i32, i32) {
    %c0_i32 = arith.constant 0 : i32
    %c0_i32_0 = arith.constant 0 : i32
    %c0_i32_1 = arith.constant 0 : i32
    return %c0_i32, %c0_i32_0 : i32, i32
  }
  func.func @transform_3(%arg0: i32) -> (i32, i32) {
    %c0_i32 = arith.constant 0 : i32
    %c0_i32_0 = arith.constant 0 : i32
    %c0_i32_1 = arith.constant 0 : i32
    return %c0_i32, %c0_i32_0 : i32, i32
  }
  func.func @transform_4(%arg0: i32) -> (i32, i32) {
    %c0_i32 = arith.constant 0 : i32
    %c0_i32_0 = arith.constant 0 : i32
    return %arg0, %c0_i32 : i32, i32
  }
}

</mosaic_0001>

<bundles_post_ra>
// kernel: c3_forward.3
= control target key start
LH: loop header
LB: loop body
LE: loop exit
PB: predicated region body
PF: predicated region fallthrough
CT: control target
= control target key end

     0   :  { %s1314_s15 = smov 0   ;;  %s1564_s0 = inlined_call_operand.vmem [shape: bf16[512,8], index: 0, kind: input, shape index: {}]   ;;  %s1565_s1 = inlined_call_operand.vmem [shape: bf16[8,256], index: 1, kind: input, shape index: {}]   ;;  %s1566_s2 = inlined_call_operand.vmem [shape: f32[1,256], index: 2, kind: input, shape index: {}]   ;;  %s1567_s3 = inlined_call_operand.vmem [shape: bf16[512,128], index: 3, kind: output, shape index: {0}]   ;;  %s1568_s4 = inlined_call_operand.vmem [shape: bf16[512,128], index: 4, kind: output, shape index: {1}]  }
   0x1 LB: > { %s909_s16 = sadd.s32 4294967295, %s1286_s15   ;;  %p913_p0 = scmp.ge.s32.totalorder %s1286_s15, 1  ;;  %s1286_s15 = sphi %s1314_s15, %s15_s15  }
   0x2   : > { %p166_p1 = scmp.lt.s32.totalorder %s1286_s15, 5 }
   0x4   : > { %p167_p2 = pnand %p913_p0, %p166_p1 }
   0x5   : > { %v232_v0 = vld [vmem:[%s1565_s1] sm:$0xff] (!%p167_p2)  ;;  %vm315_vm0 = vcmask (!%p167_p2), 1043456   ;;  %s914_s19 = sshll.u32 (!%p167_p2), %s909_s16, 4  ;;  %v1288_v3 = vmov (!%p167_p2), 0   ;;  %vm290_vm1 = vcmask (!%p167_p2), 64512   ;;  %v235_v13 = vlaneseq (!%p167_p2) }
   0x6   : > { %170 = sbr.rel (%p167_p2) target bundleno = 319 (0x13f), region = 32  ;;  %v929_v1 = vcombine.high (!%p167_p2), %v232_v0, %v232_v0  ;;  %v928_v2 = vcombine.low (!%p167_p2), %v232_v0, %v232_v0  ;;  %354 = vmatprep.mubr.bf16.mxu0 (!%p167_p2), %v1288_v3  ;;  %394 = vmatprep.mubr.bf16.mxu1 (!%p167_p2), %v1288_v3  ;;  %p198_p3 = scmp.lt.s32.totalorder (!%p167_p2), %s914_s19, 63  ;;  %v233_v16 = vld [vmem:[%s1566_s2] sm:$0x3] (!%p167_p2) }
   0x7   : > { %v236_v14 = vshrl.u32 (!%p167_p2), %v235_v13, 7 }
   0x8   : > { %930 = vmatprep.subr.msk.bf16.mxu0 (!%p167_p2), %vm315_vm0, %v929_v1  ;;  %1131 = vmatprep.subr.msk.bf16.mxu1 (!%p167_p2), %vm315_vm0, %v929_v1  ;;  %v317_v4 = vsel (!%p167_p2), %vm315_vm0, %v928_v2, 0 }
   0x9   : > { %323 = vmatpush1.bf16.msra.mxu0 (!%p167_p2), %v317_v4  ;;  %1132 = vmatpush1.bf16.msra.mxu1 (!%p167_p2), %v317_v4  ;;  %v237_v15 = vsub.s32 (!%p167_p2), 0, %v236_v14  ;;  %v241_v17 = vsub.s32 (!%p167_p2), 1, %v236_v14 }
   0xb   : > { %v1342_v18 = vrot.slane (!%p167_p2), %v233_v16, %v237_v15  ;;  %v1344_v19 = vrot.slane (!%p167_p2), %v233_v16, %v241_v17 }
   0xd   : > { %s1570_s19 = smov (!%p198_p3, %s914_s19), 63 }
   0xe   : > { %s1325_s20 = sshll.u32 %s1570_s19, 2 }
   0xf   : > { %s201_s23 = scalar_lea.vmem %s1564_s0, %s1325_s20  ;;  %s1463_s28 = scalar_lea.vmem %s1567_s3, %s1325_s20 }
  0x10   : > { %v1144_v5 = vld [vmem:[%s201_s23] sm:$0xff]   ;;  %v1146_v7 = vld [vmem:[%s201_s23 + $0x8] sm:$0xff]   ;;  %v1148_v9 = vld [vmem:[%s201_s23 + $0x10] sm:$0xff]   ;;  %s1476_s5 = scalar_lea.vmem %s1568_s4, %s1325_s20 }
  0x11   : > { %v1145_v6 = vld [vmem:[%s201_s23 + $0x20] sm:$0xff]   ;;  %931 = vmatmul.mubr.msk.bf16.vlgmr.msra.gmra.mrb[0].mxu0 %vm290_vm1, %v1144_v5  ;;  %v1147_v8 = vld [vmem:[%s201_s23 + $0x28] sm:$0xff]   ;;  %v1149_v10 = vld [vmem:[%s201_s23 + $0x30] sm:$0xff]  }
  0x12   : > { %935 = vmatmul.mubr.msk.bf16.vlgmr.msra.gmra.mrb[0].mxu1 %vm290_vm1, %v1145_v6  ;;  %364 = vmatprep.mubr.bf16.mxu0 %v1288_v3  ;;  %v1150_v11 = vld [vmem:[%s201_s23 + $0x18] sm:$0xff]  }
  0x13   : > { %404 = vmatprep.mubr.bf16.mxu1 %v1288_v3  ;;  %v1151_v12 = vld [vmem:[%s201_s23 + $0x38] sm:$0xff]  }
  0x19   : > { %932 = vmatmul.mubr.msk.bf16.gmra.mrb[4].mxu0 %vm290_vm1, %v1146_v7 }
  0x1a   : > { %936 = vmatmul.mubr.msk.bf16.gmra.mrb[4].mxu1 %vm290_vm1, %v1147_v8  ;;  %374 = vmatprep.mubr.bf16.mxu0 %v1288_v3 }
  0x1b   : > { %414 = vmatprep.mubr.bf16.mxu1 %v1288_v3 }
  0x21   : > { %933 = vmatmul.mubr.msk.bf16.gmra.mrb[8].mxu0 %vm290_vm1, %v1148_v9 }
  0x22   : > { %937 = vmatmul.mubr.msk.bf16.gmra.mrb[8].mxu1 %vm290_vm1, %v1149_v10  ;;  %384 = vmatprep.mubr.bf16.mxu0 %v1288_v3 }
  0x23   : > { %424 = vmatprep.mubr.bf16.mxu1 %v1288_v3 }
  0x29   : > { %934 = vmatmul.mubr.msk.bf16.gmra.mrb[12].mxu0 %vm290_vm1, %v1150_v11 }
  0x2a   : > { %938 = vmatmul.mubr.msk.bf16.gmra.mrb[12].mxu1 %vm290_vm1, %v1151_v12 }
  0xe4   : > { %v356_v20 = vpop.f32.mrb[0].mxu0 }
  0xe5   : > { %v1347_v21 = vadd.f32 %v356_v20, %v1342_v18  ;;  %v396_v22 = vpop.f32.mrb[0].mxu1  ;;  %v358_v23 = vpop.f32.mrb[1].mxu0 }
  0xe6   : > { %v1350_v24 = vadd.f32 %v396_v22, %v1342_v18  ;;  %v1353_v25 = vadd.f32 %v358_v23, %v1344_v19  ;;  %v398_v26 = vpop.f32.mrb[1].mxu1  ;;  %v360_v27 = vpop.f32.mrb[2].mxu0 }
  0xe7   : > { %v939_v28 = vmul.f32 -1.442695, %v1347_v21  ;;  %v1357_v29 = vadd.f32 %v398_v26, %v1344_v19  ;;  %v1360_v30 = vadd.f32 %v360_v27, %v1342_v18  ;;  %v400_v31 = vpop.f32.mrb[2].mxu1  ;;  %v362_v32 = vpop.f32.mrb[3].mxu0 }
  0xe8   : > { %v947_v33 = vmul.f32 -1.442695, %v1350_v24  ;;  %v971_v34 = vmul.f32 -1.442695, %v1353_v25  ;;  %v1365_v35 = vadd.f32 %v400_v31, %v1342_v18  ;;  %v1368_v36 = vadd.f32 %v362_v32, %v1344_v19  ;;  %v402_v37 = vpop.f32.mrb[3].mxu1 }
  0xe9   : > { %1152 = vpow2.f32 %v939_v28  ;;  %v979_v38 = vmul.f32 -1.442695, %v1357_v29  ;;  %v940_v39 = vmul.f32 -1.442695, %v1360_v30  ;;  %v1373_v40 = vadd.f32 %v402_v37, %v1344_v19 }
  0xea   : > { %1154 = vpow2.f32 %v947_v33  ;;  %v948_v41 = vmul.f32 -1.442695, %v1365_v35  ;;  %v972_v42 = vmul.f32 -1.442695, %v1368_v36 }
  0xeb   : > { %1156 = vpow2.f32 %v971_v34  ;;  %v980_v43 = vmul.f32 -1.442695, %v1373_v40 }
  0xec   : > { %1158 = vpow2.f32 %v979_v38  ;;  %v366_v44 = vpop.f32.mrb[4].mxu0 }
  0xed   : > { %1160 = vpow2.f32 %v940_v39  ;;  %v1379_v45 = vadd.f32 %v366_v44, %v1342_v18  ;;  %v406_v46 = vpop.f32.mrb[4].mxu1  ;;  %v368_v47 = vpop.f32.mrb[5].mxu0 }
  0xee   : > { %1162 = vpow2.f32 %v948_v41  ;;  %v1382_v48 = vadd.f32 %v406_v46, %v1342_v18  ;;  %v1385_v49 = vadd.f32 %v368_v47, %v1344_v19  ;;  %v408_v50 = vpop.f32.mrb[5].mxu1  ;;  %v370_v51 = vpop.f32.mrb[6].mxu0 }
  0xef   : > { %1164 = vpow2.f32 %v972_v42  ;;  %v941_v52 = vmul.f32 -1.442695, %v1379_v45  ;;  %v1389_v53 = vadd.f32 %v408_v50, %v1344_v19  ;;  %v1392_v54 = vadd.f32 %v370_v51, %v1342_v18  ;;  %v410_v55 = vpop.f32.mrb[6].mxu1  ;;  %v372_v56 = vpop.f32.mrb[7].mxu0 }
  0xf0   : > { %1166 = vpow2.f32 %v980_v43  ;;  %v949_v57 = vmul.f32 -1.442695, %v1382_v48  ;;  %v973_v58 = vmul.f32 -1.442695, %v1385_v49  ;;  %v412_v59 = vpop.f32.mrb[7].mxu1  ;;  %v1399_v16 = vadd.f32 %v410_v55, %v1342_v18 }
  0xf1   : > { %1168 = vpow2.f32 %v941_v52  ;;  %v981_v60 = vmul.f32 -1.442695, %v1389_v53  ;;  %v942_v61 = vmul.f32 -1.442695, %v1392_v54  ;;  %v1402_v23 = vadd.f32 %v372_v56, %v1344_v19 }
  0xf2   : > { %1170 = vpow2.f32 %v949_v57  ;;  %v950_v34 = vmul.f32 -1.442695, %v1399_v16  ;;  %v1406_v37 = vadd.f32 %v412_v59, %v1344_v19 }
  0xf3   : > { %v1153_v62 = vpop.eup %1152  ;;  %1172 = vpow2.f32 %v973_v58  ;;  %v974_v42 = vmul.f32 -1.442695, %v1402_v23 }
  0xf4   : > { %v1155_v63 = vpop.eup %1154  ;;  %v483_v0 = vadd.f32 1.0, %v1153_v62  ;;  %1174 = vpow2.f32 %v981_v60  ;;  %v376_v1 = vpop.f32.mrb[8].mxu0 }
  0xf5   : > { %v1157_v2 = vpop.eup %1156  ;;  %v491_v3 = vadd.f32 1.0, %v1155_v63  ;;  %1176 = vpow2.f32 %v942_v61  ;;  %v416_v4 = vpop.f32.mrb[8].mxu1  ;;  %v1410_v43 = vadd.f32 %v376_v1, %v1342_v18 }
  0xf6   : > { %v378_v5 = vpop.f32.mrb[9].mxu0  ;;  %v1159_v6 = vpop.eup %1158  ;;  %1178 = vrcp.f32 %v483_v0  ;;  %v675_v7 = vadd.f32 1.0, %v1157_v2  ;;  %v1415_v51 = vadd.f32 %v416_v4, %v1342_v18 }
  0xf7   : > { %v418_v8 = vpop.f32.mrb[9].mxu1  ;;  %v380_v9 = vpop.f32.mrb[10].mxu0  ;;  %1180 = vrcp.f32 %v491_v3  ;;  %v683_v11 = vadd.f32 1.0, %v1159_v6  ;;  %v1418_v52 = vadd.f32 %v378_v5, %v1344_v19  ;;  %v982_v5 = vmul.f32 -1.442695, %v1406_v37 }
  0xf8   : > { %v1161_v10 = vpop.eup %1160  ;;  %v420_v12 = vpop.f32.mrb[10].mxu1  ;;  %1182 = vrcp.f32 %v675_v7  ;;  %v1425_v59 = vadd.f32 %v418_v8, %v1344_v19  ;;  %v1428_v60 = vadd.f32 %v380_v9, %v1342_v18  ;;  %v943_v7 = vmul.f32 -1.442695, %v1410_v43 }
  0xf9   : > { %v382_v13 = vpop.f32.mrb[11].mxu0  ;;  %v1163_v14 = vpop.eup %1162  ;;  %v484_v15 = vadd.f32 1.0, %v1161_v10  ;;  %1184 = vrcp.f32 %v683_v11  ;;  %v1435_v1 = vadd.f32 %v420_v12, %v1342_v18  ;;  %v951_v8 = vmul.f32 -1.442695, %v1415_v51 }
  0xfa   : > { %v422_v17 = vpop.f32.mrb[11].mxu1  ;;  %v1165_v20 = vpop.eup %1164  ;;  %v492_v22 = vadd.f32 1.0, %v1163_v14  ;;  %v1438_v2 = vadd.f32 %v382_v13, %v1344_v19  ;;  %v975_v10 = vmul.f32 -1.442695, %v1418_v52  ;;  %v983_v11 = vmul.f32 -1.442695, %v1425_v59 }
  0xfb   : > { %v1167_v26 = vpop.eup %1166  ;;  %1186 = vrcp.f32 %v484_v15  ;;  %v676_v27 = vadd.f32 1.0, %v1165_v20  ;;  %v944_v12 = vmul.f32 -1.442695, %v1428_v60  ;;  %v952_v14 = vmul.f32 -1.442695, %v1435_v1 }
  0xfc   : > { %v1169_v28 = vpop.eup %1168  ;;  %1188 = vrcp.f32 %v492_v22  ;;  %v684_v31 = vadd.f32 1.0, %v1167_v26  ;;  %v386_v38 = vpop.f32.mrb[12].mxu0  ;;  %v976_v15 = vmul.f32 -1.442695, %v1438_v2  ;;  %v1451_v20 = vadd.f32 %v422_v17, %v1344_v19 }
  0xfd   : > { %v1171_v32 = vpop.eup %1170  ;;  %1190 = vrcp.f32 %v676_v27  ;;  %v485_v33 = vadd.f32 1.0, %v1169_v28  ;;  %v426_v44 = vpop.f32.mrb[12].mxu1  ;;  %v1456_v28 = vadd.f32 %v386_v38, %v1342_v18 }
  0xfe   : > { %v1173_v39 = vpop.eup %1172  ;;  %1192 = vrcp.f32 %v684_v31  ;;  %v493_v41 = vadd.f32 1.0, %v1171_v32  ;;  %v1412_v46 = vpop.f32.mrb[13].mxu0 }
  0xff   : > { %v1175_v47 = vpop.eup %1174  ;;  %1194 = vrcp.f32 %v485_v33  ;;  %v677_v50 = vadd.f32 1.0, %v1173_v39  ;;  %v1420_v55 = vpop.f32.mrb[13].mxu1 }
 0x100   : > { %v1422_v56 = vpop.f32.mrb[14].mxu0  ;;  %v1177_v57 = vpop.eup %1176  ;;  %1196 = vrcp.f32 %v493_v41  ;;  %v685_v58 = vadd.f32 1.0, %v1175_v47  ;;  %v945_v47 = vmul.f32 -1.442695, %v1456_v28 }
 0x101   : > { %v1430_v61 = vpop.f32.mrb[14].mxu1  ;;  %v1432_v62 = vpop.f32.mrb[15].mxu0  ;;  %1198 = vrcp.f32 %v677_v50  ;;  %v486_v0 = vadd.f32 1.0, %v1177_v57 }
 0x102   : > { %v1179_v63 = vpop.eup %1178  ;;  %v1440_v3 = vpop.f32.mrb[15].mxu1  ;;  %1200 = vrcp.f32 %v685_v58 }
 0x103   : > { %v1181_v4 = vpop.eup %1180  ;;  %1202 = vrcp.f32 %v486_v0  ;;  %v531_v26 = vmul.f32 %v1179_v63, %v1347_v21  ;;  %v1467_v21 = vadd.f32 %v426_v44, %v1342_v18 }
 0x104   : > { %v1183_v6 = vpop.eup %1182  ;;  %1204 = vpow2.f32 %v950_v34  ;;  %v539_v32 = vmul.f32 %v1181_v4, %v1350_v24 }
 0x105   : > { %v1185_v9 = vpop.eup %1184  ;;  %1206 = vpow2.f32 %v974_v42  ;;  %v723_v33 = vmul.f32 %v1183_v6, %v1353_v25 }
 0x106   : > { %v1187_v13 = vpop.eup %1186  ;;  %1208 = vpow2.f32 %v982_v5  ;;  %v731_v39 = vmul.f32 %v1185_v9, %v1357_v29 }
 0x107   : > { %v1189_v22 = vpop.eup %1188  ;;  %v532_v27 = vmul.f32 %v1187_v13, %v1360_v30  ;;  %1210 = vpow2.f32 %v943_v7 }
 0x108   : > { %v1191_v31 = vpop.eup %1190  ;;  %v540_v17 = vmul.f32 %v1189_v22, %v1365_v35  ;;  %1212 = vpow2.f32 %v951_v8 }
 0x109   : > { %v1193_v30 = vpop.eup %1192  ;;  %v1040_v34 = vpack.c.bf16 %v532_v27, %v531_v26  ;;  %v724_v38 = vmul.f32 %v1191_v31, %v1368_v36  ;;  %1214 = vpow2.f32 %v975_v10  ;;  %v984_v36 = vmul.f32 -1.442695, %v1451_v20 }
 0x10a   : > { %v1195_v24 = vpop.eup %1194  ;;  %v1060_v41 = vpack.c.bf16 %v540_v17, %v539_v32  ;;  %v732_v35 = vmul.f32 %v1193_v30, %v1373_v40  ;;  %1216 = vpow2.f32 %v983_v11  ;;  %v953_v40 = vmul.f32 -1.442695, %v1467_v21 }
 0x10b   : > { %v1479_v25 = vpop.eup %1196  ;;  %1041 = vst [vmem:[%s1463_s28] sm:$0xff] %v1040_v34   ;;  %v1080_v42 = vpack.c.bf16 %v724_v38, %v723_v33  ;;  %1218 = vpow2.f32 %v944_v12  ;;  %v533_v63 = vmul.f32 %v1195_v24, %v1379_v45  ;;  %v1497_v31 = vadd.f32 %v1412_v46, %v1344_v19 }
 0x10c   : > { %v1483_v44 = vpop.eup %1198  ;;  %1120 = vst [vmem:[%s1463_s28 + $0x20] sm:$0xff] %v1060_v41   ;;  %v1100_v29 = vpack.c.bf16 %v732_v35, %v731_v39  ;;  %1220 = vpow2.f32 %v952_v14  ;;  %v1501_v30 = vadd.f32 %v1420_v55, %v1344_v19  ;;  %v1505_v38 = vadd.f32 %v1422_v56, %v1342_v18 }
 0x10d   : > { %v1487_v50 = vpop.eup %1200  ;;  %1081 = vst [vmem:[%s1476_s5] sm:$0xff] %v1080_v42   ;;  %1222 = vpow2.f32 %v976_v15  ;;  %v1509_v46 = vadd.f32 %v1430_v61, %v1342_v18  ;;  %v1513_v41 = vadd.f32 %v1432_v62, %v1344_v19  ;;  %v977_v35 = vmul.f32 -1.442695, %v1497_v31 }
 0x10e   : > { %v1203_v57 = vpop.eup %1202  ;;  %1127 = vst [vmem:[%s1476_s5 + $0x20] sm:$0xff] %v1100_v29   ;;  %1224 = vpow2.f32 %v984_v36  ;;  %v985_v56 = vmul.f32 -1.442695, %v1501_v30  ;;  %v1519_v36 = vadd.f32 %v1440_v3, %v1344_v19  ;;  %v541_v18 = vmul.f32 %v1479_v25, %v1382_v48 }
 0x10f   : > { %v1205_v58 = vpop.eup %1204  ;;  %v534_v0 = vmul.f32 %v1203_v57, %v1392_v54  ;;  %1226 = vpow2.f32 %v945_v47  ;;  %v946_v62 = vmul.f32 -1.442695, %v1505_v38  ;;  %v978_v19 = vmul.f32 -1.442695, %v1513_v41 }
 0x110   : > { %v1207_v4 = vpop.eup %1206  ;;  %v494_v5 = vadd.f32 1.0, %v1205_v58  ;;  %1228 = vpow2.f32 %v953_v40  ;;  %v725_v40 = vmul.f32 %v1483_v44, %v1385_v49  ;;  %v954_v58 = vmul.f32 -1.442695, %v1509_v46 }
 0x111   : > { %v1209_v6 = vpop.eup %1208  ;;  %v1045_v7 = vpack.c.bf16 %v534_v0, %v533_v63  ;;  %v678_v8 = vadd.f32 1.0, %v1207_v4  ;;  %v733_v48 = vmul.f32 %v1487_v50, %v1389_v53  ;;  %v986_v49 = vmul.f32 -1.442695, %v1519_v36 }
 0x112   : > { %v1211_v9 = vpop.eup %1210  ;;  %1230 = vrcp.f32 %v494_v5  ;;  %v686_v10 = vadd.f32 1.0, %v1209_v6 }
 0x113   : > { %v1213_v11 = vpop.eup %1212  ;;  %1117 = vst [vmem:[%s1463_s28 + $0x8] sm:$0xff] %v1045_v7   ;;  %1232 = vrcp.f32 %v678_v8  ;;  %v487_v12 = vadd.f32 1.0, %v1211_v9 }
 0x114   : > { %v1215_v13 = vpop.eup %1214  ;;  %1234 = vrcp.f32 %v686_v10  ;;  %v495_v45 = vadd.f32 1.0, %v1213_v11 }
 0x115   : > { %v1217_v14 = vpop.eup %1216  ;;  %1236 = vrcp.f32 %v487_v12  ;;  %v679_v54 = vadd.f32 1.0, %v1215_v13 }
 0x116   : > { %v1219_v15 = vpop.eup %1218  ;;  %1238 = vrcp.f32 %v495_v45  ;;  %v687_v22 = vadd.f32 1.0, %v1217_v14 }
 0x117   : > { %v1221_v26 = vpop.eup %1220  ;;  %1240 = vrcp.f32 %v679_v54  ;;  %v488_v27 = vadd.f32 1.0, %v1219_v15 }
 0x118   : > { %v1223_v32 = vpop.eup %1222  ;;  %1242 = vrcp.f32 %v687_v22  ;;  %v496_v17 = vadd.f32 1.0, %v1221_v26 }
 0x119   : > { %v1225_v33 = vpop.eup %1224  ;;  %1244 = vrcp.f32 %v488_v27  ;;  %v680_v34 = vadd.f32 1.0, %v1223_v32 }
 0x11a   : > { %v1227_v24 = vpop.eup %1226  ;;  %1246 = vrcp.f32 %v496_v17  ;;  %v688_v39 = vadd.f32 1.0, %v1225_v33 }
 0x11b   : > { %v1229_v55 = vpop.eup %1228  ;;  %1248 = vrcp.f32 %v680_v34  ;;  %v489_v13 = vadd.f32 1.0, %v1227_v24 }
 0x11c   : > { %v1231_v42 = vpop.eup %1230  ;;  %1250 = vrcp.f32 %v688_v39  ;;  %v497_v14 = vadd.f32 1.0, %v1229_v55 }
 0x11d   : > { %v1233_v29 = vpop.eup %1232  ;;  %v542_v61 = vmul.f32 %v1231_v42, %v1399_v16  ;;  %1252 = vpow2.f32 %v977_v35 }
 0x11e   : > { %v1235_v47 = vpop.eup %1234  ;;  %v726_v57 = vmul.f32 %v1233_v29, %v1402_v23  ;;  %1254 = vpow2.f32 %v985_v56 }
 0x11f   : > { %v1237_v3 = vpop.eup %1236  ;;  %v1065_v16 = vpack.c.bf16 %v542_v61, %v541_v18  ;;  %v734_v25 = vmul.f32 %v1235_v47, %v1406_v37  ;;  %1256 = vpow2.f32 %v946_v62 }
 0x120   : > { %v1239_v63 = vpop.eup %1238  ;;  %v1085_v0 = vpack.c.bf16 %v726_v57, %v725_v40  ;;  %1258 = vpow2.f32 %v954_v58  ;;  %v535_v37 = vmul.f32 %v1237_v3, %v1410_v43 }
 0x121   : > { %v1241_v23 = vpop.eup %1240  ;;  %1121 = vst [vmem:[%s1463_s28 + $0x28] sm:$0xff] %v1065_v16   ;;  %v1105_v44 = vpack.c.bf16 %v734_v25, %v733_v48  ;;  %1260 = vpow2.f32 %v978_v19  ;;  %v543_v7 = vmul.f32 %v1239_v63, %v1415_v51 }
 0x122   : > { %v1243_v4 = vpop.eup %1242  ;;  %1124 = vst [vmem:[%s1476_s5 + $0x8] sm:$0xff] %v1085_v0   ;;  %1262 = vpow2.f32 %v986_v49  ;;  %v727_v10 = vmul.f32 %v1241_v23, %v1418_v52 }
 0x123   : > { %v1245_v5 = vpop.eup %1244  ;;  %1128 = vst [vmem:[%s1476_s5 + $0x28] sm:$0xff] %v1105_v44   ;;  %v735_v43 = vmul.f32 %v1243_v4, %v1425_v59  ;;  %1264 = vrcp.f32 %v489_v13 }
 0x124   : > { %v1247_v53 = vpop.eup %1246  ;;  %v536_v50 = vmul.f32 %v1245_v5, %v1428_v60  ;;  %1266 = vrcp.f32 %v497_v14 }
 0x125   : > { %v1249_v6 = vpop.eup %1248  ;;  %v544_v8 = vmul.f32 %v1247_v53, %v1435_v1 }
 0x126   : > { %v1251_v9 = vpop.eup %1250  ;;  %v1050_v11 = vpack.c.bf16 %v536_v50, %v535_v37  ;;  %v728_v12 = vmul.f32 %v1249_v6, %v1438_v2 }
 0x127   : > { %v1070_v45 = vpack.c.bf16 %v544_v8, %v543_v7  ;;  %v736_v60 = vmul.f32 %v1251_v9, %v1451_v20  ;;  %v1253_v51 = vpop.eup %1252 }
 0x128   : > { %1118 = vst [vmem:[%s1463_s28 + $0x10] sm:$0xff] %v1050_v11   ;;  %v1090_v54 = vpack.c.bf16 %v728_v12, %v727_v10  ;;  %v1255_v15 = vpop.eup %1254  ;;  %v681_v52 = vadd.f32 1.0, %v1253_v51 }
 0x129   : > { %1122 = vst [vmem:[%s1463_s28 + $0x30] sm:$0xff] %v1070_v45   ;;  %v1110_v1 = vpack.c.bf16 %v736_v60, %v735_v43  ;;  %v1257_v22 = vpop.eup %1256  ;;  %v689_v2 = vadd.f32 1.0, %v1255_v15 }
 0x12a   : > { %1125 = vst [vmem:[%s1476_s5 + $0x10] sm:$0xff] %v1090_v54   ;;  %v1259_v26 = vpop.eup %1258  ;;  %1268 = vrcp.f32 %v681_v52  ;;  %v490_v59 = vadd.f32 1.0, %v1257_v22 }
 0x12b   : > { %1129 = vst [vmem:[%s1476_s5 + $0x30] sm:$0xff] %v1110_v1   ;;  %v1261_v27 = vpop.eup %1260  ;;  %1270 = vrcp.f32 %v689_v2  ;;  %v498_v20 = vadd.f32 1.0, %v1259_v26 }
 0x12c   : > { %v1263_v32 = vpop.eup %1262  ;;  %1272 = vrcp.f32 %v490_v59  ;;  %v682_v17 = vadd.f32 1.0, %v1261_v27 }
 0x12d   : > { %1274 = vrcp.f32 %v498_v20  ;;  %v690_v33 = vadd.f32 1.0, %v1263_v32  ;;  %v1265_v34 = vpop.eup %1264 }
 0x12e   : > { %1276 = vrcp.f32 %v682_v17  ;;  %v1267_v24 = vpop.eup %1266  ;;  %v537_v56 = vmul.f32 %v1265_v34, %v1456_v28 }
 0x12f   : > { %1278 = vrcp.f32 %v690_v33  ;;  %v545_v61 = vmul.f32 %v1267_v24, %v1467_v21 }
 0x134   : > { %v1269_v39 = vpop.eup %1268 }
 0x135   : > { %v1271_v55 = vpop.eup %1270  ;;  %v729_v40 = vmul.f32 %v1269_v39, %v1497_v31 }
 0x136   : > { %v1273_v35 = vpop.eup %1272  ;;  %v737_v19 = vmul.f32 %v1271_v55, %v1501_v30 }
 0x137   : > { %v1275_v42 = vpop.eup %1274  ;;  %v538_v29 = vmul.f32 %v1273_v35, %v1505_v38 }
 0x138   : > { %v1277_v18 = vpop.eup %1276  ;;  %v546_v62 = vmul.f32 %v1275_v42, %v1509_v46 }
 0x139   : > { %v1279_v47 = vpop.eup %1278  ;;  %v1055_v57 = vpack.c.bf16 %v538_v29, %v537_v56  ;;  %v730_v58 = vmul.f32 %v1277_v18, %v1513_v41 }
 0x13a   : > { %v1075_v3 = vpack.c.bf16 %v546_v62, %v545_v61  ;;  %v738_v28 = vmul.f32 %v1279_v47, %v1519_v36 }
 0x13b   : > { %1119 = vst [vmem:[%s1463_s28 + $0x18] sm:$0xff] %v1055_v57   ;;  %v1095_v48 = vpack.c.bf16 %v730_v58, %v729_v40 }
 0x13c   : > { %1123 = vst [vmem:[%s1463_s28 + $0x38] sm:$0xff] %v1075_v3   ;;  %v1115_v38 = vpack.c.bf16 %v738_v28, %v737_v19 }
 0x13d   : > { %1126 = vst [vmem:[%s1476_s5 + $0x18] sm:$0xff] %v1095_v48  }
 0x13e   : > { %1130 = vst [vmem:[%s1476_s5 + $0x38] sm:$0xff] %v1115_v38  }
 0x13f PF: > { %s15_s15 = sadd.s32 1, %s1286_s15  }
 0x140   : > { %p12_p4 = scmp.ge.s32.totalorder %s15_s15, 6  }
 0x142   :  { %14 = sbr.rel (!%p12_p4) target bundleno = 1 (0x1), region = 74 }

// kernel: c3_forward.5
= control target key start
LH: loop header
LB: loop body
LE: loop exit
PB: predicated region body
PF: predicated region fallthrough
CT: control target
= control target key end

     0   :  { %s1156_s15 = smov 0   ;;  %s1368_s0 = inlined_call_operand.vmem [shape: bf16[512,128], index: 0, kind: input, shape index: {}]   ;;  %s1369_s1 = inlined_call_operand.vmem [shape: bf16[512,128], index: 1, kind: input, shape index: {}]   ;;  %s1370_s2 = inlined_call_operand.vmem [shape: bf16[256,8], index: 2, kind: input, shape index: {}]   ;;  %s1371_s3 = inlined_call_operand.vmem [shape: f32[1,8], index: 3, kind: input, shape index: {}]   ;;  %s1372_s4 = inlined_call_operand.vmem [shape: bf16[512,8], index: 4, kind: output, shape index: {}]  }
   0x1 LB: > { %s845_s16 = sadd.s32 4294967295, %s1129_s15   ;;  %p849_p0 = scmp.ge.s32.totalorder %s1129_s15, 1  ;;  %s1129_s15 = sphi %s1156_s15, %s14_s15  }
   0x2   : > { %p174_p1 = scmp.lt.s32.totalorder %s1129_s15, 5 }
   0x4   : > { %p175_p2 = pnand %p849_p0, %p174_p1 }
   0x5   : > { %v1027_v0 = vld [vmem:[%s1370_s2 + $0x40] sm:$0xff] (!%p175_p2)   ;;  %s850_s19 = sshll.u32 (!%p175_p2), %s845_s16, 4  ;;  %v1029_v2 = vld [vmem:[%s1370_s2 + $0x48] sm:$0xff] (!%p175_p2)   ;;  %v1031_v4 = vld [vmem:[%s1370_s2 + $0x50] sm:$0xff] (!%p175_p2)   ;;  %vm760_vm0 = vcmask (!%p175_p2), 60416  }
   0x6   : > { %178 = sbr.rel (%p175_p2) target bundleno = 315 (0x13b), region = 36  ;;  %v1028_v1 = vld [vmem:[%s1370_s2] sm:$0xff] (!%p175_p2)   ;;  %939 = vmatprep.subr.bf16.mxu0 (!%p175_p2), %v1027_v0  ;;  %1003 = vmatprep.subr.bf16.mxu1 (!%p175_p2), %v1027_v0  ;;  %p206_p3 = scmp.lt.s32.totalorder (!%p175_p2), %s850_s19, 63  ;;  %v1030_v3 = vld [vmem:[%s1370_s2 + $0x8] sm:$0xff] (!%p175_p2)   ;;  %v1032_v5 = vld [vmem:[%s1370_s2 + $0x10] sm:$0xff] (!%p175_p2)  }
   0x7   : > { %940 = vmatpush3.bf16.msra.mxu0 (!%p175_p2), %v1028_v1  ;;  %1011 = vmatpush3.bf16.msra.mxu1 (!%p175_p2), %v1028_v1  ;;  %v1033_v6 = vld [vmem:[%s1370_s2 + $0x58] sm:$0xff] (!%p175_p2)   ;;  %v1035_v8 = vld [vmem:[%s1370_s2 + $0x60] sm:$0xff] (!%p175_p2)   ;;  %v1037_v10 = vld [vmem:[%s1370_s2 + $0x68] sm:$0xff] (!%p175_p2)  }
   0x8   : > { %941 = vmatprep.subr.bf16.mxu0 (!%p175_p2), %v1029_v2  ;;  %1004 = vmatprep.subr.bf16.mxu1 (!%p175_p2), %v1029_v2  ;;  %v1034_v7 = vld [vmem:[%s1370_s2 + $0x18] sm:$0xff] (!%p175_p2)   ;;  %v1036_v9 = vld [vmem:[%s1370_s2 + $0x20] sm:$0xff] (!%p175_p2)   ;;  %v1038_v13 = vld [vmem:[%s1370_s2 + $0x28] sm:$0xff] (!%p175_p2)  }
   0x9   : > { %v1039_v14 = vld [vmem:[%s1370_s2 + $0x70] sm:$0xff] (!%p175_p2)   ;;  %v1041_v16 = vld [vmem:[%s1370_s2 + $0x78] sm:$0xff] (!%p175_p2)   ;;  %v1245_v34 = vld [vmem:[%s1371_s3] ss:$0 sm:$0xff] (!%p175_p2) }
   0xa   : > { %v1040_v15 = vld [vmem:[%s1370_s2 + $0x30] sm:$0xff] (!%p175_p2)   ;;  %v1042_v17 = vld [vmem:[%s1370_s2 + $0x38] sm:$0xff] (!%p175_p2)  }
   0xb   : > { %942 = vmatpush3.bf16.msra.mxu0 (!%p175_p2), %v1030_v3  ;;  %1012 = vmatpush3.bf16.msra.mxu1 (!%p175_p2), %v1030_v3 }
   0xc   : > { %943 = vmatprep.subr.bf16.mxu0 (!%p175_p2), %v1031_v4  ;;  %1005 = vmatprep.subr.bf16.mxu1 (!%p175_p2), %v1031_v4 }
   0xd   : > { %s1374_s19 = smov (!%p206_p3, %s850_s19), 63 }
   0xe   : > { %s1185_s6 = sshll.u32 %s1374_s19, 2 }
   0xf   : > { %944 = vmatpush3.bf16.msra.mxu0 %v1032_v5  ;;  %1013 = vmatpush3.bf16.msra.mxu1 %v1032_v5  ;;  %s1197_s13 = scalar_lea.vmem %s1369_s1, %s1185_s6  ;;  %s1211_s21 = scalar_lea.vmem %s1368_s0, %s1185_s6 }
  0x10   : > { %945 = vmatprep.subr.bf16.mxu0 %v1033_v6  ;;  %1006 = vmatprep.subr.bf16.mxu1 %v1033_v6  ;;  %v1043_v11 = vld [vmem:[%s1197_s13] sm:$0xff]   ;;  %v1047_v20 = vld [vmem:[%s1197_s13 + $0x8] sm:$0xff]   ;;  %v1051_v24 = vld [vmem:[%s1197_s13 + $0x10] sm:$0xff]   ;;  %s1314_s11 = scalar_lea.vmem %s1372_s4, %s1185_s6 }
  0x11   : > { %v1044_v12 = vld [vmem:[%s1197_s13 + $0x20] sm:$0xff]   ;;  %519 = vmatprep.mubr.bf16.mxu0 %v1043_v11  ;;  %v1048_v21 = vld [vmem:[%s1197_s13 + $0x28] sm:$0xff]   ;;  %v1052_v25 = vld [vmem:[%s1197_s13 + $0x30] sm:$0xff]  }
  0x12   : > { %551 = vmatprep.mubr.bf16.mxu1 %v1044_v12  ;;  %v1045_v18 = vld [vmem:[%s1211_s21] sm:$0xff]   ;;  %v1049_v22 = vld [vmem:[%s1211_s21 + $0x8] sm:$0xff]   ;;  %v1053_v26 = vld [vmem:[%s1211_s21 + $0x10] sm:$0xff]  }
  0x13   : > { %946 = vmatpush3.bf16.msra.mxu0 %v1034_v7  ;;  %1014 = vmatpush3.bf16.msra.mxu1 %v1034_v7  ;;  %v1046_v19 = vld [vmem:[%s1211_s21 + $0x20] sm:$0xff]   ;;  %v1050_v23 = vld [vmem:[%s1211_s21 + $0x28] sm:$0xff]   ;;  %v1054_v27 = vld [vmem:[%s1211_s21 + $0x30] sm:$0xff]  }
  0x14   : > { %947 = vmatprep.subr.bf16.mxu0 %v1035_v8  ;;  %1007 = vmatprep.subr.bf16.mxu1 %v1035_v8  ;;  %v1055_v28 = vld [vmem:[%s1197_s13 + $0x18] sm:$0xff]  }
  0x15   : > { %v1056_v29 = vld [vmem:[%s1197_s13 + $0x38] sm:$0xff]  }
  0x16   : > { %v1057_v30 = vld [vmem:[%s1211_s21 + $0x18] sm:$0xff]  }
  0x17   : > { %948 = vmatpush3.bf16.msra.mxu0 %v1036_v9  ;;  %1015 = vmatpush3.bf16.msra.mxu1 %v1036_v9  ;;  %v1058_v31 = vld [vmem:[%s1211_s21 + $0x38] sm:$0xff]  }
  0x18   : > { %949 = vmatprep.subr.bf16.mxu0 %v1037_v10  ;;  %1008 = vmatprep.subr.bf16.mxu1 %v1037_v10 }
  0x1b   : > { %950 = vmatpush3.bf16.msra.mxu0 %v1038_v13  ;;  %1016 = vmatpush3.bf16.msra.mxu1 %v1038_v13 }
  0x1c   : > { %951 = vmatprep.subr.bf16.mxu0 %v1039_v14  ;;  %1009 = vmatprep.subr.bf16.mxu1 %v1039_v14 }
  0x1f   : > { %952 = vmatpush3.bf16.msra.mxu0 %v1040_v15  ;;  %1017 = vmatpush3.bf16.msra.mxu1 %v1040_v15 }
  0x20   : > { %953 = vmatprep.subr.bf16.mxu0 %v1041_v16  ;;  %1010 = vmatprep.subr.bf16.mxu1 %v1041_v16 }
  0x23   : > { %954 = vmatpush3.bf16.msra.mxu0 %v1042_v17  ;;  %1018 = vmatpush3.bf16.msra.mxu1 %v1042_v17 }
  0x26   : > { %520 = vmatmul.mubr.bf16.vlgmr.msra.gmra.mrb[0].mxu0 %v1045_v18  ;;  %552 = vmatmul.mubr.bf16.vlgmr.msra.gmra.mrb[0].mxu1 %v1046_v19 }
  0x27   : > { %527 = vmatprep.mubr.bf16.mxu0 %v1047_v20  ;;  %559 = vmatprep.mubr.bf16.mxu1 %v1048_v21 }
  0x2e   : > { %528 = vmatmul.mubr.bf16.gmra.mrb[4].mxu0 %v1049_v22  ;;  %560 = vmatmul.mubr.bf16.gmra.mrb[4].mxu1 %v1050_v23 }
  0x2f   : > { %535 = vmatprep.mubr.bf16.mxu0 %v1051_v24  ;;  %567 = vmatprep.mubr.bf16.mxu1 %v1052_v25 }
  0x36   : > { %536 = vmatmul.mubr.bf16.gmra.mrb[8].mxu0 %v1053_v26  ;;  %568 = vmatmul.mubr.bf16.gmra.mrb[8].mxu1 %v1054_v27 }
  0x37   : > { %543 = vmatprep.mubr.bf16.mxu0 %v1055_v28  ;;  %575 = vmatprep.mubr.bf16.mxu1 %v1056_v29 }
  0x3e   : > { %544 = vmatmul.mubr.bf16.gmra.mrb[12].mxu0 %v1057_v30  ;;  %576 = vmatmul.mubr.bf16.gmra.mrb[12].mxu1 %v1058_v31 }
  0xf9   : > { %v955_v32 = vpop.f32.mrb[0].mxu0  ;;  %v979_v33 = vpop.f32.mrb[0].mxu1 }
  0xfa   : > { %v956_v35 = vpop.f32.mrb[1].mxu0  ;;  %v980_v36 = vpop.f32.mrb[1].mxu1 }
  0xfb   : > { %v957_v37 = vadd.f32 %v956_v35, %v955_v32  ;;  %v981_v38 = vadd.f32 %v980_v36, %v979_v33  ;;  %v958_v39 = vpop.f32.mrb[2].mxu0  ;;  %v982_v40 = vpop.f32.mrb[2].mxu1 }
  0xfc   : > { %v959_v41 = vpop.f32.mrb[3].mxu0  ;;  %v983_v42 = vpop.f32.mrb[3].mxu1 }
  0xfd   : > { %v1248_v43 = vadd.f32 %v957_v37, %v1245_v34  ;;  %v1251_v44 = vadd.f32 %v981_v38, %v1245_v34  ;;  %v960_v45 = vadd.f32 %v959_v41, %v958_v39  ;;  %v984_v46 = vadd.f32 %v983_v42, %v982_v40 }
  0xff   : > { %v889_v47 = vmul.f32 -1.442695, %v1248_v43  ;;  %v897_v48 = vmul.f32 -1.442695, %v1251_v44  ;;  %v1256_v49 = vadd.f32 %v960_v45, %v1245_v34  ;;  %v1259_v50 = vadd.f32 %v984_v46, %v1245_v34 }
 0x101   : > { %1059 = vpow2.f32 %v889_v47  ;;  %v890_v51 = vmul.f32 -1.442695, %v1256_v49  ;;  %v898_v52 = vmul.f32 -1.442695, %v1259_v50  ;;  %v961_v53 = vpop.f32.mrb[4].mxu0  ;;  %v985_v54 = vpop.f32.mrb[4].mxu1 }
 0x102   : > { %1061 = vpow2.f32 %v897_v48  ;;  %v962_v55 = vpop.f32.mrb[5].mxu0  ;;  %v986_v56 = vpop.f32.mrb[5].mxu1 }
 0x103   : > { %1063 = vpow2.f32 %v890_v51  ;;  %v963_v57 = vadd.f32 %v962_v55, %v961_v53  ;;  %v987_v58 = vadd.f32 %v986_v56, %v985_v54  ;;  %v964_v59 = vpop.f32.mrb[6].mxu0  ;;  %v988_v60 = vpop.f32.mrb[6].mxu1 }
 0x104   : > { %1065 = vpow2.f32 %v898_v52  ;;  %v965_v61 = vpop.f32.mrb[7].mxu0  ;;  %v989_v62 = vpop.f32.mrb[7].mxu1 }
 0x105   : > { %v1264_v63 = vadd.f32 %v963_v57, %v1245_v34  ;;  %v1267_v0 = vadd.f32 %v987_v58, %v1245_v34  ;;  %v966_v1 = vadd.f32 %v965_v61, %v964_v59  ;;  %v990_v2 = vadd.f32 %v989_v62, %v988_v60 }
 0x107   : > { %v891_v3 = vmul.f32 -1.442695, %v1264_v63  ;;  %v899_v4 = vmul.f32 -1.442695, %v1267_v0  ;;  %v1272_v5 = vadd.f32 %v966_v1, %v1245_v34  ;;  %v1275_v6 = vadd.f32 %v990_v2, %v1245_v34 }
 0x109   : > { %1067 = vpow2.f32 %v891_v3  ;;  %v892_v7 = vmul.f32 -1.442695, %v1272_v5  ;;  %v900_v8 = vmul.f32 -1.442695, %v1275_v6  ;;  %v967_v9 = vpop.f32.mrb[8].mxu0  ;;  %v991_v10 = vpop.f32.mrb[8].mxu1 }
 0x10a   : > { %1069 = vpow2.f32 %v899_v4  ;;  %v968_v11 = vpop.f32.mrb[9].mxu0  ;;  %v992_v12 = vpop.f32.mrb[9].mxu1 }
 0x10b   : > { %v1060_v13 = vpop.eup %1059  ;;  %1071 = vpow2.f32 %v892_v7  ;;  %v969_v14 = vadd.f32 %v968_v11, %v967_v9  ;;  %v993_v15 = vadd.f32 %v992_v12, %v991_v10  ;;  %v970_v16 = vpop.f32.mrb[10].mxu0 }
 0x10c   : > { %v994_v17 = vpop.f32.mrb[10].mxu1  ;;  %v1062_v18 = vpop.eup %1061  ;;  %v632_v19 = vadd.f32 1.0, %v1060_v13  ;;  %1073 = vpow2.f32 %v900_v8 }
 0x10d   : > { %v971_v20 = vpop.f32.mrb[11].mxu0  ;;  %v995_v21 = vpop.f32.mrb[11].mxu1  ;;  %v640_v23 = vadd.f32 1.0, %v1062_v18  ;;  %v1280_v24 = vadd.f32 %v969_v14, %v1245_v34  ;;  %v1283_v25 = vadd.f32 %v993_v15, %v1245_v34 }
 0x10e   : > { %v1064_v22 = vpop.eup %1063  ;;  %v972_v26 = vadd.f32 %v971_v20, %v970_v16  ;;  %1075 = vrcp.f32 %v632_v19  ;;  %v996_v29 = vadd.f32 %v995_v21, %v994_v17 }
 0x10f   : > { %v1066_v27 = vpop.eup %1065  ;;  %v633_v28 = vadd.f32 1.0, %v1064_v22  ;;  %1077 = vrcp.f32 %v640_v23  ;;  %v893_v31 = vmul.f32 -1.442695, %v1280_v24  ;;  %v901_v32 = vmul.f32 -1.442695, %v1283_v25 }
 0x110   : > { %v641_v30 = vadd.f32 1.0, %v1066_v27  ;;  %v1288_v33 = vadd.f32 %v972_v26, %v1245_v34  ;;  %v1291_v35 = vadd.f32 %v996_v29, %v1245_v34 }
 0x111   : > { %1079 = vrcp.f32 %v633_v28  ;;  %v973_v36 = vpop.f32.mrb[12].mxu0  ;;  %v997_v37 = vpop.f32.mrb[12].mxu1 }
 0x112   : > { %1081 = vrcp.f32 %v641_v30  ;;  %v894_v38 = vmul.f32 -1.442695, %v1288_v33  ;;  %v902_v39 = vmul.f32 -1.442695, %v1291_v35  ;;  %v974_v40 = vpop.f32.mrb[13].mxu0  ;;  %v998_v41 = vpop.f32.mrb[13].mxu1 }
 0x113   : > { %1083 = vpow2.f32 %v893_v31  ;;  %v1068_v42 = vpop.eup %1067  ;;  %v975_v45 = vadd.f32 %v974_v40, %v973_v36  ;;  %v999_v46 = vadd.f32 %v998_v41, %v997_v37  ;;  %v976_v47 = vpop.f32.mrb[14].mxu0 }
 0x114   : > { %1085 = vpow2.f32 %v901_v32  ;;  %v1000_v48 = vpop.f32.mrb[14].mxu1  ;;  %v1070_v51 = vpop.eup %1069  ;;  %v634_v52 = vadd.f32 1.0, %v1068_v42 }
 0x115   : > { %1087 = vpow2.f32 %v894_v38  ;;  %v977_v53 = vpop.f32.mrb[15].mxu0  ;;  %v1001_v54 = vpop.f32.mrb[15].mxu1  ;;  %v642_v56 = vadd.f32 1.0, %v1070_v51  ;;  %v1296_v57 = vadd.f32 %v975_v45, %v1245_v34  ;;  %v1299_v58 = vadd.f32 %v999_v46, %v1245_v34 }
 0x116   : > { %v1072_v55 = vpop.eup %1071  ;;  %1089 = vpow2.f32 %v902_v39  ;;  %v978_v61 = vadd.f32 %v977_v53, %v976_v47  ;;  %v1002_v62 = vadd.f32 %v1001_v54, %v1000_v48 }
 0x117   : > { %v1074_v59 = vpop.eup %1073  ;;  %1091 = vrcp.f32 %v634_v52  ;;  %v635_v60 = vadd.f32 1.0, %v1072_v55  ;;  %v895_v2 = vmul.f32 -1.442695, %v1296_v57  ;;  %v903_v3 = vmul.f32 -1.442695, %v1299_v58 }
 0x118   : > { %1093 = vrcp.f32 %v642_v56  ;;  %v643_v1 = vadd.f32 1.0, %v1074_v59  ;;  %v1076_v4 = vpop.eup %1075  ;;  %v1304_v7 = vadd.f32 %v978_v61, %v1245_v34  ;;  %v1307_v8 = vadd.f32 %v1002_v62, %v1245_v34 }
 0x119   : > { %1095 = vrcp.f32 %v635_v60  ;;  %v1078_v9 = vpop.eup %1077  ;;  %v680_v10 = vmul.f32 %v1076_v4, %v1248_v43 }
 0x11a   : > { %1097 = vrcp.f32 %v643_v1  ;;  %v688_v12 = vmul.f32 %v1078_v9, %v1251_v44  ;;  %v896_v13 = vmul.f32 -1.442695, %v1304_v7  ;;  %v904_v34 = vmul.f32 -1.442695, %v1307_v8 }
 0x11b   : > { %v1080_v11 = vpop.eup %1079  ;;  %1099 = vpow2.f32 %v895_v2  ;;  %v923_v15 = vpack.c.bf16 %v680_v10, %v680_v10 }
 0x11c   : > { %v1082_v14 = vpop.eup %1081  ;;  %v681_v43 = vmul.f32 %v1080_v11, %v1256_v49  ;;  %1101 = vpow2.f32 %v903_v3  ;;  %v931_v17 = vpack.c.bf16 %v688_v12, %v688_v12 }
 0x11d   : > { %v1084_v16 = vpop.eup %1083  ;;  %v689_v18 = vmul.f32 %v1082_v14, %v1259_v50  ;;  %1103 = vpow2.f32 %v896_v13  ;;  %761 = vst.msk [vmem:[%s1314_s11] sm:$0xf] %vm760_vm0, %v923_v15 }
 0x11e   : > { %v1086_v19 = vpop.eup %1085  ;;  %v924_v44 = vpack.c.bf16 %v681_v43, %v681_v43  ;;  %v636_v20 = vadd.f32 1.0, %v1084_v16  ;;  %1105 = vpow2.f32 %v904_v34  ;;  %769 = vst.msk [vmem:[%s1314_s11 + $0x20] sm:$0xf] %vm760_vm0, %v931_v17 }
 0x11f   : > { %v1088_v21 = vpop.eup %1087  ;;  %v932_v22 = vpack.c.bf16 %v689_v18, %v689_v18  ;;  %v644_v23 = vadd.f32 1.0, %v1086_v19 }
 0x120   : > { %v1090_v49 = vpop.eup %1089  ;;  %762 = vst.msk [vmem:[%s1314_s11 + $0x4] sm:$0xf] %vm760_vm0, %v924_v44  ;;  %1107 = vrcp.f32 %v636_v20  ;;  %v637_v26 = vadd.f32 1.0, %v1088_v21 }
 0x121   : > { %v1092_v27 = vpop.eup %1091  ;;  %770 = vst.msk [vmem:[%s1314_s11 + $0x24] sm:$0xf] %vm760_vm0, %v932_v22  ;;  %1109 = vrcp.f32 %v644_v23  ;;  %v645_v50 = vadd.f32 1.0, %v1090_v49 }
 0x122   : > { %v1094_v28 = vpop.eup %1093  ;;  %v682_v29 = vmul.f32 %v1092_v27, %v1264_v63  ;;  %1111 = vrcp.f32 %v637_v26 }
 0x123   : > { %v1096_v30 = vpop.eup %1095  ;;  %v690_v31 = vmul.f32 %v1094_v28, %v1267_v0  ;;  %1113 = vrcp.f32 %v645_v50 }
 0x124   : > { %v1098_v32 = vpop.eup %1097  ;;  %v925_v36 = vpack.c.bf16 %v682_v29, %v682_v29  ;;  %v683_v37 = vmul.f32 %v1096_v30, %v1272_v5 }
 0x125   : > { %v1100_v38 = vpop.eup %1099  ;;  %v933_v39 = vpack.c.bf16 %v690_v31, %v690_v31  ;;  %v691_v40 = vmul.f32 %v1098_v32, %v1275_v6 }
 0x126   : > { %v1102_v41 = vpop.eup %1101  ;;  %763 = vst.msk [vmem:[%s1314_s11 + $0x8] sm:$0xf] %vm760_vm0, %v925_v36  ;;  %v926_v63 = vpack.c.bf16 %v683_v37, %v683_v37  ;;  %v638_v42 = vadd.f32 1.0, %v1100_v38 }
 0x127   : > { %v1104_v45 = vpop.eup %1103  ;;  %771 = vst.msk [vmem:[%s1314_s11 + $0x28] sm:$0xf] %vm760_vm0, %v933_v39  ;;  %v934_v0 = vpack.c.bf16 %v691_v40, %v691_v40  ;;  %v646_v46 = vadd.f32 1.0, %v1102_v41 }
 0x128   : > { %v1106_v47 = vpop.eup %1105  ;;  %764 = vst.msk [vmem:[%s1314_s11 + $0xc] sm:$0xf] %vm760_vm0, %v926_v63  ;;  %1115 = vrcp.f32 %v638_v42  ;;  %v639_v5 = vadd.f32 1.0, %v1104_v45 }
 0x129   : > { %772 = vst.msk [vmem:[%s1314_s11 + $0x2c] sm:$0xf] %vm760_vm0, %v934_v0  ;;  %1117 = vrcp.f32 %v646_v46  ;;  %v647_v6 = vadd.f32 1.0, %v1106_v47 }
 0x12a   : > { %v1108_v48 = vpop.eup %1107  ;;  %1119 = vrcp.f32 %v639_v5 }
 0x12b   : > { %v1110_v51 = vpop.eup %1109  ;;  %v684_v52 = vmul.f32 %v1108_v48, %v1280_v24  ;;  %1121 = vrcp.f32 %v647_v6 }
 0x12c   : > { %v1112_v53 = vpop.eup %1111  ;;  %v692_v54 = vmul.f32 %v1110_v51, %v1283_v25 }
 0x12d   : > { %v1114_v55 = vpop.eup %1113  ;;  %v927_v56 = vpack.c.bf16 %v684_v52, %v684_v52  ;;  %v685_v59 = vmul.f32 %v1112_v53, %v1288_v33 }
 0x12e   : > { %v935_v60 = vpack.c.bf16 %v692_v54, %v692_v54  ;;  %v693_v61 = vmul.f32 %v1114_v55, %v1291_v35 }
 0x12f   : > { %765 = vst.msk [vmem:[%s1314_s11 + $0x10] sm:$0xf] %vm760_vm0, %v927_v56  ;;  %v928_v62 = vpack.c.bf16 %v685_v59, %v685_v59 }
 0x130   : > { %773 = vst.msk [vmem:[%s1314_s11 + $0x30] sm:$0xf] %vm760_vm0, %v935_v60  ;;  %v936_v1 = vpack.c.bf16 %v693_v61, %v693_v61 }
 0x131   : > { %766 = vst.msk [vmem:[%s1314_s11 + $0x14] sm:$0xf] %vm760_vm0, %v928_v62 }
 0x132   : > { %v1116_v24 = vpop.eup %1115  ;;  %774 = vst.msk [vmem:[%s1314_s11 + $0x34] sm:$0xf] %vm760_vm0, %v936_v1 }
 0x133   : > { %v1118_v25 = vpop.eup %1117  ;;  %v686_v33 = vmul.f32 %v1116_v24, %v1296_v57 }
 0x134   : > { %v1120_v2 = vpop.eup %1119  ;;  %v694_v35 = vmul.f32 %v1118_v25, %v1299_v58 }
 0x135   : > { %v1122_v3 = vpop.eup %1121  ;;  %v929_v4 = vpack.c.bf16 %v686_v33, %v686_v33  ;;  %v687_v9 = vmul.f32 %v1120_v2, %v1304_v7 }
 0x136   : > { %v937_v10 = vpack.c.bf16 %v694_v35, %v694_v35  ;;  %v695_v11 = vmul.f32 %v1122_v3, %v1307_v8 }
 0x137   : > { %767 = vst.msk [vmem:[%s1314_s11 + $0x18] sm:$0xf] %vm760_vm0, %v929_v4  ;;  %v930_v12 = vpack.c.bf16 %v687_v9, %v687_v9 }
 0x138   : > { %775 = vst.msk [vmem:[%s1314_s11 + $0x38] sm:$0xf] %vm760_vm0, %v937_v10  ;;  %v938_v13 = vpack.c.bf16 %v695_v11, %v695_v11 }
 0x139   : > { %768 = vst.msk [vmem:[%s1314_s11 + $0x1c] sm:$0xf] %vm760_vm0, %v930_v12 }
 0x13a   : > { %776 = vst.msk [vmem:[%s1314_s11 + $0x3c] sm:$0xf] %vm760_vm0, %v938_v13 }
 0x13b PF: > { %s14_s15 = sadd.s32 1, %s1129_s15  }
 0x13c   : > { %p11_p4 = scmp.ge.s32.totalorder %s14_s15, 6  }
 0x13e   :  { %13 = sbr.rel (!%p11_p4) target bundleno = 1 (0x1), region = 69 }

// kernel: c3_forward.4
= control target key start
LH: loop header
LB: loop body
LE: loop exit
PB: predicated region body
PF: predicated region fallthrough
CT: control target
= control target key end

     0   :  { %s5827_s18 = smov 0   ;;  %s7465_s0 = inlined_call_operand.vmem [shape: bf16[2,16,16,128], index: 0, kind: input, shape index: {}]   ;;  %s7466_s1 = inlined_call_operand.vmem [shape: bf16[128,128], index: 1, kind: input, shape index: {}]   ;;  %s7467_s2 = inlined_call_operand.vmem [shape: f32[1,128], index: 2, kind: input, shape index: {}]   ;;  %s7468_s3 = inlined_call_operand.vmem [shape: bf16[3,384,128], index: 3, kind: input, shape index: {}]   ;;  %s7469_s4 = inlined_call_operand.vmem [shape: f32[1,128], index: 4, kind: input, shape index: {}]   ;;  %s7470_s5 = inlined_call_operand.vmem [shape: bf16[2,16,16,128], index: 5, kind: output, shape index: {}]  }
   0x1 LB: > { %s4043_s19 = sadd.s32 4294967295, %s5794_s18   ;;  %p4047_p0 = scmp.ge.s32.totalorder %s5794_s18, 1  ;;  %s5794_s18 = sphi %s5827_s18, %s15_s18  }
   0x2   : > { %p187_p1 = scmp.lt.s32.totalorder %s5794_s18, 3 }
   0x4   : > { %p188_p2 = pnand %p4047_p0, %p187_p1 }
   0x5   : > { %v5366_v0 = vld [vmem:[%s7466_s1] sm:$0xff] (!%p188_p2)   ;;  %p215_p3 = scmp.lt.s32.totalorder (!%p188_p2), %s4043_s19, 1  ;;  %v5367_v1 = vld [vmem:[%s7466_s1 + $0x8] sm:$0xff] (!%p188_p2)   ;;  %v5368_v2 = vld [vmem:[%s7466_s1 + $0x10] sm:$0xff] (!%p188_p2)   ;;  %v5796_v24 = vmov (!%p188_p2), 0   ;;  %vm1284_vm0 = vcmask (!%p188_p2), 1043456  }
   0x6   : > { %191 = sbr.rel (%p188_p2) target bundleno = 938 (0x3aa), region = 40  ;;  %5005 = vmatprep.subr.bf16.mxu1 (!%p188_p2), %v5366_v0  ;;  %v5369_v3 = vld [vmem:[%s7466_s1 + $0x18] sm:$0xff] (!%p188_p2)   ;;  %v5370_v5 = vld [vmem:[%s7466_s1 + $0x20] sm:$0xff] (!%p188_p2)   ;;  %v5371_v6 = vld [vmem:[%s7466_s1 + $0x28] sm:$0xff] (!%p188_p2)   ;;  %832 = vst [vmem:[#allocation2 + $0x18] sm:$0xf] (!%p188_p2), %v5796_v24 }
   0x7   : > { %5006 = vmatpush3.bf16.msra.mxu1 (!%p188_p2), %v5366_v0  ;;  %v5372_v7 = vld [vmem:[%s7466_s1 + $0x30] sm:$0xff] (!%p188_p2)   ;;  %v5373_v8 = vld [vmem:[%s7466_s1 + $0x38] sm:$0xff] (!%p188_p2)   ;;  %826 = vst [vmem:[#allocation2] sm:$0xf] (!%p188_p2), %v5796_v24  ;;  %827 = vst [vmem:[#allocation2 + $0x4] sm:$0xf] (!%p188_p2), %v5796_v24 }
   0x8   : > { %5007 = vmatprep.subr.bf16.mxu1 (!%p188_p2), %v5367_v1  ;;  %828 = vst [vmem:[#allocation2 + $0x8] sm:$0x1] (!%p188_p2), %v5796_v24  ;;  %829 = vst [vmem:[#allocation2 + $0xc] sm:$0xf] (!%p188_p2), %v5796_v24  ;;  %v5390_v25 = vld [vmem:[%s7468_s3 + $0x140] sm:$0xff] (!%p188_p2)   ;;  %v5391_v26 = vld [vmem:[%s7468_s3 + $0x148] sm:$0xff] (!%p188_p2)  }
   0x9   : > { %830 = vst [vmem:[#allocation2 + $0x10] sm:$0xf] (!%p188_p2), %v5796_v24  ;;  %831 = vst [vmem:[#allocation2 + $0x14] sm:$0x1] (!%p188_p2), %v5796_v24  ;;  %5053 = vmatprep.subr.bf16.mxu0 (!%p188_p2), %v5390_v25  ;;  %v5392_v27 = vld [vmem:[%s7468_s3 + $0x100] sm:$0xff] (!%p188_p2)   ;;  %v5394_v29 = vld [vmem:[%s7468_s3 + $0x150] sm:$0xff] (!%p188_p2)  }
   0xa   : > { %833 = vst [vmem:[#allocation2 + $0x1c] sm:$0xf] (!%p188_p2), %v5796_v24  ;;  %834 = vst [vmem:[#allocation2 + $0x20] sm:$0x1] (!%p188_p2), %v5796_v24  ;;  %5054 = vmatpush3.bf16.msra.mxu0 (!%p188_p2), %v5390_v25  ;;  %v5393_v28 = vld [vmem:[%s7468_s3 + $0xc0] sm:$0xff] (!%p188_p2)   ;;  %v5395_v30 = vld [vmem:[%s7468_s3 + $0x108] sm:$0xff] (!%p188_p2)  }
   0xb   : > { %5008 = vmatpush3.bf16.msra.mxu1 (!%p188_p2), %v5367_v1  ;;  %835 = vst [vmem:[#allocation2 + $0x24] sm:$0xf] (!%p188_p2), %v5796_v24  ;;  %836 = vst [vmem:[#allocation2 + $0x28] sm:$0xf] (!%p188_p2), %v5796_v24  ;;  %5055 = vmatprep.subr.bf16.mxu0 (!%p188_p2), %v5391_v26  ;;  %v5396_v31 = vld [vmem:[%s7468_s3 + $0xc8] sm:$0xff] (!%p188_p2)   ;;  %v5397_v32 = vld [vmem:[%s7468_s3 + $0x158] sm:$0xff] (!%p188_p2)  }
   0xc   : > { %5009 = vmatprep.subr.bf16.mxu1 (!%p188_p2), %v5368_v2  ;;  %837 = vst [vmem:[#allocation2 + $0x2c] sm:$0x1] (!%p188_p2), %v5796_v24  ;;  %838 = vst [vmem:[#allocation2 + $0x30] sm:$0xf] (!%p188_p2), %v5796_v24  ;;  %v5398_v33 = vld [vmem:[%s7468_s3 + $0x110] sm:$0xff] (!%p188_p2)   ;;  %v5400_v35 = vld [vmem:[%s7468_s3 + $0x160] sm:$0xff] (!%p188_p2)  }
   0xd   : > { %s7486_s19 = smov (!%p215_p3, %s4043_s19), 1  ;;  %839 = vst [vmem:[#allocation2 + $0x34] sm:$0xf] %v5796_v24  ;;  %840 = vst [vmem:[#allocation2 + $0x38] sm:$0x1] %v5796_v24  ;;  %v5399_v34 = vld [vmem:[%s7468_s3 + $0xd0] sm:$0xff]  }
   0xe   : > { %s4412_s26 = sshll.u32 %s7486_s19, 7  ;;  %841 = vst [vmem:[#allocation2 + $0x3c] sm:$0xf] %v5796_v24  ;;  %842 = vst [vmem:[#allocation2 + $0x40] sm:$0xf] %v5796_v24  ;;  %5056 = vmatpush3.bf16.msra.mxu0 %v5391_v26  ;;  %v5401_v36 = vld [vmem:[%s7468_s3 + $0x118] sm:$0xff]  }
   0xf   : > { %s5852_s29 = scalar_lea.vmem %s7465_s0, %s4412_s26  ;;  %5010 = vmatpush3.bf16.msra.mxu1 %v5368_v2  ;;  %843 = vst [vmem:[#allocation2 + $0x44] sm:$0x1] %v5796_v24  ;;  %844 = vst [vmem:[#allocation2 + $0x48] sm:$0xf] %v5796_v24  ;;  %5057 = vmatprep.subr.bf16.mxu0 %v5394_v29  ;;  %v5402_v37 = vld [vmem:[%s7468_s3 + $0xd8] sm:$0xff]   ;;  %v5403_v38 = vld [vmem:[%s7468_s3 + $0x168] sm:$0xff]   ;;  %s7292_s20 = scalar_lea.vmem %s7470_s5, %s4412_s26 }
  0x10   : > { %v226_v4 = vld [vmem:[%s5852_s29] sm:$0xff]   ;;  %5011 = vmatprep.subr.bf16.mxu1 %v5369_v3  ;;  %v228_v9 = vld [vmem:[%s5852_s29 + $0x8] sm:$0xff]   ;;  %v230_v10 = vld [vmem:[%s5852_s29 + $0x10] sm:$0xff]   ;;  %845 = vst [vmem:[#allocation2 + $0x4c] sm:$0xf] %v5796_v24  ;;  %vm1291_vm4 = vcmask 1040384  }
  0x11   : > { %5021 = vmatprep.mubr.bf16.mxu1 %v226_v4  ;;  %v232_v11 = vld [vmem:[%s5852_s29 + $0x18] sm:$0xff]   ;;  %v234_v12 = vld [vmem:[%s5852_s29 + $0x20] sm:$0xff]   ;;  %v236_v13 = vld [vmem:[%s5852_s29 + $0x28] sm:$0xff]   ;;  %846 = vst [vmem:[#allocation2 + $0x50] sm:$0x1] %v5796_v24  ;;  %vm1808_vm8 = vcmask 1046528  }
  0x12   : > { %v238_v14 = vld [vmem:[%s5852_s29 + $0x30] sm:$0xff]   ;;  %v240_v15 = vld [vmem:[%s5852_s29 + $0x38] sm:$0xff]   ;;  %v242_v16 = vld [vmem:[%s5852_s29 + $0x40] sm:$0xff]   ;;  %847 = vst [vmem:[#allocation2 + $0x54] sm:$0xf] %v5796_v24  ;;  %5058 = vmatpush3.bf16.msra.mxu0 %v5394_v29 }
  0x13   : > { %5012 = vmatpush3.bf16.msra.mxu1 %v5369_v3  ;;  %v244_v17 = vld [vmem:[%s5852_s29 + $0x48] sm:$0xff]   ;;  %v246_v18 = vld [vmem:[%s5852_s29 + $0x50] sm:$0xff]   ;;  %v248_v19 = vld [vmem:[%s5852_s29 + $0x58] sm:$0xff]   ;;  %848 = vst [vmem:[#allocation2 + $0x58] sm:$0xf] %v5796_v24  ;;  %5059 = vmatprep.subr.bf16.mxu0 %v5397_v32 }
  0x14   : > { %5013 = vmatprep.subr.bf16.mxu1 %v5370_v5  ;;  %v250_v20 = vld [vmem:[%s5852_s29 + $0x60] sm:$0xff]   ;;  %v252_v21 = vld [vmem:[%s5852_s29 + $0x68] sm:$0xff]   ;;  %v254_v22 = vld [vmem:[%s5852_s29 + $0x70] sm:$0xff]   ;;  %849 = vst [vmem:[#allocation2 + $0x5c] sm:$0x1] %v5796_v24 }
  0x15   : > { %v256_v23 = vld [vmem:[%s5852_s29 + $0x78] sm:$0xff]   ;;  %850 = vst [vmem:[#allocation2 + $0x60] sm:$0xf] %v5796_v24  ;;  %851 = vst [vmem:[#allocation2 + $0x64] sm:$0xf] %v5796_v24  ;;  %v5404_v39 = vld [vmem:[%s7468_s3 + $0x120] sm:$0xff]  }
  0x16   : > { %852 = vst [vmem:[#allocation2 + $0x68] sm:$0x1] %v5796_v24  ;;  %853 = vst [vmem:[#allocation2 + $0x6c] sm:$0xf] %v5796_v24  ;;  %5060 = vmatpush3.bf16.msra.mxu0 %v5397_v32  ;;  %v5405_v40 = vld [vmem:[%s7468_s3 + $0xe0] sm:$0xff]   ;;  %v5406_v41 = vld [vmem:[%s7468_s3 + $0x170] sm:$0xff]  }
  0x17   : > { %5014 = vmatpush3.bf16.msra.mxu1 %v5370_v5  ;;  %854 = vst [vmem:[#allocation2 + $0x70] sm:$0xf] %v5796_v24  ;;  %855 = vst [vmem:[#allocation2 + $0x74] sm:$0x1] %v5796_v24  ;;  %5061 = vmatprep.subr.bf16.mxu0 %v5400_v35  ;;  %v5407_v42 = vld [vmem:[%s7468_s3 + $0x128] sm:$0xff]   ;;  %v5409_v44 = vld [vmem:[%s7468_s3 + $0x178] sm:$0xff]  }
  0x18   : > { %5015 = vmatprep.subr.bf16.mxu1 %v5371_v6  ;;  %856 = vst [vmem:[#allocation2 + $0x78] sm:$0xf] %v5796_v24  ;;  %857 = vst [vmem:[#allocation2 + $0x7c] sm:$0xf] %v5796_v24  ;;  %v5408_v43 = vld [vmem:[%s7468_s3 + $0xe8] sm:$0xff]   ;;  %v5410_v45 = vld [vmem:[%s7468_s3 + $0x130] sm:$0xff]  }
  0x19   : > { %858 = vst [vmem:[#allocation2 + $0x80] sm:$0x1] %v5796_v24  ;;  %859 = vst [vmem:[#allocation2 + $0x84] sm:$0xf] %v5796_v24  ;;  %v5411_v46 = vld [vmem:[%s7468_s3 + $0xf0] sm:$0xff]   ;;  %v5415_v47 = vld [vmem:[%s7468_s3 + $0x138] sm:$0xff]  }
  0x1a   : > { %860 = vst [vmem:[#allocation2 + $0x88] sm:$0xf] %v5796_v24  ;;  %861 = vst [vmem:[#allocation2 + $0x8c] sm:$0x1] %v5796_v24  ;;  %5062 = vmatpush3.bf16.msra.mxu0 %v5400_v35  ;;  %v5419_v48 = vld [vmem:[%s7468_s3 + $0xf8] sm:$0xff]   ;;  %v5414_v49 = vld [vmem:[%s7468_s3 + $0x40] sm:$0xff]  }
  0x1b   : > { %5016 = vmatpush3.bf16.msra.mxu1 %v5371_v6  ;;  %862 = vst [vmem:[#allocation2 + $0x90] sm:$0xf] %v5796_v24  ;;  %863 = vst [vmem:[#allocation2 + $0x94] sm:$0xf] %v5796_v24  ;;  %5063 = vmatprep.subr.bf16.mxu0 %v5403_v38  ;;  %v5963_v50 = vld [vmem:[%s7467_s2] ss:$0 sm:$0xff] }
  0x1c   : > { %5017 = vmatprep.subr.bf16.mxu1 %v5372_v7  ;;  %864 = vst [vmem:[#allocation2 + $0x98] sm:$0x1] %v5796_v24  ;;  %865 = vst [vmem:[#allocation2 + $0x9c] sm:$0xf] %v5796_v24  ;;  %vm1285_vm1 = vsmask.f32 7938 }
  0x1d   : > { %866 = vst [vmem:[#allocation2 + $0xa0] sm:$0xf] %v5796_v24  ;;  %867 = vst [vmem:[#allocation2 + $0xa4] sm:$0x1] %v5796_v24  ;;  %vm960_vm2 = vsmask.f32 256 }
  0x1e   : > { %868 = vst [vmem:[#allocation2 + $0xa8] sm:$0xf] %v5796_v24  ;;  %869 = vst [vmem:[#allocation2 + $0xac] sm:$0xf] %v5796_v24  ;;  %5064 = vmatpush3.bf16.msra.mxu0 %v5403_v38  ;;  %vm961_vm3 = vsmask.f32 4368 }
  0x1f   : > { %5018 = vmatpush3.bf16.msra.mxu1 %v5372_v7  ;;  %870 = vst [vmem:[#allocation2 + $0xb0] sm:$0x1] %v5796_v24  ;;  %871 = vst [vmem:[#allocation2 + $0xb4] sm:$0xf] %v5796_v24  ;;  %5065 = vmatprep.subr.bf16.mxu0 %v5406_v41  ;;  %vm1599_vm9 = vsmask.f32 7424 }
  0x20   : > { %5019 = vmatprep.subr.bf16.mxu1 %v5373_v8  ;;  %872 = vst [vmem:[#allocation2 + $0xb8] sm:$0xf] %v5796_v24  ;;  %873 = vst [vmem:[#allocation2 + $0xbc] sm:$0x1] %v5796_v24 }
  0x21   : > { %874 = vst [vmem:[#allocation2 + $0xc0] sm:$0xf] %v5796_v24  ;;  %875 = vst [vmem:[#allocation2 + $0xc4] sm:$0xf] %v5796_v24 }
  0x22   : > { %876 = vst [vmem:[#allocation2 + $0xc8] sm:$0x1] %v5796_v24  ;;  %877 = vst [vmem:[#allocation2 + $0xcc] sm:$0xf] %v5796_v24  ;;  %5066 = vmatpush3.bf16.msra.mxu0 %v5406_v41 }
  0x23   : > { %5020 = vmatpush3.bf16.msra.mxu1 %v5373_v8  ;;  %878 = vst [vmem:[#allocation2 + $0xd0] sm:$0xf] %v5796_v24  ;;  %879 = vst [vmem:[#allocation2 + $0xd4] sm:$0x1] %v5796_v24  ;;  %5067 = vmatprep.subr.bf16.mxu0 %v5409_v44 }
  0x24   : > { %4597 = vmatprep.subr.bf16.mxu1 %v5392_v27  ;;  %vm6049_vm5 = vmand %vm1284_vm0, %vm1285_vm1 }
  0x25   : > { %vm6055_vm6 = vmor %vm960_vm2, %vm961_vm3 }
  0x26   : > { %5022 = vmatmul.mubr.bf16.vlgmr.msra.gmra.mrb[0].mxu1 %v228_v9  ;;  %5068 = vmatpush3.bf16.msra.mxu0 %v5409_v44  ;;  %vm6062_vm7 = vmand %vm1291_vm4, %vm960_vm2 }
  0x27   : > { %5025 = vmatprep.mubr.bf16.mxu1 %v230_v10  ;;  %4598 = vmatpush3.bf16.msra.mxu1 %v5393_v28 }
  0x28   : > { %4599 = vmatprep.subr.bf16.mxu1 %v5395_v30  ;;  %4733 = vmatprep.subr.bf16.mxu0 %v5414_v49 }
  0x2b   : > { %4600 = vmatpush3.bf16.msra.mxu1 %v5396_v31 }
  0x2c   : > { %4601 = vmatprep.subr.bf16.mxu1 %v5398_v33 }
  0x2e   : > { %5026 = vmatmul.mubr.bf16.gmra.mrb[4].mxu1 %v232_v11 }
  0x2f   : > { %5029 = vmatprep.mubr.bf16.mxu1 %v234_v12  ;;  %4602 = vmatpush3.bf16.msra.mxu1 %v5399_v34 }
  0x30   : > { %4603 = vmatprep.subr.bf16.mxu1 %v5401_v36 }
  0x33   : > { %4604 = vmatpush3.bf16.msra.mxu1 %v5402_v37 }
  0x34   : > { %4605 = vmatprep.subr.bf16.mxu1 %v5404_v39 }
  0x36   : > { %5030 = vmatmul.mubr.bf16.gmra.mrb[8].mxu1 %v236_v13 }
  0x37   : > { %5033 = vmatprep.mubr.bf16.mxu1 %v238_v14  ;;  %4606 = vmatpush3.bf16.msra.mxu1 %v5405_v40 }
  0x38   : > { %4607 = vmatprep.subr.bf16.mxu1 %v5407_v42 }
  0x3b   : > { %4608 = vmatpush3.bf16.msra.mxu1 %v5408_v43 }
  0x3c   : > { %4609 = vmatprep.subr.bf16.mxu1 %v5410_v45 }
  0x3e   : > { %5034 = vmatmul.mubr.bf16.gmra.mrb[12].mxu1 %v240_v15 }
  0x3f   : > { %5037 = vmatprep.mubr.bf16.mxu1 %v242_v16  ;;  %4610 = vmatpush3.bf16.msra.mxu1 %v5411_v46 }
  0x40   : > { %4611 = vmatprep.subr.bf16.mxu1 %v5415_v47 }
  0x43   : > { %4612 = vmatpush3.bf16.msra.mxu1 %v5419_v48 }
  0x46   : > { %5038 = vmatmul.mubr.bf16.gmra.mrb[16].mxu1 %v244_v17 }
  0x47   : > { %5041 = vmatprep.mubr.bf16.mxu1 %v246_v18 }
  0x4e   : > { %5042 = vmatmul.mubr.bf16.gmra.mrb[20].mxu1 %v248_v19 }
  0x4f   : > { %5045 = vmatprep.mubr.bf16.mxu1 %v250_v20 }
  0x56   : > { %5046 = vmatmul.mubr.bf16.gmra.mrb[24].mxu1 %v252_v21 }
  0x57   : > { %5049 = vmatprep.mubr.bf16.mxu1 %v254_v22 }
  0x5e   : > { %5050 = vmatmul.mubr.bf16.gmra.mrb[28].mxu1 %v256_v23 }
  0xf9   : > { %v5023_v51 = vpop.f32.mrb[0].mxu1 }
  0xfa   : > { %v5966_v52 = vadd.f32 %v5023_v51, %v5963_v50  ;;  %v459_v53 = vpop.f32.mrb[1].mxu1 }
  0xfb   : > { %v5969_v54 = vadd.f32 %v5963_v50, %v459_v53  ;;  %v5024_v55 = vpop.f32.mrb[2].mxu1 }
  0xfc   : > { %v4079_v56 = vmul.f32 -1.442695, %v5966_v52  ;;  %v5973_v57 = vadd.f32 %v5024_v55, %v5963_v50  ;;  %v462_v58 = vpop.f32.mrb[3].mxu1 }
  0xfd   : > { %v4077_v59 = vmul.f32 -1.442695, %v5969_v54  ;;  %v5977_v60 = vadd.f32 %v5963_v50, %v462_v58 }
  0xfe   : > { %5514 = vpow2.f32 %v4079_v56  ;;  %v4080_v61 = vmul.f32 -1.442695, %v5973_v57 }
  0xff   : > { %5516 = vpow2.f32 %v4077_v59  ;;  %v4078_v62 = vmul.f32 -1.442695, %v5977_v60 }
 0x100   : > { %5518 = vpow2.f32 %v4080_v61 }
 0x101   : > { %5520 = vpow2.f32 %v4078_v62  ;;  %v5027_v63 = vpop.f32.mrb[4].mxu1 }
 0x102   : > { %v5982_v0 = vadd.f32 %v5027_v63, %v5963_v50  ;;  %v475_v1 = vpop.f32.mrb[5].mxu1 }
 0x103   : > { %v5985_v2 = vadd.f32 %v5963_v50, %v475_v1  ;;  %v5028_v3 = vpop.f32.mrb[6].mxu1 }
 0x104   : > { %v4083_v4 = vmul.f32 -1.442695, %v5982_v0  ;;  %v5989_v5 = vadd.f32 %v5028_v3, %v5963_v50  ;;  %v478_v6 = vpop.f32.mrb[7].mxu1 }
 0x105   : > { %v4081_v7 = vmul.f32 -1.442695, %v5985_v2  ;;  %v5993_v8 = vadd.f32 %v5963_v50, %v478_v6 }
 0x106   : > { %5522 = vpow2.f32 %v4083_v4  ;;  %v4084_v9 = vmul.f32 -1.442695, %v5989_v5 }
 0x107   : > { %5524 = vpow2.f32 %v4081_v7  ;;  %v4082_v10 = vmul.f32 -1.442695, %v5993_v8 }
 0x108   : > { %v5515_v11 = vpop.eup %5514  ;;  %5526 = vpow2.f32 %v4084_v9 }
 0x109   : > { %v5517_v12 = vpop.eup %5516  ;;  %v684_v13 = vadd.f32 1.0, %v5515_v11  ;;  %5528 = vpow2.f32 %v4082_v10  ;;  %v5031_v14 = vpop.f32.mrb[8].mxu1 }
 0x10a   : > { %v5519_v15 = vpop.eup %5518  ;;  %v682_v16 = vadd.f32 1.0, %v5517_v12  ;;  %v5998_v17 = vadd.f32 %v5031_v14, %v5963_v50  ;;  %v491_v18 = vpop.f32.mrb[9].mxu1 }
 0x10b   : > { %v5521_v19 = vpop.eup %5520  ;;  %5530 = vrcp.f32 %v684_v13  ;;  %v685_v20 = vadd.f32 1.0, %v5519_v15  ;;  %v6001_v21 = vadd.f32 %v5963_v50, %v491_v18  ;;  %v5032_v22 = vpop.f32.mrb[10].mxu1 }
 0x10c   : > { %5532 = vrcp.f32 %v682_v16  ;;  %v683_v23 = vadd.f32 1.0, %v5521_v19  ;;  %v4087_v24 = vmul.f32 -1.442695, %v5998_v17  ;;  %v6005_v25 = vadd.f32 %v5032_v22, %v5963_v50  ;;  %v494_v26 = vpop.f32.mrb[11].mxu1 }
 0x10d   : > { %5534 = vrcp.f32 %v685_v20  ;;  %v4085_v27 = vmul.f32 -1.442695, %v6001_v21  ;;  %v6009_v28 = vadd.f32 %v5963_v50, %v494_v26  ;;  %v1296_v26 = vld [vmem:[#allocation2 + $0x18] sm:$0xf] }
 0x10e   : > { %5536 = vrcp.f32 %v683_v23  ;;  %v4088_v29 = vmul.f32 -1.442695, %v6005_v25 }
 0x10f   : > { %5538 = vpow2.f32 %v4087_v24  ;;  %v4086_v30 = vmul.f32 -1.442695, %v6009_v28 }
 0x110   : > { %v5523_v31 = vpop.eup %5522  ;;  %5540 = vpow2.f32 %v4085_v27 }
 0x111   : > { %v5525_v32 = vpop.eup %5524  ;;  %v688_v33 = vadd.f32 1.0, %v5523_v31  ;;  %5542 = vpow2.f32 %v4088_v29  ;;  %v5035_v34 = vpop.f32.mrb[12].mxu1 }
 0x112   : > { %v5527_v35 = vpop.eup %5526  ;;  %v686_v36 = vadd.f32 1.0, %v5525_v32  ;;  %5544 = vpow2.f32 %v4086_v30  ;;  %v6014_v37 = vadd.f32 %v5035_v34, %v5963_v50  ;;  %v507_v38 = vpop.f32.mrb[13].mxu1  ;;  %v1287_v34 = vld [vmem:[#allocation2 + $0xc] sm:$0xf] }
 0x113   : > { %v5529_v39 = vpop.eup %5528  ;;  %5546 = vrcp.f32 %v688_v33  ;;  %v689_v40 = vadd.f32 1.0, %v5527_v35  ;;  %v6017_v41 = vadd.f32 %v5963_v50, %v507_v38  ;;  %v5036_v42 = vpop.f32.mrb[14].mxu1 }
 0x114   : > { %5548 = vrcp.f32 %v686_v36  ;;  %v687_v43 = vadd.f32 1.0, %v5529_v39  ;;  %v4091_v44 = vmul.f32 -1.442695, %v6014_v37  ;;  %v6021_v45 = vadd.f32 %v5036_v42, %v5963_v50  ;;  %v510_v46 = vpop.f32.mrb[15].mxu1 }
 0x115   : > { %v5531_v47 = vpop.eup %5530  ;;  %5550 = vrcp.f32 %v689_v40  ;;  %v4089_v48 = vmul.f32 -1.442695, %v6017_v41  ;;  %v6025_v49 = vadd.f32 %v5963_v50, %v510_v46 }
 0x116   : > { %v5533_v51 = vpop.eup %5532  ;;  %v780_v53 = vmul.f32 %v5531_v47, %v5966_v52  ;;  %5552 = vrcp.f32 %v687_v43  ;;  %v4092_v55 = vmul.f32 -1.442695, %v6021_v45 }
 0x117   : > { %v5535_v56 = vpop.eup %5534  ;;  %v778_v58 = vmul.f32 %v5533_v51, %v5969_v54  ;;  %5554 = vpow2.f32 %v4091_v44  ;;  %v6033_v3 = vmul.f32 -1.442695, %v6025_v49  ;;  %v1300_v44 = vld [vmem:[#allocation2 + $0x20] sm:$0x1] }
 0x118   : > { %v5537_v59 = vpop.eup %5536  ;;  %v4416_v61 = vpack.c.bf16 %v780_v53, %v780_v53  ;;  %v781_v62 = vmul.f32 %v5535_v56, %v5973_v57  ;;  %5556 = vpow2.f32 %v4089_v48 }
 0x119   : > { %v5539_v63 = vpop.eup %5538  ;;  %v4414_v1 = vpack.c.bf16 %v778_v58, %v778_v58  ;;  %v779_v52 = vmul.f32 %v5537_v59, %v5977_v60  ;;  %5558 = vpow2.f32 %v4092_v55  ;;  %v6035_v4 = vpop.f32.mrb[16].mxu1 }
 0x11a   : > { %v5541_v54 = vpop.eup %5540  ;;  %v981_v6 = vshrl.u32 %v4416_v61, 16  ;;  %v984_v7 = vshll.u32 %v4416_v61, 16  ;;  %v4417_v9 = vpack.c.bf16 %v781_v62, %v781_v62  ;;  %v692_v10 = vadd.f32 1.0, %v5539_v63  ;;  %v6037_v11 = vpop.f32.mrb[17].mxu1 }
 0x11b   : > { %v6039_v57 = vpop.eup %5542  ;;  %v964_v12 = vshrl.u32 %v4414_v1, 16  ;;  %v967_v13 = vshll.u32 %v4414_v1, 16  ;;  %v4415_v14 = vpack.c.bf16 %v779_v52, %v779_v52  ;;  %v690_v15 = vadd.f32 1.0, %v5541_v54  ;;  %v6041_v60 = vpop.f32.mrb[18].mxu1 }
 0x11c   : > { %v6043_v16 = vpop.eup %5544  ;;  %v983_v18 = vrot.slane %v981_v6, 7  ;;  %v989_v19 = vshrl.u32 %v4417_v9, 16  ;;  %v992_v20 = vshll.u32 %v4417_v9, 16  ;;  %5560 = vrcp.f32 %v692_v10  ;;  %v6045_v22 = vpop.f32.mrb[19].mxu1 }
 0x11d   : > { %v5547_v23 = vpop.eup %5546  ;;  %v966_v27 = vrot.slane %v964_v12, 7  ;;  %v972_v29 = vshrl.u32 %v4415_v14, 16  ;;  %v975_v30 = vshll.u32 %v4415_v14, 16  ;;  %5562 = vrcp.f32 %v690_v15 }
 0x11e   : > { %v5549_v31 = vpop.eup %5548  ;;  %v986_v32 = vor.u32 %v984_v7, %v983_v18  ;;  %v987_v33 = vrot.slane %v983_v18, 4  ;;  %v991_v36 = vrot.slane %v989_v19, 7  ;;  %v784_v38 = vmul.f32 %v5547_v23, %v5982_v0  ;;  %v1293_v0 = vld [vmem:[#allocation2 + $0x14] sm:$0x1]  ;;  %v5462_v19 = vld [vmem:[%s7468_s3 + $0x1c0] sm:$0xff]  }
 0x11f   : > { %v5551_v39 = vpop.eup %5550  ;;  %v969_v40 = vor.u32 %v967_v13, %v966_v27  ;;  %v970_v42 = vrot.slane %v966_v27, 4  ;;  %v974_v46 = vrot.slane %v972_v29, 7  ;;  %v782_v47 = vmul.f32 %v5549_v31, %v5985_v2  ;;  %4869 = vmatprep.subr.bf16.mxu1 %v5462_v19 }
 0x120   : > { %v5553_v48 = vpop.eup %5552  ;;  %v1297_v51 = vsel %vm6049_vm5, %v986_v32, %v1296_v26  ;;  %v994_v53 = vor.u32 %v992_v20, %v991_v36  ;;  %v996_v55 = vrot.slane %v991_v36, 4  ;;  %v4420_v56 = vpack.c.bf16 %v784_v38, %v784_v38 }
 0x121   : > { %v5555_v58 = vpop.eup %5554  ;;  %1298 = vst [vmem:[#allocation2 + $0x18] sm:$0xf] %v1297_v51  ;;  %v1288_v59 = vsel %vm6049_vm5, %v969_v40, %v1287_v34  ;;  %v977_v61 = vor.u32 %v975_v30, %v974_v46  ;;  %v979_v62 = vrot.slane %v974_v46, 4  ;;  %v4418_v63 = vpack.c.bf16 %v782_v47, %v782_v47  ;;  %v6071_v1 = vpop.f32.mrb[20].mxu1  ;;  %v1310_v30 = vld [vmem:[#allocation2 + $0x30] sm:$0xf] }
 0x122   : > { %v5557_v52 = vpop.eup %5556  ;;  %1289 = vst [vmem:[#allocation2 + $0xc] sm:$0xf] %v1288_v59  ;;  %v995_v2 = vsel %vm6055_vm6, %v987_v33, %v994_v53  ;;  %v1301_v54 = vsel %vm6062_vm7, %v996_v55, %v1300_v44  ;;  %v1015_v6 = vshrl.u32 %v4420_v56, 16  ;;  %v1018_v7 = vshll.u32 %v4420_v56, 16  ;;  %v6077_v9 = vpop.f32.mrb[21].mxu1 }
 0x123   : > { %v5559_v10 = vpop.eup %5558  ;;  %1299 = vst [vmem:[#allocation2 + $0x1c] sm:$0xf] %v995_v2  ;;  %1302 = vst [vmem:[#allocation2 + $0x20] sm:$0x1] %v1301_v54  ;;  %v978_v12 = vsel %vm6055_vm6, %v970_v42, %v977_v61  ;;  %v1294_v13 = vsel %vm6062_vm7, %v979_v62, %v1293_v0  ;;  %v998_v14 = vshrl.u32 %v4418_v63, 16  ;;  %v1001_v15 = vshll.u32 %v4418_v63, 16 }
 0x124   : > { %v6083_v18 = vpop.f32.mrb[22].mxu1  ;;  %1290 = vst [vmem:[#allocation2 + $0x10] sm:$0xf] %v978_v12  ;;  %1295 = vst [vmem:[#allocation2 + $0x14] sm:$0x1] %v1294_v13  ;;  %v1017_v20 = vrot.slane %v1015_v6, 7  ;;  %v785_v23 = vmul.f32 %v5551_v39, %v5989_v5  ;;  %v783_v26 = vmul.f32 %v5553_v48, %v5993_v8 }
 0x125   : > { %v693_v27 = vadd.f32 1.0, %v6039_v57  ;;  %v6091_v29 = vpop.f32.mrb[23].mxu1  ;;  %v1000_v31 = vrot.slane %v998_v14, 7  ;;  %v691_v32 = vadd.f32 1.0, %v6043_v16  ;;  %v696_v33 = vadd.f32 1.0, %v5555_v58 }
 0x126   : > { %v694_v34 = vadd.f32 1.0, %v5557_v52  ;;  %v5561_v36 = vpop.eup %5560  ;;  %v1020_v38 = vor.u32 %v1018_v7, %v1017_v20  ;;  %v1021_v40 = vrot.slane %v1017_v20, 4  ;;  %v1303_v42 = vld [vmem:[#allocation2 + $0x24] sm:$0xf]  ;;  %v4421_v44 = vpack.c.bf16 %v785_v23, %v785_v23  ;;  %v1314_v55 = vld [vmem:[#allocation2 + $0x38] sm:$0x1] }
 0x127   : > { %v4419_v46 = vpack.c.bf16 %v783_v26, %v783_v26  ;;  %v5563_v5 = vpop.eup %5562  ;;  %v1003_v39 = vor.u32 %v1001_v15, %v1000_v31  ;;  %v1004_v8 = vrot.slane %v1000_v31, 4  ;;  %v788_v57 = vmul.f32 %v5561_v36, %v5998_v17  ;;  %v1307_v56 = vld [vmem:[#allocation2 + $0x2c] sm:$0x1]  ;;  %v1324_v31 = vld [vmem:[#allocation2 + $0x48] sm:$0xf] }
 0x128   : > { %5564 = vrcp.f32 %v693_v27  ;;  %v1311_v47 = vsel %vm6049_vm5, %v1020_v38, %v1310_v30  ;;  %v1023_v48 = vshrl.u32 %v4421_v44, 16  ;;  %v1026_v16 = vshll.u32 %v4421_v44, 16  ;;  %v1317_v36 = vld [vmem:[#allocation2 + $0x3c] sm:$0xf] }
 0x129   : > { %v1006_v51 = vshrl.u32 %v4419_v46, 16  ;;  %1312 = vst [vmem:[#allocation2 + $0x30] sm:$0xf] %v1311_v47  ;;  %v1304_v53 = vsel %vm6049_vm5, %v1003_v39, %v1303_v42  ;;  %v1009_v0 = vshll.u32 %v4419_v46, 16  ;;  %v4424_v58 = vpack.c.bf16 %v788_v57, %v788_v57  ;;  %v6100_v61 = vpop.f32.mrb[24].mxu1 }
 0x12a   : > { %v786_v59 = vmul.f32 %v5563_v5, %v6001_v21  ;;  %1305 = vst [vmem:[#allocation2 + $0x24] sm:$0xf] %v1304_v53  ;;  %v1025_v17 = vrot.slane %v1023_v48, 7  ;;  %5566 = vrcp.f32 %v691_v32  ;;  %v697_v63 = vadd.f32 1.0, %v5559_v10  ;;  %v6102_v52 = vpop.f32.mrb[25].mxu1 }
 0x12b   : > { %v1008_v62 = vrot.slane %v1006_v51, 7  ;;  %v1049_v2 = vshrl.u32 %v4424_v58, 16  ;;  %v1052_v54 = vshll.u32 %v4424_v58, 16  ;;  %5568 = vrcp.f32 %v696_v33  ;;  %v6104_v7 = vpop.f32.mrb[26].mxu1 }
 0x12c   : > { %v4422_v6 = vpack.c.bf16 %v786_v59, %v786_v59  ;;  %v1028_v12 = vor.u32 %v1026_v16, %v1025_v17  ;;  %v1030_v13 = vrot.slane %v1025_v17, 4  ;;  %v6106_v21 = vpop.f32.mrb[27].mxu1  ;;  %5570 = vrcp.f32 %v694_v34 }
 0x12d   : > { %v1011_v14 = vor.u32 %v1009_v0, %v1008_v62  ;;  %v1013_v15 = vrot.slane %v1008_v62, 4  ;;  %v6108_v19 = vrot.slane %v1049_v2, 7  ;;  %5572 = vrcp.f32 %v697_v63 }
 0x12e   : > { %v1032_v20 = vshrl.u32 %v4422_v6, 16  ;;  %v1035_v23 = vshll.u32 %v4422_v6, 16  ;;  %v1029_v10 = vsel %vm6055_vm6, %v1021_v40, %v1028_v12  ;;  %v1315_v26 = vsel %vm6062_vm7, %v1030_v13, %v1314_v55  ;;  %v1328_v12 = vld [vmem:[#allocation2 + $0x50] sm:$0x1] }
 0x12f   : > { %v1012_v27 = vsel %vm6055_vm6, %v1004_v8, %v1011_v14  ;;  %v1308_v30 = vsel %vm6062_vm7, %v1013_v15, %v1307_v56  ;;  %1313 = vst [vmem:[#allocation2 + $0x34] sm:$0xf] %v1029_v10  ;;  %1316 = vst [vmem:[#allocation2 + $0x38] sm:$0x1] %v1315_v26  ;;  %v1054_v32 = vor.u32 %v1052_v54, %v6108_v19  ;;  %v1055_v33 = vrot.slane %v6108_v19, 4 }
 0x130   : > { %1306 = vst [vmem:[#allocation2 + $0x28] sm:$0xf] %v1012_v27  ;;  %1309 = vst [vmem:[#allocation2 + $0x2c] sm:$0x1] %v1308_v30  ;;  %v6120_v34 = vrot.slane %v1032_v20, 7  ;;  %5574 = vpow2.f32 %v6033_v3  ;;  %v6125_v38 = vadd.f32 %v6035_v4, %v5963_v50  ;;  %v6129_v40 = vadd.f32 %v5963_v50, %v6037_v11 }
 0x131   : > { %v6133_v42 = vadd.f32 %v6041_v60, %v5963_v50  ;;  %v1325_v46 = vsel %vm6049_vm5, %v1054_v32, %v1324_v31  ;;  %v6141_v4 = vadd.f32 %v5963_v50, %v6045_v22  ;;  %v6143_v39 = vpop.f32.mrb[28].mxu1  ;;  %v6154_v22 = vadd.f32 %v6071_v1, %v5963_v50 }
 0x132   : > { %v5565_v44 = vpop.eup %5564  ;;  %v1037_v5 = vor.u32 %v1035_v23, %v6120_v34  ;;  %v1038_v3 = vrot.slane %v6120_v34, 4  ;;  %1326 = vst [vmem:[#allocation2 + $0x48] sm:$0xf] %v1325_v46  ;;  %v4095_v60 = vmul.f32 -1.442695, %v6125_v38  ;;  %v6158_v16 = vadd.f32 %v5963_v50, %v6077_v9 }
 0x133   : > { %v789_v11 = vmul.f32 %v5565_v44, %v6005_v25  ;;  %v4093_v8 = vmul.f32 -1.442695, %v6129_v40  ;;  %v4096_v57 = vmul.f32 -1.442695, %v6133_v42  ;;  %v4094_v48 = vmul.f32 -1.442695, %v6141_v4 }
 0x134   : > { %v1318_v47 = vsel %vm6049_vm5, %v1037_v5, %v1317_v36  ;;  %v6160_v25 = vpop.f32.mrb[29].mxu1  ;;  %v5567_v51 = vpop.eup %5566  ;;  %5576 = vpow2.f32 %v4095_v60  ;;  %v6164_v55 = vadd.f32 %v6083_v18, %v5963_v50  ;;  %v6168_v0 = vadd.f32 %v5963_v50, %v6091_v29 }
 0x135   : > { %1319 = vst [vmem:[#allocation2 + $0x3c] sm:$0xf] %v1318_v47  ;;  %v4425_v53 = vpack.c.bf16 %v789_v11, %v789_v11  ;;  %v6170_v1 = vpop.f32.mrb[30].mxu1  ;;  %v5569_v56 = vpop.eup %5568  ;;  %v787_v9 = vmul.f32 %v5567_v51, %v6009_v28  ;;  %5578 = vpow2.f32 %v4093_v8  ;;  %v4099_v58 = vmul.f32 -1.442695, %v6154_v22 }
 0x136   : > { %v4097_v59 = vmul.f32 -1.442695, %v6158_v16  ;;  %v6175_v17 = vpop.f32.mrb[31].mxu1  ;;  %v792_v18 = vmul.f32 %v5569_v56, %v6014_v37  ;;  %5580 = vpow2.f32 %v4096_v57  ;;  %v5571_v2 = vpop.eup %5570  ;;  %v4100_v54 = vmul.f32 -1.442695, %v6164_v55 }
 0x137   : > { %v1057_v62 = vshrl.u32 %v4425_v53, 16  ;;  %v1060_v63 = vshll.u32 %v4425_v53, 16  ;;  %v4423_v29 = vpack.c.bf16 %v787_v9, %v787_v9  ;;  %5582 = vpow2.f32 %v4094_v48  ;;  %v5573_v15 = vpop.eup %5572  ;;  %v1338_v57 = vld [vmem:[#allocation2 + $0x60] sm:$0xf] }
 0x138   : > { %v6180_v6 = vmul.f32 -1.442695, %v6168_v0  ;;  %v4428_v13 = vpack.c.bf16 %v792_v18, %v792_v18  ;;  %v790_v14 = vmul.f32 %v5571_v2, %v6017_v41  ;;  %5584 = vpow2.f32 %v4099_v58  ;;  %v1331_v18 = vld [vmem:[#allocation2 + $0x54] sm:$0xf] }
 0x139   : > { %v1059_v28 = vrot.slane %v1057_v62, 7  ;;  %v1040_v20 = vshrl.u32 %v4423_v29, 16  ;;  %v1043_v23 = vshll.u32 %v4423_v29, 16  ;;  %5586 = vpow2.f32 %v4097_v59 }
 0x13a   : > { %v6185_v37 = vadd.f32 %v6100_v61, %v5963_v50  ;;  %v5575_v10 = vpop.eup %5574  ;;  %v1083_v30 = vshrl.u32 %v4428_v13, 16  ;;  %v1086_v31 = vshll.u32 %v4428_v13, 16  ;;  %v4426_v36 = vpack.c.bf16 %v790_v14, %v790_v14  ;;  %v1321_v61 = vld [vmem:[#allocation2 + $0x44] sm:$0x1] }
 0x13b   : > { %v1062_v26 = vor.u32 %v1060_v63, %v1059_v28  ;;  %v1064_v27 = vrot.slane %v1059_v28, 4  ;;  %v1042_v32 = vrot.slane %v1040_v20, 7  ;;  %v793_v44 = vmul.f32 %v5573_v15, %v6021_v45  ;;  %v1342_v15 = vld [vmem:[#allocation2 + $0x68] sm:$0x1] }
 0x13c   : > { %v695_v46 = vadd.f32 1.0, %v5575_v10  ;;  %v1085_v11 = vrot.slane %v1083_v30, 7  ;;  %5588 = vpow2.f32 %v4100_v54  ;;  %v1066_v47 = vshrl.u32 %v4426_v36, 16 }
 0x13d   : > { %v1063_v41 = vsel %vm6055_vm6, %v1055_v33, %v1062_v26  ;;  %v1329_v5 = vsel %vm6062_vm7, %v1064_v27, %v1328_v12  ;;  %v1045_v60 = vor.u32 %v1043_v23, %v1042_v32  ;;  %v1047_v8 = vrot.slane %v1042_v32, 4  ;;  %v6215_v32 = vld [vmem:[#allocation2 + $0x14] ss:$0 sps:$4 sm:$0x11]  }
 0x13e   : > { %1327 = vst [vmem:[#allocation2 + $0x4c] sm:$0xf] %v1063_v41  ;;  %1330 = vst [vmem:[#allocation2 + $0x50] sm:$0x1] %v1329_v5  ;;  %v1069_v48 = vshll.u32 %v4426_v36, 16  ;;  %v5577_v45 = vpop.eup %5576  ;;  %v1088_v51 = vor.u32 %v1086_v31, %v1085_v11  ;;  %v1089_v53 = vrot.slane %v1085_v11, 4  ;;  %v4429_v19 = vpack.c.bf16 %v793_v44, %v793_v44 }
 0x13f   : > { %5590 = vrcp.f32 %v695_v46  ;;  %v5579_v56 = vpop.eup %5578  ;;  %v1046_v33 = vsel %vm6055_vm6, %v1038_v3, %v1045_v60  ;;  %v1322_v9 = vsel %vm6062_vm7, %v1047_v8, %v1321_v61  ;;  %v6200_v58 = vrot.slane %v1066_v47, 7  ;;  %v6213_v31 = vld [vmem:[#allocation2 + $0xc] sm:$0xff]   ;;  %v6226_v61 = vld [vmem:[#allocation2 + $0x18] sm:$0xff]  }
 0x140   : > { %v700_v59 = vadd.f32 1.0, %v5577_v45  ;;  %v5581_v62 = vpop.eup %5580  ;;  %1320 = vst [vmem:[#allocation2 + $0x40] sm:$0xf] %v1046_v33  ;;  %1323 = vst [vmem:[#allocation2 + $0x44] sm:$0x1] %v1322_v9  ;;  %v1339_v63 = vsel %vm6049_vm5, %v1088_v51, %v1338_v57  ;;  %v1091_v2 = vshrl.u32 %v4429_v19, 16  ;;  %v6211_v30 = vadd.f32 %v5963_v50, %v6102_v52 }
 0x141   : > { %v1094_v29 = vshll.u32 %v4429_v19, 16  ;;  %v698_v34 = vadd.f32 1.0, %v5579_v56  ;;  %v5583_v54 = vpop.eup %5582  ;;  %1340 = vst [vmem:[#allocation2 + $0x60] sm:$0xf] %v1339_v63  ;;  %v1071_v3 = vor.u32 %v1069_v48, %v6200_v58  ;;  %v1072_v28 = vrot.slane %v6200_v58, 4 }
 0x142   : > { %5592 = vrcp.f32 %v700_v59  ;;  %v701_v12 = vadd.f32 1.0, %v5581_v62  ;;  %v5585_v13 = vpop.eup %5584  ;;  %v1093_v14 = vrot.slane %v1091_v2, 7  ;;  %v699_v20 = vadd.f32 1.0, %v5583_v54  ;;  %v5418_v59 = vld [vmem:[%s7468_s3] sm:$0xff]   ;;  %v5422_v2 = vld [vmem:[%s7468_s3 + $0x48] sm:$0xff]  }
 0x143   : > { %5594 = vrcp.f32 %v698_v34  ;;  %v4103_v23 = vmul.f32 -1.442695, %v6185_v37  ;;  %v5587_v10 = vpop.eup %5586  ;;  %v1332_v26 = vsel %vm6049_vm5, %v1071_v3, %v1331_v18  ;;  %v704_v27 = vadd.f32 1.0, %v5585_v13  ;;  %v1345_v58 = vld [vmem:[#allocation2 + $0x6c] sm:$0xf] }
 0x144   : > { %5596 = vrcp.f32 %v701_v12  ;;  %1333 = vst [vmem:[#allocation2 + $0x54] sm:$0xf] %v1332_v26  ;;  %v1096_v36 = vor.u32 %v1094_v29, %v1093_v14  ;;  %v1098_v44 = vrot.slane %v1093_v14, 4  ;;  %v702_v46 = vadd.f32 1.0, %v5587_v10 }
 0x145   : > { %5598 = vrcp.f32 %v699_v20  ;;  %v4101_v41 = vmul.f32 -1.442695, %v6211_v30  ;;  %v6220_v5 = vadd.f32 %v6104_v7, %v5963_v50  ;;  %v6224_v52 = vadd.f32 %v5963_v50, %v6106_v21  ;;  %v6236_v7 = vld [vmem:[#allocation2 + $0x20] ss:$0 sps:$4 sm:$0x11]  }
 0x146   : > { %5600 = vrcp.f32 %v704_v27  ;;  %v5589_v11 = vpop.eup %5588  ;;  %v1097_v60 = vsel %vm6055_vm6, %v1089_v53, %v1096_v36  ;;  %v1343_v8 = vsel %vm6062_vm7, %v1098_v44, %v1342_v15  ;;  %v6234_v57 = vadd.f32 %v6143_v39, %v5963_v50  ;;  %v5428_v27 = vld [vmem:[%s7468_s3 + $0x50] sm:$0xff]   ;;  %v1335_v44 = vld [vmem:[#allocation2 + $0x5c] sm:$0x1] }
 0x147   : > { %5602 = vrcp.f32 %v702_v46  ;;  %1341 = vst [vmem:[#allocation2 + $0x64] sm:$0xf] %v1097_v60  ;;  %1344 = vst [vmem:[#allocation2 + $0x68] sm:$0x1] %v1343_v8  ;;  %v705_v21 = vadd.f32 1.0, %v5589_v11  ;;  %v1812_v53 = vrot.slane %v6213_v31, 1  ;;  %v6247_v56 = vadd.f32 %v5963_v50, %v6160_v25 }
 0x148   : > { %5604 = vpow2.f32 %v6180_v6  ;;  %v4104_v47 = vmul.f32 -1.442695, %v6220_v5  ;;  %v4102_v48 = vmul.f32 -1.442695, %v6224_v52  ;;  %v4107_v51 = vmul.f32 -1.442695, %v6234_v57 }
 0x149   : > { %v5591_v45 = vpop.eup %5590  ;;  %5606 = vpow2.f32 %v4103_v23  ;;  %v1813_v39 = vrot.slane %v6215_v32, 1  ;;  %v1815_v6 = vrot.slane %v6226_v61, 1  ;;  %v1816_v9 = vrot.slane %v6236_v7, 1 }
 0x14a   : > { %v791_v19 = vmul.f32 %v5591_v45, %v6025_v49  ;;  %5608 = vrcp.f32 %v705_v21  ;;  %v6259_v49 = vadd.f32 %v6170_v1, %v5963_v50  ;;  %v4105_v25 = vmul.f32 -1.442695, %v6247_v56 }
 0x14b   : > { %5610 = vpow2.f32 %v4101_v41  ;;  %v6251_v33 = vsel %vm1808_vm8, %v1812_v53, %v1813_v39  ;;  %v6265_v18 = vadd.f32 %v5963_v50, %v6175_v17  ;;  %v6272_v1 = vsel %vm1808_vm8, %v1815_v6, %v1816_v9  ;;  %v5425_v50 = vld [vmem:[%s7468_s3 + $0x8] sm:$0xff]  }
 0x14c   : > { %v5593_v62 = vpop.eup %5592  ;;  %v4427_v63 = vpack.c.bf16 %v791_v19, %v791_v19  ;;  %5612 = vpow2.f32 %v4104_v47  ;;  %5069 = vmatprep.mubr.bf16.mxu0 %v6251_v33  ;;  %v4108_v54 = vmul.f32 -1.442695, %v6259_v49  ;;  %v5431_v19 = vld [vmem:[%s7468_s3 + $0x10] sm:$0xff]  }
 0x14d   : > { %v5595_v29 = vpop.eup %5594  ;;  %v796_v34 = vmul.f32 %v5593_v62, %v6125_v38  ;;  %5614 = vpow2.f32 %v4102_v48  ;;  %5070 = vmatmul.mubr.bf16.vlgmr.msra.gmra.mrb[0].mxu0 %v6272_v1  ;;  %v6282_v20 = vmul.f32 -1.442695, %v6265_v18 }
 0x14e   : > { %v5597_v3 = vpop.eup %5596  ;;  %v1074_v12 = vshrl.u32 %v4427_v63, 16  ;;  %v1077_v13 = vshll.u32 %v4427_v63, 16  ;;  %v794_v14 = vmul.f32 %v5595_v29, %v6129_v40  ;;  %5616 = vpow2.f32 %v4107_v51  ;;  %4734 = vmatpush3.bf16.msra.mxu0 %v5418_v59  ;;  %v1352_v59 = vld [vmem:[#allocation2 + $0x78] sm:$0xf] }
 0x14f   : > { %v5599_v17 = vpop.eup %5598  ;;  %v4432_v38 = vpack.c.bf16 %v796_v34, %v796_v34  ;;  %v797_v15 = vmul.f32 %v5597_v3, %v6133_v42  ;;  %5618 = vpow2.f32 %v4105_v25  ;;  %4735 = vmatprep.subr.bf16.mxu0 %v5422_v2  ;;  %v5434_v25 = vld [vmem:[%s7468_s3 + $0x58] sm:$0xff]  }
 0x150   : > { %v5601_v23 = vpop.eup %5600  ;;  %v1076_v10 = vrot.slane %v1074_v12, 7  ;;  %v4430_v26 = vpack.c.bf16 %v794_v14, %v794_v14  ;;  %v795_v40 = vmul.f32 %v5599_v17, %v6141_v4  ;;  %5620 = vpow2.f32 %v4108_v54  ;;  %v1356_v14 = vld [vmem:[#allocation2 + $0x80] sm:$0x1] }
 0x151   : > { %v5603_v36 = vpop.eup %5602  ;;  %v1117_v46 = vshrl.u32 %v4432_v38, 16  ;;  %v1120_v42 = vshll.u32 %v4432_v38, 16  ;;  %v4433_v41 = vpack.c.bf16 %v797_v15, %v797_v15  ;;  %v800_v11 = vmul.f32 %v5601_v23, %v6154_v22 }
 0x152   : > { %v6289_v60 = vpop.eup %5604  ;;  %v1079_v8 = vor.u32 %v1077_v13, %v1076_v10  ;;  %v1081_v21 = vrot.slane %v1076_v10, 4  ;;  %v1100_v47 = vshrl.u32 %v4430_v26, 16  ;;  %v1103_v48 = vshll.u32 %v4430_v26, 16  ;;  %4736 = vmatpush3.bf16.msra.mxu0 %v5425_v50 }
 0x153   : > { %v5607_v4 = vpop.eup %5606  ;;  %v1119_v45 = vrot.slane %v1117_v46, 7  ;;  %v1125_v51 = vshrl.u32 %v4433_v41, 16  ;;  %v1128_v53 = vshll.u32 %v4433_v41, 16  ;;  %v4431_v39 = vpack.c.bf16 %v795_v40, %v795_v40  ;;  %4737 = vmatprep.subr.bf16.mxu0 %v5428_v27  ;;  %v5437_v40 = vld [vmem:[%s7468_s3 + $0x18] sm:$0xff]   ;;  %v1349_v46 = vld [vmem:[#allocation2 + $0x74] sm:$0x1] }
 0x154   : > { %v5609_v6 = vpop.eup %5608  ;;  %v1080_v22 = vsel %vm6055_vm6, %v1072_v28, %v1079_v8  ;;  %v1336_v9 = vsel %vm6062_vm7, %v1081_v21, %v1335_v44  ;;  %v1102_v62 = vrot.slane %v1100_v47, 7  ;;  %v4436_v63 = vpack.c.bf16 %v800_v11, %v800_v11  ;;  %v5440_v8 = vld [vmem:[%s7468_s3 + $0x60] sm:$0xff]  }
 0x155   : > { %v5611_v2 = vpop.eup %5610  ;;  %1334 = vst [vmem:[#allocation2 + $0x58] sm:$0xf] %v1080_v22  ;;  %1337 = vst [vmem:[#allocation2 + $0x5c] sm:$0x1] %v1336_v9  ;;  %v1122_v29 = vor.u32 %v1120_v42, %v1119_v45  ;;  %v1123_v34 = vrot.slane %v1119_v45, 4  ;;  %v1127_v54 = vrot.slane %v1125_v51, 7  ;;  %v798_v11 = vmul.f32 %v5603_v36, %v6158_v16 }
 0x156   : > { %v1108_v3 = vshrl.u32 %v4431_v39, 16  ;;  %v5613_v28 = vpop.eup %5612  ;;  %v1105_v12 = vor.u32 %v1103_v48, %v1102_v62  ;;  %v1106_v13 = vrot.slane %v1102_v62, 4  ;;  %v1111_v50 = vshll.u32 %v4431_v39, 16  ;;  %4738 = vmatpush3.bf16.msra.mxu0 %v5431_v19 }
 0x157   : > { %v1151_v17 = vshrl.u32 %v4436_v63, 16  ;;  %v5615_v38 = vpop.eup %5614  ;;  %v1353_v15 = vsel %vm6049_vm5, %v1122_v29, %v1352_v59  ;;  %v1130_v23 = vor.u32 %v1128_v53, %v1127_v54  ;;  %v1132_v10 = vrot.slane %v1127_v54, 4  ;;  %4739 = vmatprep.subr.bf16.mxu0 %v5434_v25  ;;  %v1366_v53 = vld [vmem:[#allocation2 + $0x90] sm:$0xf]  ;;  %v5443_v25 = vld [vmem:[%s7468_s3 + $0x20] sm:$0xff]   ;;  %v5446_v29 = vld [vmem:[%s7468_s3 + $0x68] sm:$0xff]  }
 0x158   : > { %v1110_v26 = vrot.slane %v1108_v3, 7  ;;  %v5617_v27 = vpop.eup %5616  ;;  %1354 = vst [vmem:[#allocation2 + $0x78] sm:$0xf] %v1353_v15  ;;  %v1346_v44 = vsel %vm6049_vm5, %v1105_v12, %v1345_v58  ;;  %v1154_v41 = vshll.u32 %v4436_v63, 16  ;;  %v4434_v19 = vpack.c.bf16 %v798_v11, %v798_v11  ;;  %v1359_v12 = vld [vmem:[#allocation2 + $0x84] sm:$0xf] }
 0x159   : > { %v6310_v42 = vrot.slane %v1151_v17, 7  ;;  %v5619_v21 = vpop.eup %5618  ;;  %1347 = vst [vmem:[#allocation2 + $0x6c] sm:$0xf] %v1346_v44  ;;  %v1131_v47 = vsel %vm6055_vm6, %v1123_v34, %v1130_v23  ;;  %v1357_v48 = vsel %vm6062_vm7, %v1132_v10, %v1356_v14  ;;  %v801_v22 = vmul.f32 %v5609_v6, %v6164_v55  ;;  %v5449_v10 = vld [vmem:[%s7468_s3 + $0x28] sm:$0xff]  }
 0x15a   : > { %v1113_v45 = vor.u32 %v1111_v50, %v1110_v26  ;;  %v1115_v51 = vrot.slane %v1110_v26, 4  ;;  %v5621_v39 = vpop.eup %5620  ;;  %1355 = vst [vmem:[#allocation2 + $0x7c] sm:$0xf] %v1131_v47  ;;  %1358 = vst [vmem:[#allocation2 + $0x80] sm:$0x1] %v1357_v48  ;;  %v703_v62 = vadd.f32 1.0, %v6289_v60  ;;  %4740 = vmatpush3.bf16.msra.mxu0 %v5437_v40 }
 0x15b   : > { %v1156_v16 = vor.u32 %v1154_v41, %v6310_v42  ;;  %v1157_v36 = vrot.slane %v6310_v42, 4  ;;  %v708_v63 = vadd.f32 1.0, %v5607_v4  ;;  %v1134_v6 = vshrl.u32 %v4434_v19, 16  ;;  %4741 = vmatprep.subr.bf16.mxu0 %v5440_v8  ;;  %v1370_v50 = vld [vmem:[#allocation2 + $0x98] sm:$0x1]  ;;  %v6343_v26 = vld [vmem:[#allocation2 + $0x24] sm:$0xff]  }
 0x15c   : > { %v1114_v9 = vsel %vm6055_vm6, %v1106_v13, %v1113_v45  ;;  %v1350_v59 = vsel %vm6062_vm7, %v1115_v51, %v1349_v46  ;;  %v1137_v34 = vshll.u32 %v4434_v19, 16  ;;  %v4437_v58 = vpack.c.bf16 %v801_v22, %v801_v22  ;;  %v6345_v40 = vld [vmem:[#allocation2 + $0x2c] ss:$0 sps:$4 sm:$0x11]   ;;  %v6353_v41 = vld [vmem:[#allocation2 + $0x30] sm:$0xff]  }
 0x15d   : > { %1348 = vst [vmem:[#allocation2 + $0x70] sm:$0xf] %v1114_v9  ;;  %1351 = vst [vmem:[#allocation2 + $0x74] sm:$0x1] %v1350_v59  ;;  %v1367_v55 = vsel %vm6049_vm5, %v1156_v16, %v1366_v53  ;;  %5622 = vrcp.f32 %v703_v62  ;;  %v706_v60 = vadd.f32 1.0, %v5611_v2  ;;  %v709_v4 = vadd.f32 1.0, %v5613_v28 }
 0x15e   : > { %1368 = vst [vmem:[#allocation2 + $0x90] sm:$0xf] %v1367_v55  ;;  %v707_v54 = vadd.f32 1.0, %v5615_v38  ;;  %v6336_v3 = vrot.slane %v1134_v6, 7  ;;  %v1159_v13 = vshrl.u32 %v4437_v58, 16  ;;  %v1162_v14 = vshll.u32 %v4437_v58, 16  ;;  %4742 = vmatpush3.bf16.msra.mxu0 %v5443_v25 }
 0x15f   : > { %5624 = vrcp.f32 %v708_v63  ;;  %v712_v17 = vadd.f32 1.0, %v5617_v27  ;;  %v710_v15 = vadd.f32 1.0, %v5619_v21  ;;  %v713_v23 = vadd.f32 1.0, %v5621_v39  ;;  %4743 = vmatprep.subr.bf16.mxu0 %v5446_v29  ;;  %v5452_v27 = vld [vmem:[%s7468_s3 + $0x70] sm:$0xff]   ;;  %v6373_v62 = vld [vmem:[#allocation2 + $0x3c] sm:$0xff]  }
 0x160   : > { %5626 = vrcp.f32 %v706_v60  ;;  %v1139_v2 = vor.u32 %v1137_v34, %v6336_v3  ;;  %v1140_v28 = vrot.slane %v6336_v3, 4  ;;  %v1161_v38 = vrot.slane %v1159_v13, 7  ;;  %v6357_v47 = vld [vmem:[#allocation2 + $0x38] ss:$0 sps:$4 sm:$0x11]  }
 0x161   : > { %5628 = vrcp.f32 %v709_v4  ;;  %v1613_v44 = vshrl.u32 %v6213_v31, 16  ;;  %v1615_v46 = vshll.u32 %v6213_v31, 16  ;;  %v1620_v42 = vshll.u32 %v6215_v32, 16  ;;  %v5455_v32 = vld [vmem:[%s7468_s3 + $0x30] sm:$0xff]   ;;  %v5458_v55 = vld [vmem:[%s7468_s3 + $0x78] sm:$0xff]  }
 0x162   : > { %5630 = vrcp.f32 %v707_v54  ;;  %v1360_v11 = vsel %vm6049_vm5, %v1139_v2, %v1359_v12  ;;  %v1164_v8 = vor.u32 %v1162_v14, %v1161_v38  ;;  %v1166_v21 = vrot.slane %v1161_v38, 4  ;;  %4744 = vmatpush3.bf16.msra.mxu0 %v5449_v10  ;;  %v6368_v19 = vld [vmem:[#allocation2 + $0x44] ss:$0 sps:$4 sm:$0x11]   ;;  %v5461_v60 = vld [vmem:[%s7468_s3 + $0x38] sm:$0xff]   ;;  %v5467_v38 = vld [vmem:[%s7468_s3 + $0x1c8] sm:$0xff]  }
 0x163   : > { %5632 = vrcp.f32 %v712_v17  ;;  %1361 = vst [vmem:[#allocation2 + $0x84] sm:$0xf] %v1360_v11  ;;  %v1617_v48 = vrot.slane %v1615_v46, 1  ;;  %v1622_v45 = vrot.slane %v1620_v42, 1  ;;  %v1625_v51 = vshrl.u32 %v6226_v61, 16  ;;  %4745 = vmatprep.subr.bf16.mxu0 %v5452_v27  ;;  %v6403_v17 = vld [vmem:[%s7468_s3 + $0x80] sm:$0xff]  }
 0x164   : > { %5634 = vrcp.f32 %v710_v15  ;;  %v1165_v53 = vsel %vm6055_vm6, %v1157_v36, %v1164_v8  ;;  %v1371_v39 = vsel %vm6062_vm7, %v1166_v21, %v1370_v50  ;;  %v1627_v16 = vshll.u32 %v6226_v61, 16  ;;  %v5463_v50 = vld [vmem:[%s7468_s3 + $0x180] sm:$0xff]  }
 0x165   : > { %5636 = vrcp.f32 %v713_v23  ;;  %1369 = vst [vmem:[#allocation2 + $0x94] sm:$0xf] %v1165_v53  ;;  %1372 = vst [vmem:[#allocation2 + $0x98] sm:$0x1] %v1371_v39  ;;  %v1618_v22 = vor.u32 %v1617_v48, %v1613_v44  ;;  %v1632_v9 = vshll.u32 %v6236_v7, 16  ;;  %v1818_v59 = vrot.slane %v6343_v26, 1 }
 0x166   : > { %5638 = vpow2.f32 %v6282_v20  ;;  %v1629_v36 = vrot.slane %v1627_v16, 1  ;;  %v1819_v63 = vrot.slane %v6345_v40, 1  ;;  %v1821_v25 = vrot.slane %v6353_v41, 1  ;;  %4746 = vmatpush3.bf16.msra.mxu0 %v5455_v32 }
 0x167   : > { %v1822_v29 = vrot.slane %v6357_v47, 1  ;;  %v5623_v6 = vpop.eup %5622  ;;  %v6382_v20 = vsel %vm1599_vm9, %v1618_v22, %v1622_v45  ;;  %v1634_v7 = vrot.slane %v1632_v9, 1  ;;  %v1637_v34 = vshrl.u32 %v6343_v26, 16  ;;  %4747 = vmatprep.subr.bf16.mxu0 %v5458_v55 }
 0x168   : > { %v1639_v58 = vshll.u32 %v6343_v26, 16  ;;  %v799_v54 = vmul.f32 %v5623_v6, %v6168_v0  ;;  %2172 = vmatprep.mubr.bf16.mxu1 %v6382_v20  ;;  %v1630_v12 = vor.u32 %v1629_v36, %v1625_v51  ;;  %v6392_v13 = vsel %vm1808_vm8, %v1818_v59, %v1819_v63  ;;  %v5470_v59 = vld [vmem:[%s7468_s3 + $0x1d0] sm:$0xff]   ;;  %v1363_v6 = vld [vmem:[#allocation2 + $0x8c] sm:$0x1] }
 0x169   : > { %v5625_v4 = vpop.eup %5624  ;;  %v6395_v14 = vsel %vm1808_vm8, %v1821_v25, %v1822_v29  ;;  %2173 = vmatmul.mubr.bf16.vlgmr.msra.gmra.mrb[32].mxu1 %v6213_v31  ;;  %5073 = vmatprep.mubr.bf16.mxu0 %v6392_v13  ;;  %v1644_v10 = vshll.u32 %v6345_v40, 16  ;;  %v1824_v2 = vrot.slane %v6373_v62, 1 }
 0x16a   : > { %v5627_v15 = vpop.eup %5626  ;;  %v804_v0 = vmul.f32 %v5625_v4, %v6185_v37  ;;  %v1641_v23 = vrot.slane %v1639_v58, 1  ;;  %v4435_v44 = vpack.c.bf16 %v799_v54, %v799_v54  ;;  %v6415_v42 = vsel %vm1599_vm9, %v1630_v12, %v1634_v7  ;;  %5074 = vmatmul.mubr.bf16.gmra.mrb[4].mxu0 %v6395_v14  ;;  %4870 = vmatpush3.bf16.msra.mxu1 %v5463_v50  ;;  %v1380_v12 = vld [vmem:[#allocation2 + $0xa8] sm:$0xf] }
 0x16b   : > { %v5629_v27 = vpop.eup %5628  ;;  %v802_v46 = vmul.f32 %v5627_v15, %v6211_v30  ;;  %v1825_v37 = vrot.slane %v6368_v19, 1  ;;  %2180 = vmatprep.mubr.bf16.mxu1 %v6415_v42  ;;  %v6423_v21 = vrot.slane %v1644_v10, 1  ;;  %4748 = vmatpush3.bf16.msra.mxu0 %v5461_v60  ;;  %v5468_v30 = vld [vmem:[%s7468_s3 + $0x188] sm:$0xff]   ;;  %v5471_v15 = vld [vmem:[%s7468_s3 + $0x190] sm:$0xff]   ;;  %v1373_v10 = vld [vmem:[#allocation2 + $0x9c] sm:$0xf] }
 0x16c   : > { %v5631_v31 = vpop.eup %5630  ;;  %v4440_v40 = vpack.c.bf16 %v804_v0, %v804_v0  ;;  %v805_v11 = vmul.f32 %v5629_v27, %v6220_v5  ;;  %v6421_v8 = vor.u32 %v1641_v23, %v1637_v34  ;;  %v1142_v45 = vshrl.u32 %v4435_v44, 16  ;;  %5101 = vmatprep.subr.bf16.mxu0 %v6403_v17  ;;  %4871 = vmatprep.subr.bf16.mxu1 %v5467_v38 }
 0x16d   : > { %v5633_v48 = vpop.eup %5632  ;;  %v1145_v51 = vshll.u32 %v4435_v44, 16  ;;  %v4438_v32 = vpack.c.bf16 %v802_v46, %v802_v46  ;;  %v803_v53 = vmul.f32 %v5631_v31, %v6224_v52  ;;  %v5473_v44 = vld [vmem:[%s7468_s3 + $0x1d8] sm:$0xff]  }
 0x16e   : > { %v5635_v5 = vpop.eup %5634  ;;  %v1185_v39 = vshrl.u32 %v4440_v40, 16  ;;  %v1188_v16 = vshll.u32 %v4440_v40, 16  ;;  %v4441_v22 = vpack.c.bf16 %v805_v11, %v805_v11  ;;  %v808_v9 = vmul.f32 %v5633_v48, %v6234_v57  ;;  %4872 = vmatpush3.bf16.msra.mxu1 %v5468_v30  ;;  %v1384_v30 = vld [vmem:[#allocation2 + $0xb0] sm:$0x1] }
 0x16f   : > { %v5637_v36 = vpop.eup %5636  ;;  %v1144_v63 = vrot.slane %v1142_v45, 7  ;;  %v1168_v25 = vshrl.u32 %v4438_v32, 16  ;;  %v1171_v29 = vshll.u32 %v4438_v32, 16  ;;  %v4439_v55 = vpack.c.bf16 %v803_v53, %v803_v53  ;;  %4873 = vmatprep.subr.bf16.mxu1 %v5470_v59  ;;  %v1377_v32 = vld [vmem:[#allocation2 + $0xa4] sm:$0x1] }
 0x170   : > { %v5639_v52 = vpop.eup %5638  ;;  %v1187_v7 = vrot.slane %v1185_v39, 7  ;;  %v1193_v34 = vshrl.u32 %v4441_v22, 16  ;;  %v1196_v58 = vshll.u32 %v4441_v22, 16  ;;  %v4444_v60 = vpack.c.bf16 %v808_v9, %v808_v9 }
 0x171   : > { %v1147_v4 = vor.u32 %v1145_v51, %v1144_v63  ;;  %v1149_v54 = vrot.slane %v1144_v63, 4  ;;  %v1170_v57 = vrot.slane %v1168_v25, 7  ;;  %v1176_v50 = vshrl.u32 %v4439_v55, 16  ;;  %2181 = vmatmul.mubr.bf16.gmra.mrb[36].mxu1 %v6226_v61  ;;  %v6456_v63 = vld [vmem:[#allocation2 + $0x48] sm:$0xff]  }
 0x172   : > { %v1190_v0 = vor.u32 %v1188_v16, %v1187_v7  ;;  %v1191_v23 = vrot.slane %v1187_v7, 4  ;;  %v1195_v38 = vrot.slane %v1193_v34, 7  ;;  %v1179_v27 = vshll.u32 %v4439_v55, 16  ;;  %4874 = vmatpush3.bf16.msra.mxu1 %v5471_v15  ;;  %v6458_v25 = vld [vmem:[#allocation2 + $0x50] ss:$0 sps:$4 sm:$0x11]  }
 0x173   : > { %v1148_v46 = vsel %vm6055_vm6, %v1140_v28, %v1147_v4  ;;  %v1364_v31 = vsel %vm6062_vm7, %v1149_v54, %v1363_v6  ;;  %v1173_v40 = vor.u32 %v1171_v29, %v1170_v57  ;;  %v1174_v11 = vrot.slane %v1170_v57, 4  ;;  %4875 = vmatprep.subr.bf16.mxu1 %v5473_v44  ;;  %v5474_v6 = vld [vmem:[%s7468_s3 + $0x198] sm:$0xff]   ;;  %v6492_v54 = vld [vmem:[#allocation2 + $0x68] ss:$0 sps:$4 sm:$0x11]   ;;  %v5477_v15 = vld [vmem:[%s7468_s3 + $0x1a0] sm:$0xff]  }
 0x174   : > { %1362 = vst [vmem:[#allocation2 + $0x88] sm:$0xf] %v1148_v46  ;;  %1365 = vst [vmem:[#allocation2 + $0x8c] sm:$0x1] %v1364_v31  ;;  %v1381_v61 = vsel %vm6049_vm5, %v1190_v0, %v1380_v12  ;;  %v1198_v48 = vor.u32 %v1196_v58, %v1195_v38  ;;  %v1200_v45 = vrot.slane %v1195_v38, 4  ;;  %v1178_v51 = vrot.slane %v1176_v50, 7 }
 0x175   : > { %1382 = vst [vmem:[#allocation2 + $0xa8] sm:$0xf] %v1381_v61  ;;  %v1374_v3 = vsel %vm6049_vm5, %v1173_v40, %v1373_v10  ;;  %v1219_v28 = vshrl.u32 %v4444_v60, 16  ;;  %v1222_v53 = vshll.u32 %v4444_v60, 16  ;;  %v806_v39 = vmul.f32 %v5635_v5, %v6247_v56  ;;  %v1394_v58 = vld [vmem:[#allocation2 + $0xc0] sm:$0xf] }
 0x176   : > { %1375 = vst [vmem:[#allocation2 + $0x9c] sm:$0xf] %v1374_v3  ;;  %v1199_v16 = vsel %vm6055_vm6, %v1191_v23, %v1198_v48  ;;  %v1385_v22 = vsel %vm6062_vm7, %v1200_v45, %v1384_v30  ;;  %v1181_v9 = vor.u32 %v1179_v27, %v1178_v51  ;;  %v1183_v59 = vrot.slane %v1178_v51, 4  ;;  %v6497_v50 = vld [vmem:[#allocation2 + $0x5c] ss:$0 sps:$4 sm:$0x11]   ;;  %4876 = vmatpush3.bf16.msra.mxu1 %v5474_v6 }
 0x177   : > { %1383 = vst [vmem:[#allocation2 + $0xac] sm:$0xf] %v1199_v16  ;;  %1386 = vst [vmem:[#allocation2 + $0xb0] sm:$0x1] %v1385_v22  ;;  %v6460_v29 = vrot.slane %v1219_v28, 7  ;;  %v4442_v56 = vpack.c.bf16 %v806_v39, %v806_v39  ;;  %v809_v5 = vmul.f32 %v5637_v36, %v6259_v49  ;;  %v711_v55 = vadd.f32 1.0, %v5639_v52 }
 0x178   : > { %v1182_v7 = vsel %vm6055_vm6, %v1174_v11, %v1181_v9  ;;  %v1378_v34 = vsel %vm6062_vm7, %v1183_v59, %v1377_v32  ;;  %v6473_v60 = vsel %vm1599_vm9, %v6421_v8, %v6423_v21  ;;  %v6480_v49 = vsel %vm1808_vm8, %v1824_v2, %v1825_v37  ;;  %v5476_v36 = vld [vmem:[%s7468_s3 + $0x1e0] sm:$0xff]   ;;  %v6488_v8 = vld [vmem:[#allocation2 + $0x54] sm:$0xff]   ;;  %v6507_v27 = vld [vmem:[#allocation2 + $0x6c] sm:$0xff]  }
 0x179   : > { %1376 = vst [vmem:[#allocation2 + $0xa0] sm:$0xf] %v1182_v7  ;;  %1379 = vst [vmem:[#allocation2 + $0xa4] sm:$0x1] %v1378_v34  ;;  %v1224_v52 = vor.u32 %v1222_v53, %v6460_v29  ;;  %v1202_v4 = vshrl.u32 %v4442_v56, 16  ;;  %2188 = vmatprep.mubr.bf16.mxu1 %v6473_v60  ;;  %5077 = vmatprep.mubr.bf16.mxu0 %v6480_v49  ;;  %v6490_v21 = vld [vmem:[#allocation2 + $0x60] sm:$0xff]   ;;  %v4445_v37 = vpack.c.bf16 %v809_v5, %v809_v5 }
 0x17a   : > { %v1387_v2 = vld [vmem:[#allocation2 + $0xb4] sm:$0xf]  ;;  %5640 = vrcp.f32 %v711_v55  ;;  %v1827_v12 = vrot.slane %v6456_v63, 1  ;;  %v1828_v57 = vrot.slane %v6458_v25, 1  ;;  %2189 = vmatmul.mubr.bf16.gmra.mrb[40].mxu1 %v6343_v26  ;;  %v1205_v10 = vshll.u32 %v4442_v56, 16  ;;  %4877 = vmatprep.subr.bf16.mxu1 %v5476_v36  ;;  %v5478_v11 = vld [vmem:[%s7468_s3 + $0x1e8] sm:$0xff]  }
 0x17b   : > { %v1395_v0 = vsel %vm6049_vm5, %v1224_v52, %v1394_v58  ;;  %v6504_v23 = vrot.slane %v1202_v4, 7  ;;  %v1651_v38 = vshll.u32 %v6353_v41, 16  ;;  %v1225_v44 = vrot.slane %v6460_v29, 4  ;;  %v1398_v61 = vld [vmem:[#allocation2 + $0xc8] sm:$0x1]  ;;  %4878 = vmatpush3.bf16.msra.mxu1 %v5477_v15  ;;  %v5480_v29 = vld [vmem:[%s7468_s3 + $0x1f0] sm:$0xff]  }
 0x17c   : > { %1396 = vst [vmem:[#allocation2 + $0xc0] sm:$0xf] %v1395_v0  ;;  %v1227_v46 = vshrl.u32 %v4445_v37, 16  ;;  %v6511_v31 = vsel %vm1808_vm8, %v1827_v12, %v1828_v57  ;;  %v1656_v40 = vshll.u32 %v6357_v47, 16  ;;  %v1649_v48 = vshrl.u32 %v6353_v41, 16  ;;  %v5479_v39 = vld [vmem:[%s7468_s3 + $0x1a8] sm:$0xff]   ;;  %4879 = vmatprep.subr.bf16.mxu1 %v5478_v11 }
 0x17d   : > { %v1207_v30 = vor.u32 %v1205_v10, %v6504_v23  ;;  %5078 = vmatmul.mubr.bf16.gmra.mrb[8].mxu0 %v6511_v31  ;;  %v1653_v45 = vrot.slane %v1651_v38, 1  ;;  %v1830_v51 = vrot.slane %v6488_v8, 1  ;;  %v6521_v3 = vld [vmem:[#allocation2 + $0x74] ss:$0 sps:$4 sm:$0x11]   ;;  %v1230_v28 = vshll.u32 %v4445_v37, 16 }
 0x17e   : > { %v1229_v32 = vrot.slane %v1227_v46, 7  ;;  %v1658_v47 = vrot.slane %v1656_v40, 1  ;;  %v1831_v53 = vrot.slane %v6497_v50, 1  ;;  %v1833_v9 = vrot.slane %v6490_v21, 1  ;;  %v6553_v12 = vld [vmem:[#allocation2 + $0x84] sm:$0xff]   ;;  %v6559_v57 = vld [vmem:[#allocation2 + $0x78] sm:$0xff]  }
 0x17f   : > { %v1388_v16 = vsel %vm6049_vm5, %v1207_v30, %v1387_v2  ;;  %v1654_v22 = vor.u32 %v1653_v45, %v1649_v48  ;;  %v1834_v59 = vrot.slane %v6492_v54, 1  ;;  %v1663_v6 = vshll.u32 %v6373_v62, 16  ;;  %v6545_v36 = vld [vmem:[#allocation2 + $0x8c] ss:$0 sps:$4 sm:$0x11]   ;;  %4880 = vmatpush3.bf16.msra.mxu1 %v5479_v39  ;;  %v5481_v40 = vld [vmem:[%s7468_s3 + $0x1b0] sm:$0xff]  }
 0x180   : > { %1389 = vst [vmem:[#allocation2 + $0xb4] sm:$0xf] %v1388_v16  ;;  %v1232_v56 = vor.u32 %v1230_v28, %v1229_v32  ;;  %v1234_v5 = vrot.slane %v1229_v32, 4  ;;  %v6535_v55 = vsel %vm1808_vm8, %v1830_v51, %v1831_v53  ;;  %v1661_v7 = vshrl.u32 %v6373_v62, 16  ;;  %4881 = vmatprep.subr.bf16.mxu1 %v5480_v29  ;;  %v5483_v48 = vld [vmem:[%s7468_s3 + $0x1f8] sm:$0xff]  }
 0x181   : > { %v6539_v24 = vsel %vm1599_vm9, %v1654_v22, %v1658_v47  ;;  %5081 = vmatprep.mubr.bf16.mxu0 %v6535_v55  ;;  %v1668_v34 = vshll.u32 %v6368_v19, 16  ;;  %v1836_v58 = vrot.slane %v6507_v27, 1  ;;  %v1665_v2 = vrot.slane %v1663_v6, 1  ;;  %v5484_v16 = vld [vmem:[%s7468_s3 + $0x1b8] sm:$0xff]  }
 0x182   : > { %v1233_v52 = vsel %vm6055_vm6, %v1225_v44, %v1232_v56  ;;  %v1399_v4 = vsel %vm6062_vm7, %v1234_v5, %v1398_v61  ;;  %2196 = vmatprep.mubr.bf16.mxu1 %v6539_v24  ;;  %v1837_v37 = vrot.slane %v6521_v3, 1  ;;  %v6556_v19 = vsel %vm1808_vm8, %v1833_v9, %v1834_v59  ;;  %v6564_v44 = vld [vmem:[#allocation2 + $0x80] ss:$0 sps:$4 sm:$0x11]   ;;  %v1391_v59 = vld [vmem:[#allocation2 + $0xbc] sm:$0x1] }
 0x183   : > { %1397 = vst [vmem:[#allocation2 + $0xc4] sm:$0xf] %v1233_v52  ;;  %1400 = vst [vmem:[#allocation2 + $0xc8] sm:$0x1] %v1399_v4  ;;  %2197 = vmatmul.mubr.bf16.gmra.mrb[44].mxu1 %v6353_v41  ;;  %v1666_v0 = vor.u32 %v1665_v2, %v1661_v7  ;;  %v1670_v10 = vrot.slane %v1668_v34, 1  ;;  %v1675_v46 = vshll.u32 %v6456_v63, 16 }
 0x184   : > { %v5641_v15 = vpop.eup %5640  ;;  %v6562_v38 = vsel %vm1808_vm8, %v1836_v58, %v1837_v37  ;;  %v1673_v30 = vshrl.u32 %v6456_v63, 16  ;;  %v1680_v61 = vshll.u32 %v6458_v25, 16  ;;  %v1842_v32 = vrot.slane %v6553_v12, 1  ;;  %4882 = vmatpush3.bf16.msra.mxu1 %v5481_v40  ;;  %v6593_v56 = vld [vmem:[#allocation2 + $0x9c] sm:$0xff]   ;;  %v6606_v2 = vld [vmem:[#allocation2 + $0x90] sm:$0xff]  }
 0x185   : > { %v807_v11 = vmul.f32 %v5641_v15, %v6265_v18  ;;  %5082 = vmatmul.mubr.bf16.gmra.mrb[12].mxu0 %v6556_v19  ;;  %v6578_v45 = vsel %vm1599_vm9, %v1666_v0, %v1670_v10  ;;  %v1677_v51 = vrot.slane %v1675_v46, 1  ;;  %v1843_v18 = vrot.slane %v6545_v36, 1  ;;  %4883 = vmatprep.subr.bf16.mxu1 %v5483_v48  ;;  %v6595_v5 = vld [vmem:[#allocation2 + $0xa4] ss:$0 sps:$4 sm:$0x11]  }
 0x186   : > { %5085 = vmatprep.mubr.bf16.mxu0 %v6562_v38  ;;  %2204 = vmatprep.mubr.bf16.mxu1 %v6578_v45  ;;  %v1839_v25 = vrot.slane %v6559_v57, 1  ;;  %v1840_v47 = vrot.slane %v6564_v44, 1  ;;  %v1687_v39 = vshll.u32 %v6488_v8, 16  ;;  %v1682_v9 = vrot.slane %v1680_v61, 1 }
 0x187   : > { %v4443_v28 = vpack.c.bf16 %v807_v11, %v807_v11  ;;  %v1678_v53 = vor.u32 %v1677_v51, %v1673_v30  ;;  %v6591_v29 = vsel %vm1808_vm8, %v1842_v32, %v1843_v18  ;;  %v1208_v52 = vrot.slane %v6504_v23, 4  ;;  %v6608_v37 = vld [vmem:[#allocation2 + $0x98] ss:$0 sps:$4 sm:$0x11]  }
 0x188   : > { %v1689_v58 = vrot.slane %v1687_v39, 1  ;;  %v6603_v4 = vsel %vm1808_vm8, %v1839_v25, %v1840_v47  ;;  %4884 = vmatpush3.bf16.msra.mxu1 %v5484_v16  ;;  %v1685_v10 = vshrl.u32 %v6488_v8, 16  ;;  %v1692_v46 = vshll.u32 %v6497_v50, 16  ;;  %v6634_v47 = vld [vmem:[#allocation2 + $0xa8] sm:$0xff]  }
 0x189   : > { %v1210_v22 = vshrl.u32 %v4443_v28, 16  ;;  %v1213_v7 = vshll.u32 %v4443_v28, 16  ;;  %v6599_v34 = vsel %vm1599_vm9, %v1678_v53, %v1682_v9  ;;  %v1848_v23 = vrot.slane %v6593_v56, 1  ;;  %v5464_v28 = vld [vmem:[#allocation2] sm:$0xff]  }
 0x18a   : > { %v1849_v40 = vrot.slane %v6595_v5, 1  ;;  %v1690_v61 = vor.u32 %v1689_v58, %v1685_v10  ;;  %v1699_v48 = vshll.u32 %v6490_v21, 16  ;;  %v1845_v51 = vrot.slane %v6606_v2, 1  ;;  %v6636_v53 = vld [vmem:[#allocation2 + $0xb0] ss:$0 sps:$4 sm:$0x11]  }
 0x18b   : > { %v1212_v6 = vrot.slane %v1210_v22, 7  ;;  %2205 = vmatmul.mubr.bf16.gmra.mrb[48].mxu1 %v6373_v62  ;;  %v1846_v50 = vrot.slane %v6608_v37, 1  ;;  %v1694_v32 = vrot.slane %v1692_v46, 1  ;;  %v1697_v39 = vshrl.u32 %v6490_v21, 16 }
 0x18c   : > { %2212 = vmatprep.mubr.bf16.mxu1 %v6599_v34  ;;  %v6628_v35 = vsel %vm1808_vm8, %v1848_v23, %v1849_v40  ;;  %v1701_v43 = vrot.slane %v1699_v48, 1  ;;  %v1704_v16 = vshll.u32 %v6492_v54, 16  ;;  %v1711_v22 = vshll.u32 %v6507_v27, 16  ;;  %v5465_v9 = vld [vmem:[#allocation2 + $0x8] ss:$0 sps:$4 sm:$0x11]  }
 0x18d   : > { %v1215_v15 = vor.u32 %v1213_v7, %v1212_v6  ;;  %v1217_v0 = vrot.slane %v1212_v6, 4  ;;  %5086 = vmatmul.mubr.bf16.gmra.mrb[16].mxu0 %v6603_v4  ;;  %v6625_v18 = vsel %vm1599_vm9, %v1690_v61, %v1694_v32  ;;  %v6631_v25 = vsel %vm1808_vm8, %v1845_v51, %v1846_v50  ;;  %v6662_v51 = vld [vmem:[#allocation2 + $0xc0] sm:$0xff]   ;;  %v6664_v50 = vld [vmem:[#allocation2 + $0xc8] ss:$0 sps:$4 sm:$0x11]  }
 0x18e   : > { %5089 = vmatprep.mubr.bf16.mxu0 %v6591_v29  ;;  %v1603_v7 = vshll.u32 %v5464_v28, 16  ;;  %v1851_v58 = vrot.slane %v6634_v47, 1  ;;  %v1601_v46 = vshrl.u32 %v5464_v28, 16  ;;  %v1713_v40 = vrot.slane %v1711_v22, 1 }
 0x18f   : > { %v1216_v11 = vsel %vm6055_vm6, %v1208_v52, %v1215_v15  ;;  %v1392_v30 = vsel %vm6062_vm7, %v1217_v0, %v1391_v59  ;;  %v1702_v59 = vor.u32 %v1701_v43, %v1697_v39  ;;  %v1852_v52 = vrot.slane %v6636_v53, 1 }
 0x190   : > { %1390 = vst [vmem:[#allocation2 + $0xb8] sm:$0xf] %v1216_v11  ;;  %1393 = vst [vmem:[#allocation2 + $0xbc] sm:$0x1] %v1392_v30  ;;  %v1706_v0 = vrot.slane %v1704_v16, 1  ;;  %v1605_v11 = vrot.slane %v1603_v7, 1 }
 0x191   : > { %v1608_v30 = vshll.u32 %v5465_v9, 16  ;;  %v6656_v61 = vsel %vm1808_vm8, %v1851_v58, %v1852_v52  ;;  %v1709_v32 = vshrl.u32 %v6507_v27, 16  ;;  %v1716_v43 = vshll.u32 %v6521_v3, 16 }
 0x192   : > { %v6653_v23 = vsel %vm1599_vm9, %v1702_v59, %v1706_v0  ;;  %v1606_v16 = vor.u32 %v1605_v11, %v1601_v46  ;;  %v1723_v59 = vshll.u32 %v6559_v57, 16  ;;  %v1943_v7 = vrot.slane %v6662_v51, 1 }
 0x193   : > { %2213 = vmatmul.mubr.bf16.gmra.mrb[52].mxu1 %v6456_v63  ;;  %v1714_v39 = vor.u32 %v1713_v40, %v1709_v32  ;;  %v1610_v22 = vrot.slane %v1608_v30, 1  ;;  %v1944_v58 = vrot.slane %v6664_v50, 1  ;;  %v1718_v52 = vrot.slane %v1716_v43, 1 }
 0x194   : > { %2220 = vmatprep.mubr.bf16.mxu1 %v6625_v18  ;;  %v1725_v3 = vrot.slane %v1723_v59, 1  ;;  %v1721_v46 = vshrl.u32 %v6559_v57, 16  ;;  %v1728_v40 = vshll.u32 %v6564_v44, 16  ;;  %v1809_v11 = vrot.slane %v5464_v28, 1  ;;  %v5469_v44 = vld [vmem:[%s7468_s3 + $0x88] sm:$0xff]  }
 0x195   : > { %5090 = vmatmul.mubr.bf16.gmra.mrb[20].mxu0 %v6631_v25  ;;  %v6675_v0 = vsel %vm1599_vm9, %v1714_v39, %v1718_v52  ;;  %v1810_v30 = vrot.slane %v5465_v9, 1  ;;  %v1735_v43 = vshll.u32 %v6553_v12, 16  ;;  %v1733_v9 = vshrl.u32 %v6553_v12, 16 }
 0x196   : > { %5093 = vmatprep.mubr.bf16.mxu0 %v6628_v35  ;;  %v1726_v32 = vor.u32 %v1725_v3, %v1721_v46  ;;  %v1747_v52 = vshll.u32 %v6606_v2, 16  ;;  %v1745_v46 = vshrl.u32 %v6606_v2, 16 }
 0x197   : > { %v6643_v6 = vld [vmem:[#allocation2 + $0xb4] sm:$0xff]   ;;  %v6647_v15 = vld [vmem:[#allocation2 + $0xbc] ss:$0 sps:$4 sm:$0x11]   ;;  %v6687_v39 = vsel %vm1808_vm8, %v1809_v11, %v1810_v30  ;;  %v1737_v59 = vrot.slane %v1735_v43, 1  ;;  %v1759_v30 = vshll.u32 %v6593_v56, 16 }
 0x198   : > { %v1854_v10 = vrot.slane %v6643_v6, 1  ;;  %v1855_v54 = vrot.slane %v6647_v15, 1 }
 0x19a   : > { %v6660_v48 = vsel %vm1808_vm8, %v1854_v10, %v1855_v54  ;;  %v1611_v10 = vsel %vm1599_vm9, %v1606_v16, %v1610_v22  ;;  %v6679_v54 = vsel %vm1808_vm8, %v1943_v7, %v1944_v58  ;;  %v1730_v16 = vrot.slane %v1728_v40, 1 }
 0x19b   : > { %2221 = vmatmul.mubr.bf16.gmra.mrb[56].mxu1 %v6488_v8  ;;  %v1740_v7 = vshll.u32 %v6545_v36, 16  ;;  %v1738_v58 = vor.u32 %v1737_v59, %v1733_v9  ;;  %v1749_v36 = vrot.slane %v1747_v52, 1  ;;  %v1752_v40 = vshll.u32 %v6608_v37, 16  ;;  %v5485_v37 = vld [vmem:[%s7468_s3 + $0xa8] sm:$0xff]  }
 0x19c   : > { %2228 = vmatprep.mubr.bf16.mxu1 %v6653_v23  ;;  %v6691_v22 = vsel %vm1599_vm9, %v1726_v32, %v1730_v16  ;;  %v5482_v32 = vld [vmem:[%s7468_s3 + $0xa0] sm:$0xff]   ;;  %v1761_v59 = vrot.slane %v1759_v30, 1  ;;  %v1757_v9 = vshrl.u32 %v6593_v56, 16  ;;  %v1771_v52 = vshll.u32 %v6634_v47, 16 }
 0x19d   : > { %5094 = vmatmul.mubr.bf16.gmra.mrb[24].mxu0 %v6656_v61  ;;  %v1742_v3 = vrot.slane %v1740_v7, 1  ;;  %v1750_v11 = vor.u32 %v1749_v36, %v1745_v46  ;;  %v1754_v43 = vrot.slane %v1752_v40, 1  ;;  %v1764_v7 = vshll.u32 %v6595_v5, 16  ;;  %v5487_v5 = vld [vmem:[%s7468_s3 + $0xb8] sm:$0xff]   ;;  %v6751_v30 = vld [vmem:[%s7468_s3 + $0x200] sm:$0xff]  }
 0x19e   : > { %5097 = vmatprep.mubr.bf16.mxu0 %v6660_v48  ;;  %v1776_v46 = vshll.u32 %v6636_v53, 16 }
 0x19f   : > { %v6722_v16 = vsel %vm1599_vm9, %v1750_v11, %v1754_v43  ;;  %v1783_v11 = vshll.u32 %v6643_v6, 16 }
 0x1a1   : > { %v1785_v53 = vrot.slane %v1783_v11, 1 }
 0x1a3   : > { %2229 = vmatmul.mubr.bf16.gmra.mrb[60].mxu1 %v6490_v21 }
 0x1a4   : > { %2236 = vmatprep.mubr.bf16.mxu1 %v6675_v0 }
 0x1a5   : > { %5098 = vmatmul.mubr.bf16.gmra.mrb[28].mxu0 %v6679_v54 }
 0x1a6   : > { %2638 = vmatprep.mubr.bf16.mxu0 %v1611_v10  ;;  %v5472_v10 = vld [vmem:[%s7468_s3 + $0x90] sm:$0xff]  }
 0x1ab   : > { %2237 = vmatmul.mubr.bf16.gmra.mrb[64].mxu1 %v6507_v27 }
 0x1ac   : > { %2244 = vmatprep.mubr.bf16.mxu1 %v6691_v22 }
 0x1ad   : > { %2639 = vmatmul.mubr.bf16.vlgmr.msra.gmra.mrb[32].mxu0 %v5464_v28  ;;  %v6707_v28 = vsel %vm1599_vm9, %v1738_v58, %v1742_v3  ;;  %v1762_v58 = vor.u32 %v1761_v59, %v1757_v9  ;;  %v1766_v3 = vrot.slane %v1764_v7, 1  ;;  %v1781_v59 = vshrl.u32 %v6643_v6, 16 }
 0x1ae   : > { %5102 = vmatpush3.bf16.msra.mxu0 %v6403_v17  ;;  %2646 = vmatprep.mubr.bf16.mxu0 %v6382_v20  ;;  %v5475_v20 = vld [vmem:[%s7468_s3 + $0x98] sm:$0xff]   ;;  %v5770_v17 = vld [vmem:[#allocation2 + $0xc] sm:$0xff]   ;;  %v1933_v7 = vshll.u32 %v6662_v51, 16 }
 0x1af   : > { %5103 = vmatprep.subr.bf16.mxu0 %v5469_v44  ;;  %v6737_v36 = vsel %vm1599_vm9, %v1762_v58, %v1766_v3  ;;  %v1786_v9 = vor.u32 %v1785_v53, %v1781_v59  ;;  %v1931_v3 = vshrl.u32 %v6662_v51, 16 }
 0x1b2   : > { %5104 = vmatpush3.bf16.msra.mxu0 %v5469_v44  ;;  %v5771_v44 = vld [vmem:[#allocation2 + $0x18] sm:$0xff]  }
 0x1b3   : > { %2245 = vmatmul.mubr.bf16.gmra.mrb[68].mxu1 %v6559_v57  ;;  %5105 = vmatprep.subr.bf16.mxu0 %v5472_v10 }
 0x1b4   : > { %2252 = vmatprep.mubr.bf16.mxu1 %v6707_v28 }
 0x1b5   : > { %2647 = vmatmul.mubr.bf16.gmra.mrb[36].mxu0 %v5770_v17  ;;  %v1769_v17 = vshrl.u32 %v6634_v47, 16 }
 0x1b6   : > { %2654 = vmatprep.mubr.bf16.mxu0 %v6415_v42  ;;  %5106 = vmatpush3.bf16.msra.mxu0 %v5472_v10  ;;  %v5486_v10 = vld [vmem:[%s7468_s3 + $0xb0] sm:$0xff]  }
 0x1b7   : > { %5107 = vmatprep.subr.bf16.mxu0 %v5475_v20 }
 0x1ba   : > { %5108 = vmatpush3.bf16.msra.mxu0 %v5475_v20  ;;  %v1773_v20 = vrot.slane %v1771_v52, 1 }
 0x1bb   : > { %2253 = vmatmul.mubr.bf16.gmra.mrb[72].mxu1 %v6553_v12  ;;  %5109 = vmatprep.subr.bf16.mxu0 %v5482_v32 }
 0x1bc   : > { %2260 = vmatprep.mubr.bf16.mxu1 %v6722_v16  ;;  %v1774_v40 = vor.u32 %v1773_v20, %v1769_v17 }
 0x1bd   : > { %2655 = vmatmul.mubr.bf16.gmra.mrb[40].mxu0 %v5771_v44 }
 0x1be   : > { %2662 = vmatprep.mubr.bf16.mxu0 %v6473_v60  ;;  %5110 = vmatpush3.bf16.msra.mxu0 %v5482_v32  ;;  %v1778_v32 = vrot.slane %v1776_v46, 1 }
 0x1bf   : > { %5111 = vmatprep.subr.bf16.mxu0 %v5485_v37 }
 0x1c0   : > { %v6755_v43 = vsel %vm1599_vm9, %v1774_v40, %v1778_v32 }
 0x1c2   : > { %5112 = vmatpush3.bf16.msra.mxu0 %v5485_v37  ;;  %v1788_v37 = vshll.u32 %v6647_v15, 16  ;;  %v1938_v15 = vshll.u32 %v6664_v50, 16  ;;  %v6861_v50 = vld [vmem:[#allocation2 + $0xcc] sm:$0xff]  }
 0x1c3   : > { %2261 = vmatmul.mubr.bf16.gmra.mrb[76].mxu1 %v6606_v2  ;;  %5113 = vmatprep.subr.bf16.mxu0 %v5486_v10 }
 0x1c4   : > { %2268 = vmatprep.mubr.bf16.mxu1 %v6737_v36  ;;  %v1790_v58 = vrot.slane %v1788_v37, 1 }
 0x1c5   : > { %2663 = vmatmul.mubr.bf16.gmra.mrb[44].mxu0 %v6343_v26 }
 0x1c6   : > { %2670 = vmatprep.mubr.bf16.mxu0 %v6539_v24  ;;  %5114 = vmatpush3.bf16.msra.mxu0 %v5486_v10  ;;  %v6766_v52 = vsel %vm1599_vm9, %v1786_v9, %v1790_v58  ;;  %v1935_v10 = vrot.slane %v1933_v7, 1 }
 0x1c7   : > { %5115 = vmatprep.subr.bf16.mxu0 %v5487_v5 }
 0x1c8   : > { %v1936_v20 = vor.u32 %v1935_v10, %v1931_v3 }
 0x1ca   : > { %5116 = vmatpush3.bf16.msra.mxu0 %v5487_v5  ;;  %v1940_v5 = vrot.slane %v1938_v15, 1 }
 0x1cb   : > { %2269 = vmatmul.mubr.bf16.gmra.mrb[80].mxu1 %v6593_v56  ;;  %5149 = vmatprep.subr.bf16.mxu0 %v6751_v30 }
 0x1cc   : > { %2276 = vmatprep.mubr.bf16.mxu1 %v6755_v43  ;;  %v6775_v17 = vsel %vm1599_vm9, %v1936_v20, %v1940_v5 }
 0x1cd   : > { %2671 = vmatmul.mubr.bf16.gmra.mrb[48].mxu0 %v6353_v41 }
 0x1ce   : > { %2678 = vmatprep.mubr.bf16.mxu0 %v6578_v45 }
 0x1d3   : > { %2277 = vmatmul.mubr.bf16.gmra.mrb[84].mxu1 %v6634_v47 }
 0x1d4   : > { %2284 = vmatprep.mubr.bf16.mxu1 %v6766_v52 }
 0x1d5   : > { %2679 = vmatmul.mubr.bf16.gmra.mrb[52].mxu0 %v6373_v62 }
 0x1d6   : > { %2686 = vmatprep.mubr.bf16.mxu0 %v6599_v34 }
 0x1db   : > { %2285 = vmatmul.mubr.bf16.gmra.mrb[88].mxu1 %v6643_v6 }
 0x1dc   : > { %2292 = vmatprep.mubr.bf16.mxu1 %v6775_v17 }
 0x1dd   : > { %2687 = vmatmul.mubr.bf16.gmra.mrb[56].mxu0 %v6456_v63 }
 0x1de   : > { %2694 = vmatprep.mubr.bf16.mxu0 %v6625_v18 }
 0x1e3   : > { %2293 = vmatmul.mubr.bf16.gmra.mrb[92].mxu1 %v6662_v51 }
 0x1e4   : > { %3179 = vmatprep.mubr.bf16.mxu1 %v6415_v42  ;;  %v5493_v42 = vld [vmem:[%s7468_s3 + $0x228] sm:$0xff]  }
 0x1e5   : > { %2695 = vmatmul.mubr.bf16.gmra.mrb[60].mxu0 %v6488_v8 }
 0x1e6   : > { %2702 = vmatprep.mubr.bf16.mxu0 %v6653_v23 }
 0x1eb   : > { %3180 = vmatmul.mubr.bf16.vlgmr.msra.gmra.mrb[96].mxu1 %v5771_v44 }
 0x1ec   : > { %3187 = vmatprep.mubr.bf16.mxu1 %v6473_v60 }
 0x1ed   : > { %2703 = vmatmul.mubr.bf16.gmra.mrb[64].mxu0 %v6490_v21 }
 0x1ee   : > { %2710 = vmatprep.mubr.bf16.mxu0 %v6675_v0 }
 0x1f3   : > { %3188 = vmatmul.mubr.bf16.gmra.mrb[100].mxu1 %v6343_v26  ;;  %v5489_v26 = vld [vmem:[%s7468_s3 + $0x208] sm:$0xff]  }
 0x1f4   : > { %3195 = vmatprep.mubr.bf16.mxu1 %v6539_v24 }
 0x1f5   : > { %2711 = vmatmul.mubr.bf16.gmra.mrb[68].mxu0 %v6507_v27 }
 0x1f6   : > { %2718 = vmatprep.mubr.bf16.mxu0 %v6691_v22 }
 0x1fb   : > { %3196 = vmatmul.mubr.bf16.gmra.mrb[104].mxu1 %v6353_v41  ;;  %v5490_v41 = vld [vmem:[%s7468_s3 + $0x210] sm:$0xff]  }
 0x1fc   : > { %3203 = vmatprep.mubr.bf16.mxu1 %v6578_v45 }
 0x1fd   : > { %2719 = vmatmul.mubr.bf16.gmra.mrb[72].mxu0 %v6559_v57 }
 0x1fe   : > { %2726 = vmatprep.mubr.bf16.mxu0 %v6707_v28 }
 0x203   : > { %3204 = vmatmul.mubr.bf16.gmra.mrb[108].mxu1 %v6373_v62  ;;  %v5491_v62 = vld [vmem:[%s7468_s3 + $0x218] sm:$0xff]  }
 0x204   : > { %3211 = vmatprep.mubr.bf16.mxu1 %v6599_v34 }
 0x205   : > { %2727 = vmatmul.mubr.bf16.gmra.mrb[76].mxu0 %v6553_v12 }
 0x206   : > { %2734 = vmatprep.mubr.bf16.mxu0 %v6722_v16 }
 0x20b   : > { %3212 = vmatmul.mubr.bf16.gmra.mrb[112].mxu1 %v6456_v63 }
 0x20c   : > { %3219 = vmatprep.mubr.bf16.mxu1 %v6625_v18 }
 0x20d   : > { %2735 = vmatmul.mubr.bf16.gmra.mrb[80].mxu0 %v6606_v2 }
 0x20e   : > { %2742 = vmatprep.mubr.bf16.mxu0 %v6737_v36 }
 0x213   : > { %3220 = vmatmul.mubr.bf16.gmra.mrb[116].mxu1 %v6488_v8 }
 0x214   : > { %3227 = vmatprep.mubr.bf16.mxu1 %v6653_v23 }
 0x215   : > { %2743 = vmatmul.mubr.bf16.gmra.mrb[84].mxu0 %v6593_v56 }
 0x216   : > { %2750 = vmatprep.mubr.bf16.mxu0 %v6755_v43 }
 0x21b   : > { %3228 = vmatmul.mubr.bf16.gmra.mrb[120].mxu1 %v6490_v21 }
 0x21c   : > { %3235 = vmatprep.mubr.bf16.mxu1 %v6675_v0 }
 0x21d   : > { %2751 = vmatmul.mubr.bf16.gmra.mrb[88].mxu0 %v6634_v47 }
 0x21e   : > { %2758 = vmatprep.mubr.bf16.mxu0 %v6766_v52 }
 0x223   : > { %3236 = vmatmul.mubr.bf16.gmra.mrb[124].mxu1 %v6507_v27  ;;  %v5494_v27 = vld [vmem:[%s7468_s3 + $0x230] sm:$0xff]  }
 0x224   : > { %3243 = vmatprep.mubr.bf16.mxu1 %v6691_v22  ;;  %v2940_v22 = vshll.u32 %v6861_v50, 16 }
 0x225   : > { %2759 = vmatmul.mubr.bf16.gmra.mrb[92].mxu0 %v6643_v6 }
 0x226   : > { %5117 = vmatprep.mubr.bf16.mxu0 %v6687_v39  ;;  %v6866_v39 = vld [vmem:[#allocation2 + $0xd4] ss:$0 sps:$4 sm:$0x11]   ;;  %v2942_v40 = vrot.slane %v2940_v22, 1 }
 0x227   : > { %v2945_v11 = vshll.u32 %v6866_v39, 16 }
 0x229   : > { %v2947_v32 = vrot.slane %v2945_v11, 1 }
 0x22b   : > { %3244 = vmatmul.mubr.bf16.gmra.mrb[128].mxu1 %v6559_v57  ;;  %v5495_v57 = vld [vmem:[%s7468_s3 + $0x238] sm:$0xff]  }
 0x22c   : > { %3251 = vmatprep.mubr.bf16.mxu1 %v6707_v28 }
 0x22d   : > { %5118 = vmatmul.mubr.bf16.vlgmr.msra.gmra.mrb[0].mxu0 %v6251_v33  ;;  %v5492_v33 = vld [vmem:[%s7468_s3 + $0x220] sm:$0xff]  }
 0x22e   : > { %5150 = vmatpush3.bf16.msra.mxu0 %v6751_v30  ;;  %5121 = vmatprep.mubr.bf16.mxu0 %v6272_v1 }
 0x22f   : > { %5151 = vmatprep.subr.bf16.mxu0 %v5489_v26 }
 0x232   : > { %5152 = vmatpush3.bf16.msra.mxu0 %v5489_v26 }
 0x233   : > { %3252 = vmatmul.mubr.bf16.gmra.mrb[132].mxu1 %v6553_v12  ;;  %5153 = vmatprep.subr.bf16.mxu0 %v5490_v41 }
 0x234   : > { %3259 = vmatprep.mubr.bf16.mxu1 %v6722_v16 }
 0x235   : > { %5122 = vmatmul.mubr.bf16.gmra.mrb[4].mxu0 %v6392_v13 }
 0x236   : > { %5125 = vmatprep.mubr.bf16.mxu0 %v6395_v14  ;;  %5154 = vmatpush3.bf16.msra.mxu0 %v5490_v41 }
 0x237   : > { %5155 = vmatprep.subr.bf16.mxu0 %v5491_v62 }
 0x23a   : > { %5156 = vmatpush3.bf16.msra.mxu0 %v5491_v62 }
 0x23b   : > { %3260 = vmatmul.mubr.bf16.gmra.mrb[136].mxu1 %v6606_v2  ;;  %5157 = vmatprep.subr.bf16.mxu0 %v5492_v33 }
 0x23c   : > { %3267 = vmatprep.mubr.bf16.mxu1 %v6737_v36  ;;  %v4613_v63 = vpop.f32.mrb[32].mxu1 }
 0x23d   : > { %5126 = vmatmul.mubr.bf16.gmra.mrb[8].mxu0 %v6480_v49  ;;  %v4614_v60 = vpop.f32.mrb[33].mxu1 }
 0x23e   : > { %5129 = vmatprep.mubr.bf16.mxu0 %v6511_v31  ;;  %5158 = vmatpush3.bf16.msra.mxu0 %v5492_v33  ;;  %v6843_v8 = vadd.f32 %v4614_v60, %v4613_v63  ;;  %v4616_v21 = vpop.f32.mrb[34].mxu1 }
 0x23f   : > { %5159 = vmatprep.subr.bf16.mxu0 %v5493_v42  ;;  %v4617_v24 = vpop.f32.mrb[35].mxu1 }
 0x240   : > { %v6848_v12 = vadd.f32 %v4617_v24, %v4616_v21 }
 0x242   : > { %5160 = vmatpush3.bf16.msra.mxu0 %v5493_v42 }
 0x243   : > { %3268 = vmatmul.mubr.bf16.gmra.mrb[140].mxu1 %v6593_v56  ;;  %5161 = vmatprep.subr.bf16.mxu0 %v5494_v27 }
 0x244   : > { %3275 = vmatprep.mubr.bf16.mxu1 %v6755_v43  ;;  %v4619_v45 = vpop.f32.mrb[36].mxu1 }
 0x245   : > { %5130 = vmatmul.mubr.bf16.gmra.mrb[12].mxu0 %v6535_v55  ;;  %v4620_v34 = vpop.f32.mrb[37].mxu1 }
 0x246   : > { %5133 = vmatprep.mubr.bf16.mxu0 %v6556_v19  ;;  %5162 = vmatpush3.bf16.msra.mxu0 %v5494_v27  ;;  %v6857_v2 = vadd.f32 %v4620_v34, %v4619_v45  ;;  %v4622_v18 = vpop.f32.mrb[38].mxu1 }
 0x247   : > { %5163 = vmatprep.subr.bf16.mxu0 %v5495_v57  ;;  %v4623_v23 = vpop.f32.mrb[39].mxu1 }
 0x248   : > { %v6859_v56 = vadd.f32 %v4623_v23, %v4622_v18 }
 0x24a   : > { %5164 = vmatpush3.bf16.msra.mxu0 %v5495_v57 }
 0x24b   : > { %3276 = vmatmul.mubr.bf16.gmra.mrb[144].mxu1 %v6634_v47  ;;  %v2938_v47 = vshrl.u32 %v6861_v50, 16 }
 0x24c   : > { %3283 = vmatprep.mubr.bf16.mxu1 %v6766_v52 }
 0x24d   : > { %5134 = vmatmul.mubr.bf16.gmra.mrb[16].mxu0 %v6562_v38  ;;  %v4625_v0 = vpop.f32.mrb[40].mxu1  ;;  %v2943_v30 = vor.u32 %v2942_v40, %v2938_v47 }
 0x24e   : > { %5137 = vmatprep.mubr.bf16.mxu0 %v6603_v4  ;;  %v4626_v28 = vpop.f32.mrb[41].mxu1 }
 0x24f   : > { %v6870_v16 = vadd.f32 %v4626_v28, %v4625_v0  ;;  %v4628_v44 = vpop.f32.mrb[42].mxu1  ;;  %v2948_v7 = vsel %vm1599_vm9, %v2943_v30, %v2947_v32 }
 0x250   : > { %v4629_v36 = vpop.f32.mrb[43].mxu1 }
 0x251   : > { %v6872_v46 = vadd.f32 %v4629_v36, %v4628_v44 }
 0x253   : > { %3284 = vmatmul.mubr.bf16.gmra.mrb[148].mxu1 %v6643_v6 }
 0x254   : > { %3291 = vmatprep.mubr.bf16.mxu1 %v6775_v17 }
 0x255   : > { %5138 = vmatmul.mubr.bf16.gmra.mrb[20].mxu0 %v6591_v29 }
 0x256   : > { %5141 = vmatprep.mubr.bf16.mxu0 %v6631_v25  ;;  %v4631_v43 = vpop.f32.mrb[44].mxu1 }
 0x257   : > { %v4632_v53 = vpop.f32.mrb[45].mxu1 }
 0x258   : > { %v6880_v59 = vadd.f32 %v4632_v53, %v4631_v43  ;;  %v4634_v37 = vpop.f32.mrb[46].mxu1 }
 0x259   : > { %v4635_v9 = vpop.f32.mrb[47].mxu1 }
 0x25a   : > { %v6883_v58 = vadd.f32 %v4635_v9, %v4634_v37 }
 0x25b   : > { %3292 = vmatmul.mubr.bf16.gmra.mrb[152].mxu1 %v6662_v51 }
 0x25c   : > { %3299 = vmatprep.mubr.bf16.mxu1 %v2948_v7 }
 0x25d   : > { %5142 = vmatmul.mubr.bf16.gmra.mrb[24].mxu0 %v6628_v35 }
 0x25e   : > { %5145 = vmatprep.mubr.bf16.mxu0 %v6656_v61  ;;  %v4637_v6 = vpop.f32.mrb[48].mxu1 }
 0x25f   : > { %v4638_v52 = vpop.f32.mrb[49].mxu1 }
 0x260   : > { %v6888_v10 = vadd.f32 %v4638_v52, %v4637_v6  ;;  %v4640_v3 = vpop.f32.mrb[50].mxu1 }
 0x261   : > { %v4641_v15 = vpop.f32.mrb[51].mxu1 }
 0x262   : > { %v6890_v20 = vadd.f32 %v4641_v15, %v4640_v3 }
 0x263   : > { %3300 = vmatmul.mubr.bf16.gmra.mrb[156].mxu1 %v6861_v50 }
 0x265   : > { %5146 = vmatmul.mubr.bf16.gmra.mrb[28].mxu0 %v6660_v48 }
 0x266   : > { %5165 = vmatprep.mubr.bf16.mxu0 %v6272_v1  ;;  %v4643_v51 = vpop.f32.mrb[52].mxu1 }
 0x267   : > { %v4644_v5 = vpop.f32.mrb[53].mxu1 }
 0x268   : > { %v6895_v17 = vadd.f32 %v4644_v5, %v4643_v51  ;;  %v4646_v26 = vpop.f32.mrb[54].mxu1 }
 0x269   : > { %v4647_v41 = vpop.f32.mrb[55].mxu1 }
 0x26a   : > { %v6897_v62 = vadd.f32 %v4647_v41, %v4646_v26 }
 0x26d   : > { %5166 = vmatmul.mubr.bf16.vlgmr.msra.gmra.mrb[0].mxu0 %v6392_v13 }
 0x26e   : > { %5169 = vmatprep.mubr.bf16.mxu0 %v6395_v14  ;;  %v4649_v33 = vpop.f32.mrb[56].mxu1 }
 0x26f   : > { %v4650_v42 = vpop.f32.mrb[57].mxu1 }
 0x270   : > { %v6901_v63 = vadd.f32 %v4650_v42, %v4649_v33  ;;  %v4652_v60 = vpop.f32.mrb[58].mxu1 }
 0x271   : > { %v4653_v21 = vpop.f32.mrb[59].mxu1 }
 0x272   : > { %v6903_v27 = vadd.f32 %v4653_v21, %v4652_v60 }
 0x275   : > { %5170 = vmatmul.mubr.bf16.gmra.mrb[4].mxu0 %v6480_v49 }
 0x276   : > { %5173 = vmatprep.mubr.bf16.mxu0 %v6511_v31  ;;  %v4655_v1 = vpop.f32.mrb[60].mxu1 }
 0x277   : > { %v4656_v24 = vpop.f32.mrb[61].mxu1 }
 0x278   : > { %v6907_v57 = vadd.f32 %v4656_v24, %v4655_v1  ;;  %v4658_v45 = vpop.f32.mrb[62].mxu1 }
 0x279   : > { %v4659_v13 = vpop.f32.mrb[63].mxu1 }
 0x27a   : > { %v6909_v34 = vadd.f32 %v4659_v13, %v4658_v45 }
 0x27d   : > { %5174 = vmatmul.mubr.bf16.gmra.mrb[8].mxu0 %v6535_v55 }
 0x27e   : > { %5177 = vmatprep.mubr.bf16.mxu0 %v6556_v19  ;;  %v4661_v14 = vpop.f32.mrb[64].mxu1 }
 0x27f   : > { %v4662_v18 = vpop.f32.mrb[65].mxu1 }
 0x280   : > { %v4749_v23 = vpop.f32.mrb[32].mxu0  ;;  %v6913_v0 = vadd.f32 %v4662_v18, %v4661_v14  ;;  %v4664_v49 = vpop.f32.mrb[66].mxu1 }
 0x281   : > { %v4750_v22 = vpop.f32.mrb[33].mxu0  ;;  %v4665_v31 = vpop.f32.mrb[67].mxu1 }
 0x282   : > { %v4751_v28 = vadd.f32 %v4750_v22, %v4749_v23  ;;  %v4752_v44 = vpop.f32.mrb[34].mxu0  ;;  %v6915_v36 = vadd.f32 %v4665_v31, %v4664_v49 }
 0x283   : > { %v4753_v47 = vpop.f32.mrb[35].mxu0 }
 0x284   : > { %v6918_v40 = vadd.f32 %v4751_v28, %v6843_v8  ;;  %v4754_v11 = vadd.f32 %v4753_v47, %v4752_v44  ;;  %v2950_v44 = vrot.slane %v6861_v50, 1  ;;  %v2951_v47 = vrot.slane %v6866_v39, 1 }
 0x285   : > { %5178 = vmatmul.mubr.bf16.gmra.mrb[12].mxu0 %v6562_v38 }
 0x286   : > { %v6922_v55 = vadd.f32 %v4754_v11, %v6848_v12  ;;  %5181 = vmatprep.mubr.bf16.mxu0 %v6603_v4  ;;  %v4667_v19 = vpop.f32.mrb[68].mxu1 }
 0x287   : > { %v4668_v30 = vpop.f32.mrb[69].mxu1 }
 0x288   : > { %v4755_v32 = vpop.f32.mrb[36].mxu0  ;;  %v6925_v43 = vadd.f32 %v4668_v30, %v4667_v19  ;;  %v4670_v53 = vpop.f32.mrb[70].mxu1 }
 0x289   : > { %v4756_v37 = vpop.f32.mrb[37].mxu0  ;;  %v4671_v9 = vpop.f32.mrb[71].mxu1 }
 0x28a   : > { %v4757_v7 = vadd.f32 %v4756_v37, %v4755_v32  ;;  %v4758_v6 = vpop.f32.mrb[38].mxu0  ;;  %v6927_v8 = vadd.f32 %v4671_v9, %v4670_v53 }
 0x28b   : > { %v4759_v52 = vpop.f32.mrb[39].mxu0 }
 0x28c   : > { %v6930_v38 = vadd.f32 %v4757_v7, %v6857_v2  ;;  %v4760_v12 = vadd.f32 %v4759_v52, %v4758_v6 }
 0x28d   : > { %5182 = vmatmul.mubr.bf16.gmra.mrb[16].mxu0 %v6591_v29 }
 0x28e   : > { %v6934_v4 = vadd.f32 %v4760_v12, %v6859_v56  ;;  %5185 = vmatprep.mubr.bf16.mxu0 %v6631_v25  ;;  %v4673_v3 = vpop.f32.mrb[72].mxu1 }
 0x28f   : > { %v4674_v15 = vpop.f32.mrb[73].mxu1 }
 0x290   : > { %v4761_v51 = vpop.f32.mrb[40].mxu0  ;;  %v6937_v5 = vadd.f32 %v4674_v15, %v4673_v3  ;;  %v4676_v26 = vpop.f32.mrb[74].mxu1 }
 0x291   : > { %v4762_v41 = vpop.f32.mrb[41].mxu0  ;;  %v4677_v33 = vpop.f32.mrb[75].mxu1 }
 0x292   : > { %v4763_v42 = vadd.f32 %v4762_v41, %v4761_v51  ;;  %v4764_v60 = vpop.f32.mrb[42].mxu0  ;;  %v6939_v2 = vadd.f32 %v4677_v33, %v4676_v26 }
 0x293   : > { %v4765_v21 = vpop.f32.mrb[43].mxu0 }
 0x294   : > { %v6942_v29 = vadd.f32 %v4763_v42, %v6870_v16  ;;  %v4766_v56 = vadd.f32 %v4765_v21, %v4764_v60 }
 0x295   : > { %5186 = vmatmul.mubr.bf16.gmra.mrb[20].mxu0 %v6628_v35 }
 0x296   : > { %v6946_v25 = vadd.f32 %v4766_v56, %v6872_v46  ;;  %5189 = vmatprep.mubr.bf16.mxu0 %v6656_v61  ;;  %v4679_v1 = vpop.f32.mrb[76].mxu1 }
 0x297   : > { %v4680_v24 = vpop.f32.mrb[77].mxu1 }
 0x298   : > { %v4767_v45 = vpop.f32.mrb[44].mxu0  ;;  %v6949_v13 = vadd.f32 %v4680_v24, %v4679_v1  ;;  %v4682_v14 = vpop.f32.mrb[78].mxu1 }
 0x299   : > { %v4768_v18 = vpop.f32.mrb[45].mxu0  ;;  %v4683_v23 = vpop.f32.mrb[79].mxu1 }
 0x29a   : > { %v4769_v49 = vadd.f32 %v4768_v18, %v4767_v45  ;;  %v4770_v22 = vpop.f32.mrb[46].mxu0  ;;  %v6951_v16 = vadd.f32 %v4683_v23, %v4682_v14 }
 0x29b   : > { %v4771_v31 = vpop.f32.mrb[47].mxu0 }
 0x29c   : > { %v6954_v35 = vadd.f32 %v4769_v49, %v6880_v59  ;;  %v4772_v46 = vadd.f32 %v4771_v31, %v4770_v22 }
 0x29d   : > { %5190 = vmatmul.mubr.bf16.gmra.mrb[24].mxu0 %v6660_v48  ;;  %v2952_v48 = vsel %vm1808_vm8, %v2950_v44, %v2951_v47 }
 0x29e   : > { %v6958_v61 = vadd.f32 %v4772_v46, %v6883_v58  ;;  %5193 = vmatprep.mubr.bf16.mxu0 %v6679_v54  ;;  %v4685_v28 = vpop.f32.mrb[80].mxu1 }
 0x29f   : > { %v4686_v11 = vpop.f32.mrb[81].mxu1 }
 0x2a0   : > { %v4773_v19 = vpop.f32.mrb[48].mxu0  ;;  %v6963_v30 = vadd.f32 %v4686_v11, %v4685_v28  ;;  %v4688_v32 = vpop.f32.mrb[82].mxu1 }
 0x2a1   : > { %v4774_v59 = vpop.f32.mrb[49].mxu0  ;;  %v4689_v53 = vpop.f32.mrb[83].mxu1 }
 0x2a2   : > { %v4775_v37 = vadd.f32 %v4774_v59, %v4773_v19  ;;  %v4776_v9 = vpop.f32.mrb[50].mxu0  ;;  %v6966_v58 = vadd.f32 %v4689_v53, %v4688_v32 }
 0x2a3   : > { %v4777_v7 = vpop.f32.mrb[51].mxu0 }
 0x2a4   : > { %v6969_v54 = vadd.f32 %v4775_v37, %v6888_v10  ;;  %v4778_v50 = vadd.f32 %v4777_v7, %v4776_v9 }
 0x2a5   : > { %5194 = vmatmul.mubr.bf16.gmra.mrb[28].mxu0 %v2952_v48 }
 0x2a6   : > { %v6972_v39 = vadd.f32 %v4778_v50, %v6890_v20  ;;  %v4691_v6 = vpop.f32.mrb[84].mxu1 }
 0x2a7   : > { %v4692_v52 = vpop.f32.mrb[85].mxu1 }
 0x2a8   : > { %v4779_v12 = vpop.f32.mrb[52].mxu0  ;;  %v6974_v3 = vadd.f32 %v4692_v52, %v4691_v6  ;;  %v4694_v15 = vpop.f32.mrb[86].mxu1 }
 0x2a9   : > { %v4780_v51 = vpop.f32.mrb[53].mxu0  ;;  %v4695_v26 = vpop.f32.mrb[87].mxu1 }
 0x2aa   : > { %v4781_v41 = vadd.f32 %v4780_v51, %v4779_v12  ;;  %v4782_v33 = vpop.f32.mrb[54].mxu0  ;;  %v6976_v42 = vadd.f32 %v4695_v26, %v4694_v15 }
 0x2ab   : > { %v4783_v60 = vpop.f32.mrb[55].mxu0 }
 0x2ac   : > { %v6979_v10 = vadd.f32 %v4781_v41, %v6895_v17  ;;  %v4784_v21 = vadd.f32 %v4783_v60, %v4782_v33 }
 0x2ae   : > { %v6982_v20 = vadd.f32 %v4784_v21, %v6897_v62  ;;  %v4697_v56 = vpop.f32.mrb[88].mxu1 }
 0x2af   : > { %v4698_v1 = vpop.f32.mrb[89].mxu1 }
 0x2b0   : > { %v4785_v24 = vpop.f32.mrb[56].mxu0  ;;  %v6984_v45 = vadd.f32 %v4698_v1, %v4697_v56  ;;  %v4700_v14 = vpop.f32.mrb[90].mxu1 }
 0x2b1   : > { %v4786_v18 = vpop.f32.mrb[57].mxu0  ;;  %v4701_v23 = vpop.f32.mrb[91].mxu1 }
 0x2b2   : > { %v4787_v49 = vadd.f32 %v4786_v18, %v4785_v24  ;;  %v4788_v22 = vpop.f32.mrb[58].mxu0  ;;  %v6986_v31 = vadd.f32 %v4701_v23, %v4700_v14 }
 0x2b3   : > { %v4789_v46 = vpop.f32.mrb[59].mxu0 }
 0x2b4   : > { %v6989_v17 = vadd.f32 %v4787_v49, %v6901_v63  ;;  %v4790_v28 = vadd.f32 %v4789_v46, %v4788_v22 }
 0x2b6   : > { %v6992_v62 = vadd.f32 %v4790_v28, %v6903_v27  ;;  %v4703_v44 = vpop.f32.mrb[92].mxu1 }
 0x2b7   : > { %v4704_v47 = vpop.f32.mrb[93].mxu1 }
 0x2b8   : > { %v4791_v11 = vpop.f32.mrb[60].mxu0  ;;  %v6994_v19 = vadd.f32 %v4704_v47, %v4703_v44  ;;  %v4706_v32 = vpop.f32.mrb[94].mxu1 }
 0x2b9   : > { %v4792_v59 = vpop.f32.mrb[61].mxu0  ;;  %v4707_v53 = vpop.f32.mrb[95].mxu1 }
 0x2ba   : > { %v4793_v37 = vadd.f32 %v4792_v59, %v4791_v11  ;;  %v4794_v9 = vpop.f32.mrb[62].mxu0  ;;  %v6996_v48 = vadd.f32 %v4707_v53, %v4706_v32 }
 0x2bb   : > { %v4795_v7 = vpop.f32.mrb[63].mxu0 }
 0x2bc   : > { %v6999_v63 = vadd.f32 %v4793_v37, %v6907_v57  ;;  %v4796_v50 = vadd.f32 %v4795_v7, %v4794_v9 }
 0x2be   : > { %v7002_v27 = vadd.f32 %v4796_v50, %v6909_v34  ;;  %v4885_v6 = vpop.f32.mrb[96].mxu1 }
 0x2bf   : > { %v4886_v52 = vpop.f32.mrb[97].mxu1 }
 0x2c0   : > { %v4797_v12 = vpop.f32.mrb[64].mxu0  ;;  %v4887_v15 = vadd.f32 %v4886_v52, %v4885_v6  ;;  %v4888_v51 = vpop.f32.mrb[98].mxu1 }
 0x2c1   : > { %v4798_v26 = vpop.f32.mrb[65].mxu0  ;;  %v4889_v41 = vpop.f32.mrb[99].mxu1 }
 0x2c2   : > { %v4799_v33 = vadd.f32 %v4798_v26, %v4797_v12  ;;  %v4800_v60 = vpop.f32.mrb[66].mxu0  ;;  %v4890_v21 = vadd.f32 %v4889_v41, %v4888_v51  ;;  %v7005_v56 = vadd.f32 %v6918_v40, %v4887_v15 }
 0x2c3   : > { %v4801_v1 = vpop.f32.mrb[67].mxu0 }
 0x2c4   : > { %v7008_v57 = vadd.f32 %v4799_v33, %v6913_v0  ;;  %v4802_v24 = vadd.f32 %v4801_v1, %v4800_v60  ;;  %v7011_v34 = vadd.f32 %v6922_v55, %v4890_v21 }
 0x2c6   : > { %v7014_v14 = vadd.f32 %v4802_v24, %v6915_v36  ;;  %v4891_v18 = vpop.f32.mrb[100].mxu1 }
 0x2c7   : > { %v4892_v23 = vpop.f32.mrb[101].mxu1 }
 0x2c8   : > { %v4803_v49 = vpop.f32.mrb[68].mxu0  ;;  %v4893_v22 = vadd.f32 %v4892_v23, %v4891_v18  ;;  %v4894_v46 = vpop.f32.mrb[102].mxu1 }
 0x2c9   : > { %v4804_v28 = vpop.f32.mrb[69].mxu0  ;;  %v4895_v44 = vpop.f32.mrb[103].mxu1 }
 0x2ca   : > { %v4805_v40 = vadd.f32 %v4804_v28, %v4803_v49  ;;  %v4806_v47 = vpop.f32.mrb[70].mxu0  ;;  %v4896_v11 = vadd.f32 %v4895_v44, %v4894_v46  ;;  %v7017_v0 = vadd.f32 %v6930_v38, %v4893_v22 }
 0x2cb   : > { %v4807_v32 = vpop.f32.mrb[71].mxu0 }
 0x2cc   : > { %v7020_v55 = vadd.f32 %v4805_v40, %v6925_v43  ;;  %v4808_v59 = vadd.f32 %v4807_v32, %v4806_v47  ;;  %v7023_v36 = vadd.f32 %v6934_v4, %v4896_v11 }
 0x2ce   : > { %v7026_v53 = vadd.f32 %v4808_v59, %v6927_v8  ;;  %v4897_v37 = vpop.f32.mrb[104].mxu1 }
 0x2cf   : > { %v4898_v9 = vpop.f32.mrb[105].mxu1 }
 0x2d0   : > { %v4809_v7 = vpop.f32.mrb[72].mxu0  ;;  %v4899_v50 = vadd.f32 %v4898_v9, %v4897_v37  ;;  %v4900_v6 = vpop.f32.mrb[106].mxu1 }
 0x2d1   : > { %v4810_v52 = vpop.f32.mrb[73].mxu0  ;;  %v4901_v12 = vpop.f32.mrb[107].mxu1 }
 0x2d2   : > { %v4811_v38 = vadd.f32 %v4810_v52, %v4809_v7  ;;  %v4812_v15 = vpop.f32.mrb[74].mxu0  ;;  %v4902_v51 = vadd.f32 %v4901_v12, %v4900_v6  ;;  %v7029_v43 = vadd.f32 %v6942_v29, %v4899_v50 }
 0x2d3   : > { %v4813_v26 = vpop.f32.mrb[75].mxu0 }
 0x2d4   : > { %v7032_v4 = vadd.f32 %v4811_v38, %v6937_v5  ;;  %v4814_v41 = vadd.f32 %v4813_v26, %v4812_v15  ;;  %v7035_v8 = vadd.f32 %v6946_v25, %v4902_v51 }
 0x2d6   : > { %v7038_v33 = vadd.f32 %v4814_v41, %v6939_v2  ;;  %v4903_v60 = vpop.f32.mrb[108].mxu1 }
 0x2d7   : > { %v4904_v21 = vpop.f32.mrb[109].mxu1 }
 0x2d8   : > { %v4815_v1 = vpop.f32.mrb[76].mxu0  ;;  %v4905_v24 = vadd.f32 %v4904_v21, %v4903_v60  ;;  %v4906_v18 = vpop.f32.mrb[110].mxu1 }
 0x2d9   : > { %v4816_v23 = vpop.f32.mrb[77].mxu0  ;;  %v4907_v49 = vpop.f32.mrb[111].mxu1 }
 0x2da   : > { %v4817_v29 = vadd.f32 %v4816_v23, %v4815_v1  ;;  %v4818_v22 = vpop.f32.mrb[78].mxu0  ;;  %v4908_v46 = vadd.f32 %v4907_v49, %v4906_v18  ;;  %v7041_v5 = vadd.f32 %v6954_v35, %v4905_v24 }
 0x2db   : > { %v4819_v28 = vpop.f32.mrb[79].mxu0 }
 0x2dc   : > { %v7044_v25 = vadd.f32 %v4817_v29, %v6949_v13  ;;  %v4820_v44 = vadd.f32 %v4819_v28, %v4818_v22  ;;  %v7047_v2 = vadd.f32 %v6958_v61, %v4908_v46 }
 0x2de   : > { %v7050_v40 = vadd.f32 %v4820_v44, %v6951_v16  ;;  %v4909_v47 = vpop.f32.mrb[112].mxu1 }
 0x2df   : > { %v4910_v11 = vpop.f32.mrb[113].mxu1 }
 0x2e0   : > { %v4821_v32 = vpop.f32.mrb[80].mxu0  ;;  %v4911_v59 = vadd.f32 %v4910_v11, %v4909_v47  ;;  %v4912_v37 = vpop.f32.mrb[114].mxu1 }
 0x2e1   : > { %v4822_v9 = vpop.f32.mrb[81].mxu0  ;;  %v4913_v7 = vpop.f32.mrb[115].mxu1 }
 0x2e2   : > { %v4823_v35 = vadd.f32 %v4822_v9, %v4821_v32  ;;  %v4824_v50 = vpop.f32.mrb[82].mxu0  ;;  %v4914_v6 = vadd.f32 %v4913_v7, %v4912_v37  ;;  %v7053_v13 = vadd.f32 %v6969_v54, %v4911_v59 }
 0x2e3   : > { %v4825_v52 = vpop.f32.mrb[83].mxu0 }
 0x2e4   : > { %v7056_v61 = vadd.f32 %v4823_v35, %v6963_v30  ;;  %v4826_v12 = vadd.f32 %v4825_v52, %v4824_v50  ;;  %v7059_v16 = vadd.f32 %v6972_v39, %v4914_v6 }
 0x2e6   : > { %v7062_v38 = vadd.f32 %v4826_v12, %v6966_v58  ;;  %v4915_v15 = vpop.f32.mrb[116].mxu1 }
 0x2e7   : > { %v4916_v51 = vpop.f32.mrb[117].mxu1 }
 0x2e8   : > { %v4827_v26 = vpop.f32.mrb[84].mxu0  ;;  %v4917_v41 = vadd.f32 %v4916_v51, %v4915_v15  ;;  %v4918_v60 = vpop.f32.mrb[118].mxu1 }
 0x2e9   : > { %v4828_v21 = vpop.f32.mrb[85].mxu0  ;;  %v4919_v1 = vpop.f32.mrb[119].mxu1 }
 0x2ea   : > { %v4829_v54 = vadd.f32 %v4828_v21, %v4827_v26  ;;  %v4830_v24 = vpop.f32.mrb[86].mxu0  ;;  %v4920_v18 = vadd.f32 %v4919_v1, %v4918_v60  ;;  %v7065_v30 = vadd.f32 %v6979_v10, %v4917_v41 }
 0x2eb   : > { %v4831_v23 = vpop.f32.mrb[87].mxu0 }
 0x2ec   : > { %v7068_v39 = vadd.f32 %v4829_v54, %v6974_v3  ;;  %v4832_v49 = vadd.f32 %v4831_v23, %v4830_v24  ;;  %v7071_v58 = vadd.f32 %v6982_v20, %v4920_v18 }
 0x2ee   : > { %v7074_v29 = vadd.f32 %v4832_v49, %v6976_v42  ;;  %v4921_v22 = vpop.f32.mrb[120].mxu1 }
 0x2ef   : > { %v4922_v46 = vpop.f32.mrb[121].mxu1 }
 0x2f0   : > { %v4833_v28 = vpop.f32.mrb[88].mxu0  ;;  %v4923_v44 = vadd.f32 %v4922_v46, %v4921_v22  ;;  %v4924_v47 = vpop.f32.mrb[122].mxu1 }
 0x2f1   : > { %v4834_v11 = vpop.f32.mrb[89].mxu0  ;;  %v4925_v32 = vpop.f32.mrb[123].mxu1 }
 0x2f2   : > { %v4835_v10 = vadd.f32 %v4834_v11, %v4833_v28  ;;  %v4836_v59 = vpop.f32.mrb[90].mxu0  ;;  %v4926_v37 = vadd.f32 %v4925_v32, %v4924_v47  ;;  %v7077_v3 = vadd.f32 %v6989_v17, %v4923_v44 }
 0x2f3   : > { %v4837_v9 = vpop.f32.mrb[91].mxu0 }
 0x2f4   : > { %v7080_v20 = vadd.f32 %v4835_v10, %v6984_v45  ;;  %v4838_v7 = vadd.f32 %v4837_v9, %v4836_v59  ;;  %v7083_v42 = vadd.f32 %v6992_v62, %v4926_v37 }
 0x2f6   : > { %v7086_v35 = vadd.f32 %v4838_v7, %v6986_v31  ;;  %v4927_v50 = vpop.f32.mrb[124].mxu1 }
 0x2f7   : > { %v4928_v6 = vpop.f32.mrb[125].mxu1 }
 0x2f8   : > { %v4839_v52 = vpop.f32.mrb[92].mxu0  ;;  %v4929_v12 = vadd.f32 %v4928_v6, %v4927_v50  ;;  %v4930_v15 = vpop.f32.mrb[126].mxu1 }
 0x2f9   : > { %v4840_v51 = vpop.f32.mrb[93].mxu0  ;;  %v4931_v26 = vpop.f32.mrb[127].mxu1 }
 0x2fa   : > { %v4841_v17 = vadd.f32 %v4840_v51, %v4839_v52  ;;  %v4842_v41 = vpop.f32.mrb[94].mxu0  ;;  %v4932_v60 = vadd.f32 %v4931_v26, %v4930_v15  ;;  %v7089_v45 = vadd.f32 %v6999_v63, %v4929_v12 }
 0x2fb   : > { %v4843_v21 = vpop.f32.mrb[95].mxu0 }
 0x2fc   : > { %v7092_v62 = vadd.f32 %v4841_v17, %v6994_v19  ;;  %v4844_v1 = vadd.f32 %v4843_v21, %v4842_v41  ;;  %v7095_v31 = vadd.f32 %v7002_v27, %v4932_v60 }
 0x2fe   : > { %v7098_v54 = vadd.f32 %v4844_v1, %v6996_v48  ;;  %v4933_v24 = vpop.f32.mrb[128].mxu1 }
 0x2ff   : > { %v4934_v18 = vpop.f32.mrb[129].mxu1 }
 0x300   : > { %v4935_v23 = vadd.f32 %v4934_v18, %v4933_v24  ;;  %v4936_v49 = vpop.f32.mrb[130].mxu1 }
 0x301   : > { %v4937_v22 = vpop.f32.mrb[131].mxu1 }
 0x302   : > { %v4938_v46 = vadd.f32 %v4937_v22, %v4936_v49  ;;  %v7101_v63 = vadd.f32 %v7008_v57, %v4935_v23 }
 0x304   : > { %v7104_v28 = vadd.f32 %v7014_v14, %v4938_v46 }
 0x306   : > { %v4939_v19 = vpop.f32.mrb[132].mxu1 }
 0x307   : > { %v4940_v44 = vpop.f32.mrb[133].mxu1 }
 0x308   : > { %v4941_v47 = vadd.f32 %v4940_v44, %v4939_v19  ;;  %v4942_v27 = vpop.f32.mrb[134].mxu1 }
 0x309   : > { %v4943_v11 = vpop.f32.mrb[135].mxu1 }
 0x30a   : > { %v4944_v32 = vadd.f32 %v4943_v11, %v4942_v27  ;;  %v7107_v48 = vadd.f32 %v7020_v55, %v4941_v47 }
 0x30c   : > { %v7110_v10 = vadd.f32 %v7026_v53, %v4944_v32 }
 0x30e   : > { %v4945_v59 = vpop.f32.mrb[136].mxu1 }
 0x30f   : > { %v4946_v37 = vpop.f32.mrb[137].mxu1 }
 0x310   : > { %v4947_v9 = vadd.f32 %v4946_v37, %v4945_v59  ;;  %v4948_v57 = vpop.f32.mrb[138].mxu1 }
 0x311   : > { %v4949_v7 = vpop.f32.mrb[139].mxu1 }
 0x312   : > { %v4950_v50 = vadd.f32 %v4949_v7, %v4948_v57  ;;  %v7113_v14 = vadd.f32 %v7032_v4, %v4947_v9 }
 0x314   : > { %v7116_v6 = vadd.f32 %v7038_v33, %v4950_v50 }
 0x316   : > { %v4951_v52 = vpop.f32.mrb[140].mxu1 }
 0x317   : > { %v4952_v12 = vpop.f32.mrb[141].mxu1 }
 0x318   : > { %v4953_v15 = vadd.f32 %v4952_v12, %v4951_v52  ;;  %v4954_v55 = vpop.f32.mrb[142].mxu1 }
 0x319   : > { %v4955_v51 = vpop.f32.mrb[143].mxu1 }
 0x31a   : > { %v4956_v26 = vadd.f32 %v4955_v51, %v4954_v55  ;;  %v7119_v53 = vadd.f32 %v7044_v25, %v4953_v15 }
 0x31c   : > { %v7122_v17 = vadd.f32 %v7050_v40, %v4956_v26 }
 0x31e   : > { %v4957_v41 = vpop.f32.mrb[144].mxu1 }
 0x31f   : > { %v4958_v60 = vpop.f32.mrb[145].mxu1 }
 0x320   : > { %v4959_v21 = vadd.f32 %v4958_v60, %v4957_v41  ;;  %v4960_v4 = vpop.f32.mrb[146].mxu1 }
 0x321   : > { %v4961_v1 = vpop.f32.mrb[147].mxu1 }
 0x322   : > { %v4962_v24 = vadd.f32 %v4961_v1, %v4960_v4  ;;  %v7125_v33 = vadd.f32 %v7056_v61, %v4959_v21 }
 0x324   : > { %v7128_v18 = vadd.f32 %v7062_v38, %v4962_v24 }
 0x326   : > { %v4963_v23 = vpop.f32.mrb[148].mxu1 }
 0x327   : > { %v4964_v49 = vpop.f32.mrb[149].mxu1 }
 0x328   : > { %v4965_v22 = vadd.f32 %v4964_v49, %v4963_v23  ;;  %v4966_v25 = vpop.f32.mrb[150].mxu1 }
 0x329   : > { %v4967_v46 = vpop.f32.mrb[151].mxu1 }
 0x32a   : > { %v4968_v19 = vadd.f32 %v4967_v46, %v4966_v25  ;;  %v7131_v40 = vadd.f32 %v7068_v39, %v4965_v22 }
 0x32c   : > { %v7134_v44 = vadd.f32 %v7074_v29, %v4968_v19 }
 0x32e   : > { %v4969_v47 = vpop.f32.mrb[152].mxu1 }
 0x32f   : > { %v4970_v27 = vpop.f32.mrb[153].mxu1 }
 0x330   : > { %v4971_v11 = vadd.f32 %v4970_v27, %v4969_v47  ;;  %v4972_v61 = vpop.f32.mrb[154].mxu1 }
 0x331   : > { %v4973_v32 = vpop.f32.mrb[155].mxu1 }
 0x332   : > { %v4974_v59 = vadd.f32 %v4973_v32, %v4972_v61  ;;  %v7137_v38 = vadd.f32 %v7080_v20, %v4971_v11  ;;  %v7151_v20 = vld [vmem:[%s7469_s4] ss:$0 sm:$0xff] }
 0x334   : > { %v7140_v37 = vadd.f32 %v7086_v35, %v4974_v59 }
 0x336   : > { %v4975_v9 = vpop.f32.mrb[156].mxu1 }
 0x337   : > { %v4976_v57 = vpop.f32.mrb[157].mxu1 }
 0x338   : > { %v4977_v7 = vadd.f32 %v4976_v57, %v4975_v9  ;;  %v4978_v39 = vpop.f32.mrb[158].mxu1 }
 0x339   : > { %v4979_v50 = vpop.f32.mrb[159].mxu1 }
 0x33a   : > { %v4980_v52 = vadd.f32 %v4979_v50, %v4978_v39  ;;  %v7143_v29 = vadd.f32 %v7092_v62, %v4977_v7 }
 0x33c   : > { %v7146_v12 = vadd.f32 %v7098_v54, %v4980_v52 }
 0x340   : > { %v5167_v15 = vpop.f32.mrb[0].mxu0 }
 0x341   : > { %v5199_v35 = vadd.f32 %v7017_v0, %v5167_v15  ;;  %v3342_v55 = vpop.f32.mrb[1].mxu0 }
 0x342   : > { %v5202_v51 = vadd.f32 %v7005_v56, %v3342_v55  ;;  %v5168_v26 = vpop.f32.mrb[2].mxu0 }
 0x343   : > { %v7156_v41 = vadd.f32 %v5199_v35, %v7151_v20  ;;  %v5205_v62 = vadd.f32 %v7023_v36, %v5168_v26  ;;  %v3345_v60 = vpop.f32.mrb[3].mxu0  ;;  %v7200_v35 = vld [vmem:[%s5852_s29 + $0x8] sm:$0xff]  }
 0x344   : > { %v7160_v54 = vadd.f32 %v5202_v51, %v7151_v20  ;;  %v5208_v21 = vadd.f32 %v7011_v34, %v3345_v60  ;;  %v3766_v55 = vunpack.c.l.bf16 %v7200_v35 }
 0x345   : > { %v4348_v4 = vmul.f32 -1.442695, %v7156_v41  ;;  %v7165_v1 = vadd.f32 %v5205_v62, %v7151_v20 }
 0x346   : > { %v4346_v0 = vmul.f32 -1.442695, %v7160_v54  ;;  %v7169_v56 = vadd.f32 %v5208_v21, %v7151_v20  ;;  %v3767_v21 = vunpack.c.h.bf16 %v7200_v35 }
 0x347   : > { %5642 = vpow2.f32 %v4348_v4  ;;  %v4349_v24 = vmul.f32 -1.442695, %v7165_v1 }
 0x348   : > { %5644 = vpow2.f32 %v4346_v0  ;;  %v4347_v36 = vmul.f32 -1.442695, %v7169_v56  ;;  %v5171_v23 = vpop.f32.mrb[4].mxu0 }
 0x349   : > { %5646 = vpow2.f32 %v4349_v24  ;;  %v5211_v34 = vadd.f32 %v7041_v5, %v5171_v23  ;;  %v3358_v49 = vpop.f32.mrb[5].mxu0 }
 0x34a   : > { %5648 = vpow2.f32 %v4347_v36  ;;  %v5214_v22 = vadd.f32 %v7029_v43, %v3358_v49  ;;  %v5172_v25 = vpop.f32.mrb[6].mxu0 }
 0x34b   : > { %v7176_v46 = vadd.f32 %v5211_v34, %v7151_v20  ;;  %v5217_v19 = vadd.f32 %v7047_v2, %v5172_v25  ;;  %v3361_v47 = vpop.f32.mrb[7].mxu0 }
 0x34c   : > { %v7180_v27 = vadd.f32 %v5214_v22, %v7151_v20  ;;  %v5220_v11 = vadd.f32 %v7035_v8, %v3361_v47  ;;  %v7194_v8 = vld [vmem:[%s5852_s29] sm:$0xff]  }
 0x34d   : > { %v4352_v61 = vmul.f32 -1.442695, %v7176_v46  ;;  %v7185_v5 = vadd.f32 %v5217_v19, %v7151_v20  ;;  %v3764_v7 = vunpack.c.l.bf16 %v7194_v8  ;;  %v3765_v39 = vunpack.c.h.bf16 %v7194_v8  ;;  %v7218_v19 = vld [vmem:[%s5852_s29 + $0x10] sm:$0xff]  }
 0x34e   : > { %v4350_v43 = vmul.f32 -1.442695, %v7180_v27  ;;  %v7189_v32 = vadd.f32 %v5220_v11, %v7151_v20 }
 0x34f   : > { %5650 = vpow2.f32 %v4352_v61  ;;  %v4353_v2 = vmul.f32 -1.442695, %v7185_v5  ;;  %v7227_v61 = vld [vmem:[%s5852_s29 + $0x18] sm:$0xff]  }
 0x350   : > { %5652 = vpow2.f32 %v4350_v43  ;;  %v4351_v59 = vmul.f32 -1.442695, %v7189_v32  ;;  %v5175_v9 = vpop.f32.mrb[8].mxu0  ;;  %v3770_v43 = vunpack.c.l.bf16 %v7227_v61 }
 0x351   : > { %v5643_v57 = vpop.eup %5642  ;;  %5654 = vpow2.f32 %v4353_v2  ;;  %v5223_v50 = vadd.f32 %v7065_v30, %v5175_v9  ;;  %v3374_v52 = vpop.f32.mrb[9].mxu0  ;;  %v7233_v9 = vld [vmem:[%s5852_s29 + $0x20] sm:$0xff]  }
 0x352   : > { %v5645_v15 = vpop.eup %5644  ;;  %v3638_v51 = vadd.f32 1.0, %v5643_v57  ;;  %5656 = vpow2.f32 %v4351_v59  ;;  %v5226_v26 = vadd.f32 %v7053_v13, %v3374_v52  ;;  %v5176_v62 = vpop.f32.mrb[10].mxu0  ;;  %v3771_v59 = vunpack.c.h.bf16 %v7227_v61 }
 0x353   : > { %v5647_v60 = vpop.eup %5646  ;;  %v3636_v4 = vadd.f32 1.0, %v5645_v15  ;;  %v7206_v0 = vadd.f32 %v5223_v50, %v7151_v20  ;;  %v5229_v30 = vadd.f32 %v7071_v58, %v5176_v62  ;;  %v3377_v24 = vpop.f32.mrb[11].mxu0  ;;  %v3768_v58 = vunpack.c.l.bf16 %v7218_v19 }
 0x354   : > { %v5649_v36 = vpop.eup %5648  ;;  %5658 = vrcp.f32 %v3638_v51  ;;  %v3639_v23 = vadd.f32 1.0, %v5647_v60  ;;  %v7210_v34 = vadd.f32 %v5226_v26, %v7151_v20  ;;  %v5232_v13 = vadd.f32 %v7059_v16, %v3377_v24  ;;  %v7239_v26 = vld [vmem:[%s5852_s29 + $0x28] sm:$0xff]  }
 0x355   : > { %5660 = vrcp.f32 %v3636_v4  ;;  %v3637_v49 = vadd.f32 1.0, %v5649_v36  ;;  %v4356_v22 = vmul.f32 -1.442695, %v7206_v0  ;;  %v7215_v25 = vadd.f32 %v5229_v30, %v7151_v20 }
 0x356   : > { %5662 = vrcp.f32 %v3639_v23  ;;  %v4354_v47 = vmul.f32 -1.442695, %v7210_v34  ;;  %v7223_v11 = vadd.f32 %v5232_v13, %v7151_v20 }
 0x357   : > { %5664 = vrcp.f32 %v3637_v49  ;;  %v4357_v2 = vmul.f32 -1.442695, %v7215_v25 }
 0x358   : > { %5666 = vpow2.f32 %v4356_v22  ;;  %v4355_v50 = vmul.f32 -1.442695, %v7223_v11  ;;  %v5179_v52 = vpop.f32.mrb[12].mxu0 }
 0x359   : > { %v5651_v15 = vpop.eup %5650  ;;  %5668 = vpow2.f32 %v4354_v47  ;;  %v5235_v60 = vadd.f32 %v7089_v45, %v5179_v52  ;;  %v3390_v4 = vpop.f32.mrb[13].mxu0 }
 0x35a   : > { %v5653_v30 = vpop.eup %5652  ;;  %v3642_v36 = vadd.f32 1.0, %v5651_v15  ;;  %5670 = vpow2.f32 %v4357_v2  ;;  %v5238_v23 = vadd.f32 %v7077_v3, %v3390_v4  ;;  %v5180_v13 = vpop.f32.mrb[14].mxu0  ;;  %v7258_v4 = vld [vmem:[%s5852_s29 + $0x30] sm:$0xff]  }
 0x35b   : > { %v5655_v49 = vpop.eup %5654  ;;  %v3640_v22 = vadd.f32 1.0, %v5653_v30  ;;  %5672 = vpow2.f32 %v4355_v50  ;;  %v7246_v51 = vadd.f32 %v5235_v60, %v7151_v20  ;;  %v5241_v47 = vadd.f32 %v7095_v31, %v5180_v13  ;;  %v3393_v57 = vpop.f32.mrb[15].mxu0 }
 0x35c   : > { %v5657_v45 = vpop.eup %5656  ;;  %5674 = vrcp.f32 %v3642_v36  ;;  %v3643_v52 = vadd.f32 1.0, %v5655_v49  ;;  %v7250_v24 = vadd.f32 %v5238_v23, %v7151_v20  ;;  %v5244_v2 = vadd.f32 %v7083_v42, %v3393_v57 }
 0x35d   : > { %5676 = vrcp.f32 %v3640_v22  ;;  %v3641_v3 = vadd.f32 1.0, %v5657_v45  ;;  %v4360_v15 = vmul.f32 -1.442695, %v7246_v51  ;;  %v7255_v50 = vadd.f32 %v5241_v47, %v7151_v20  ;;  %v7269_v22 = vld [vmem:[%s5852_s29 + $0x38] sm:$0xff]  }
 0x35e   : > { %v5659_v60 = vpop.eup %5658  ;;  %5678 = vrcp.f32 %v3643_v52  ;;  %v4358_v30 = vmul.f32 -1.442695, %v7250_v24  ;;  %v7263_v36 = vadd.f32 %v5244_v2, %v7151_v20 }
 0x35f   : > { %v5661_v42 = vpop.eup %5660  ;;  %v3734_v23 = vmul.f32 %v5659_v60, %v7156_v41  ;;  %5680 = vrcp.f32 %v3641_v3  ;;  %v4361_v13 = vmul.f32 -1.442695, %v7255_v50 }
 0x360   : > { %v5663_v49 = vpop.eup %5662  ;;  %v3732_v45 = vmul.f32 %v5661_v42, %v7160_v54  ;;  %5682 = vpow2.f32 %v4360_v15  ;;  %v4359_v52 = vmul.f32 -1.442695, %v7263_v36  ;;  %v5183_v2 = vpop.f32.mrb[16].mxu0 }
 0x361   : > { %v5665_v31 = vpop.eup %5664  ;;  %v3798_v57 = vadd.f32 %v3766_v55, %v3734_v23  ;;  %v3735_v41 = vmul.f32 %v5663_v49, %v7165_v1  ;;  %5684 = vpow2.f32 %v4358_v30  ;;  %v5247_v3 = vadd.f32 %v7107_v48, %v5183_v2  ;;  %v3406_v60 = vpop.f32.mrb[17].mxu0 }
 0x362   : > { %v5667_v62 = vpop.eup %5666  ;;  %v3796_v47 = vadd.f32 %v3764_v7, %v3732_v45  ;;  %v3733_v54 = vmul.f32 %v5665_v31, %v7169_v56  ;;  %5686 = vpow2.f32 %v4361_v13  ;;  %v5250_v15 = vadd.f32 %v7101_v63, %v3406_v60  ;;  %v5184_v42 = vpop.f32.mrb[18].mxu0 }
 0x363   : > { %v5669_v16 = vpop.eup %5668  ;;  %v3799_v55 = vadd.f32 %v3767_v21, %v3735_v41  ;;  %v3646_v1 = vadd.f32 1.0, %v5667_v62  ;;  %5688 = vpow2.f32 %v4359_v52  ;;  %v7285_v30 = vadd.f32 %v5247_v3, %v7151_v20  ;;  %v3409_v48 = vpop.f32.mrb[19].mxu0  ;;  %v7310_v3 = vld [vmem:[%s5852_s29 + $0x40] sm:$0xff]  }
 0x364   : > { %v5671_v23 = vpop.eup %5670  ;;  %v3797_v63 = vadd.f32 %v3765_v39, %v3733_v54  ;;  %v3644_v56 = vadd.f32 1.0, %v5669_v16  ;;  %v7297_v7 = vadd.f32 %v5250_v15, %v7151_v20  ;;  %v5253_v35 = vadd.f32 %v7110_v10, %v5184_v42 }
 0x365   : > { %v5673_v21 = vpop.eup %5672  ;;  %v4486_v62 = vpack.c.bf16 %v3799_v55, %v3798_v57  ;;  %5690 = vrcp.f32 %v3646_v1  ;;  %v3647_v31 = vadd.f32 1.0, %v5671_v23  ;;  %v4364_v13 = vmul.f32 -1.442695, %v7285_v30 }
 0x366   : > { %v5675_v49 = vpop.eup %5674  ;;  %v4481_v45 = vpack.c.bf16 %v3797_v63, %v3796_v47  ;;  %5692 = vrcp.f32 %v3644_v56  ;;  %v3645_v8 = vadd.f32 1.0, %v5673_v21  ;;  %v4362_v39 = vmul.f32 -1.442695, %v7297_v7 }
 0x367   : > { %v5677_v16 = vpop.eup %5676  ;;  %4558 = vst [vmem:[%s7292_s20 + $0x8] sm:$0xff] %v4486_v62   ;;  %v3738_v52 = vmul.f32 %v5675_v49, %v7176_v46  ;;  %5694 = vrcp.f32 %v3647_v31  ;;  %v7305_v10 = vadd.f32 %v5253_v35, %v7151_v20  ;;  %v5256_v57 = vadd.f32 %v7104_v28, %v3409_v48 }
 0x368   : > { %v5679_v2 = vpop.eup %5678  ;;  %v3779_v41 = vunpack.c.h.bf16 %v7269_v22  ;;  %v3780_v47 = vunpack.c.l.bf16 %v7310_v3  ;;  %4482 = vst [vmem:[%s7292_s20] sm:$0xff] %v4481_v45   ;;  %v3736_v60 = vmul.f32 %v5677_v16, %v7180_v27  ;;  %5696 = vrcp.f32 %v3645_v8  ;;  %v5187_v54 = vpop.f32.mrb[20].mxu0 }
 0x369   : > { %v5681_v15 = vpop.eup %5680  ;;  %v3802_v46 = vadd.f32 %v3770_v43, %v3738_v52  ;;  %v3739_v42 = vmul.f32 %v5679_v2, %v7185_v5  ;;  %5698 = vpow2.f32 %v4364_v13  ;;  %v4365_v28 = vmul.f32 -1.442695, %v7305_v10  ;;  %v3422_v55 = vpop.f32.mrb[21].mxu0 }
 0x36a   : > { %v5683_v1 = vpop.eup %5682  ;;  %v3800_v48 = vadd.f32 %v3768_v58, %v3736_v60  ;;  %v3737_v23 = vmul.f32 %v5681_v15, %v7189_v32  ;;  %5700 = vpow2.f32 %v4362_v39  ;;  %v7323_v27 = vadd.f32 %v5256_v57, %v7151_v20  ;;  %v5188_v63 = vpop.f32.mrb[22].mxu0  ;;  %v7343_v60 = vld [vmem:[%s5852_s29 + $0x48] sm:$0xff]  }
 0x36b   : > { %v5685_v56 = vpop.eup %5684  ;;  %v3803_v43 = vadd.f32 %v3771_v59, %v3739_v42  ;;  %v3650_v5 = vadd.f32 1.0, %v5683_v1  ;;  %5702 = vpow2.f32 %v4365_v28  ;;  %v5259_v35 = vadd.f32 %v7119_v53, %v5187_v54  ;;  %v3425_v21 = vpop.f32.mrb[23].mxu0 }
 0x36c   : > { %v5687_v62 = vpop.eup %5686  ;;  %v7477_v58 = vunpack.c.h.bf16 %v7218_v19  ;;  %v3648_v32 = vadd.f32 1.0, %v5685_v56  ;;  %v4363_v13 = vmul.f32 -1.442695, %v7323_v27  ;;  %v5262_v49 = vadd.f32 %v7113_v14, %v3422_v55 }
 0x36d   : > { %v5689_v45 = vpop.eup %5688  ;;  %v4496_v8 = vpack.c.bf16 %v3803_v43, %v3802_v46  ;;  %5704 = vrcp.f32 %v3650_v5  ;;  %v3651_v61 = vadd.f32 1.0, %v5687_v62  ;;  %v7333_v59 = vadd.f32 %v5259_v35, %v7151_v20 }
 0x36e   : > { %v3801_v31 = vadd.f32 %v7477_v58, %v3737_v23  ;;  %5706 = vrcp.f32 %v3648_v32  ;;  %v3649_v39 = vadd.f32 1.0, %v5689_v45  ;;  %v7336_v19 = vadd.f32 %v5262_v49, %v7151_v20 }
 0x36f   : > { %v5691_v16 = vpop.eup %5690  ;;  %4560 = vst [vmem:[%s7292_s20 + $0x18] sm:$0xff] %v4496_v8   ;;  %5708 = vrcp.f32 %v3651_v61  ;;  %v4368_v14 = vmul.f32 -1.442695, %v7333_v59  ;;  %v5265_v52 = vadd.f32 %v7122_v17, %v5188_v63  ;;  %v5268_v57 = vadd.f32 %v7116_v6, %v3425_v21 }
 0x370   : > { %v4491_v53 = vpack.c.bf16 %v3801_v31, %v3800_v48  ;;  %v5693_v2 = vpop.eup %5692  ;;  %v3782_v54 = vunpack.c.l.bf16 %v7343_v60  ;;  %v3742_v15 = vmul.f32 %v5691_v16, %v7206_v0  ;;  %5710 = vrcp.f32 %v3649_v39  ;;  %v5191_v42 = vpop.f32.mrb[24].mxu0 }
 0x371   : > { %v4366_v46 = vmul.f32 -1.442695, %v7336_v19  ;;  %v5695_v28 = vpop.eup %5694  ;;  %v3740_v55 = vmul.f32 %v5693_v2, %v7210_v34  ;;  %5712 = vpow2.f32 %v4363_v13  ;;  %v7351_v17 = vadd.f32 %v5265_v52, %v7151_v20  ;;  %v3438_v1 = vpop.f32.mrb[25].mxu0 }
 0x372   : > { %4559 = vst [vmem:[%s7292_s20 + $0x10] sm:$0xff] %v4491_v53   ;;  %v7354_v6 = vadd.f32 %v5268_v57, %v7151_v20  ;;  %v5697_v48 = vpop.eup %5696  ;;  %v7478_v23 = vunpack.c.l.bf16 %v7239_v26  ;;  %v3743_v0 = vmul.f32 %v5695_v28, %v7215_v25  ;;  %5714 = vpow2.f32 %v4368_v14  ;;  %v5192_v43 = vpop.f32.mrb[26].mxu0 }
 0x373   : > { %v5271_v56 = vadd.f32 %v7131_v40, %v5191_v42  ;;  %v5699_v5 = vpop.eup %5698  ;;  %v7479_v34 = vunpack.c.l.bf16 %v7233_v9  ;;  %v3741_v21 = vmul.f32 %v5697_v48, %v7223_v11  ;;  %5716 = vpow2.f32 %v4366_v46  ;;  %v3441_v58 = vpop.f32.mrb[27].mxu0 }
 0x374   : > { %v3806_v63 = vadd.f32 %v7478_v23, %v3742_v15  ;;  %v4369_v62 = vmul.f32 -1.442695, %v7351_v17  ;;  %v5701_v31 = vpop.eup %5700  ;;  %v7480_v32 = vunpack.c.h.bf16 %v7239_v26  ;;  %v3654_v49 = vadd.f32 1.0, %v5699_v5 }
 0x375   : > { %v3804_v35 = vadd.f32 %v7479_v34, %v3740_v55  ;;  %v4367_v25 = vmul.f32 -1.442695, %v7354_v6  ;;  %v7368_v40 = vadd.f32 %v5271_v56, %v7151_v20  ;;  %v5703_v45 = vpop.eup %5702  ;;  %v7481_v8 = vunpack.c.h.bf16 %v7233_v9 }
 0x376   : > { %v3807_v13 = vadd.f32 %v7480_v32, %v3743_v0  ;;  %v3652_v11 = vadd.f32 1.0, %v5701_v31  ;;  %5718 = vpow2.f32 %v4369_v62  ;;  %v5274_v53 = vadd.f32 %v7125_v33, %v3438_v1 }
 0x377   : > { %v3805_v61 = vadd.f32 %v7481_v8, %v3741_v21  ;;  %5720 = vrcp.f32 %v3654_v49  ;;  %v3655_v26 = vadd.f32 1.0, %v5703_v45  ;;  %v4372_v16 = vmul.f32 -1.442695, %v7368_v40  ;;  %v5705_v14 = vpop.eup %5704 }
 0x378   : > { %v4506_v39 = vpack.c.bf16 %v3807_v13, %v3806_v63  ;;  %5722 = vrcp.f32 %v3652_v11  ;;  %v7375_v57 = vadd.f32 %v5274_v53, %v7151_v20  ;;  %v5277_v9 = vadd.f32 %v7134_v44, %v5192_v43  ;;  %v5707_v2 = vpop.eup %5706  ;;  %v5195_v42 = vpop.f32.mrb[28].mxu0 }
 0x379   : > { %v4501_v52 = vpack.c.bf16 %v3805_v61, %v3804_v35  ;;  %v3783_v15 = vunpack.c.h.bf16 %v7343_v60  ;;  %v3746_v33 = vmul.f32 %v5705_v14, %v7246_v51  ;;  %5724 = vrcp.f32 %v3655_v26  ;;  %v5709_v28 = vpop.eup %5708  ;;  %v3454_v44 = vpop.f32.mrb[29].mxu0 }
 0x37a   : > { %4562 = vst [vmem:[%s7292_s20 + $0x28] sm:$0xff] %v4506_v39   ;;  %v5280_v46 = vadd.f32 %v7128_v18, %v3441_v58  ;;  %v3744_v55 = vmul.f32 %v5707_v2, %v7250_v24  ;;  %5726 = vpow2.f32 %v4367_v25  ;;  %v4370_v1 = vmul.f32 -1.442695, %v7375_v57  ;;  %v5711_v23 = vpop.eup %5710  ;;  %v5196_v56 = vpop.f32.mrb[30].mxu0 }
 0x37b   : > { %4561 = vst [vmem:[%s7292_s20 + $0x20] sm:$0xff] %v4501_v52   ;;  %v7386_v48 = vadd.f32 %v5277_v9, %v7151_v20  ;;  %v7482_v63 = vunpack.c.l.bf16 %v7269_v22  ;;  %v3747_v51 = vmul.f32 %v5709_v28, %v7255_v50  ;;  %5728 = vpow2.f32 %v4372_v16  ;;  %v5713_v43 = vpop.eup %5712  ;;  %v3457_v21 = vpop.f32.mrb[31].mxu0 }
 0x37c   : > { %v7392_v18 = vadd.f32 %v5280_v46, %v7151_v20  ;;  %v7483_v24 = vunpack.c.l.bf16 %v7258_v4  ;;  %v3745_v34 = vmul.f32 %v5711_v23, %v7263_v36  ;;  %5730 = vpow2.f32 %v4370_v1  ;;  %v5715_v62 = vpop.eup %5714 }
 0x37d   : > { %v3810_v0 = vadd.f32 %v7482_v63, %v3746_v33  ;;  %v4373_v35 = vmul.f32 -1.442695, %v7386_v48  ;;  %v3811_v58 = vadd.f32 %v3779_v41, %v3747_v51  ;;  %v3653_v50 = vadd.f32 1.0, %v5713_v43  ;;  %v5717_v13 = vpop.eup %5716  ;;  %v5782_v51 = vld [vmem:[%s5852_s29 + $0x58] sm:$0xff]  }
 0x37e   : > { %v3808_v5 = vadd.f32 %v7483_v24, %v3744_v55  ;;  %v4371_v31 = vmul.f32 -1.442695, %v7392_v18  ;;  %v5283_v32 = vadd.f32 %v7143_v29, %v5195_v42  ;;  %v7484_v49 = vunpack.c.h.bf16 %v7258_v4 }
 0x37f   : > { %v3658_v45 = vadd.f32 1.0, %v5715_v62  ;;  %5732 = vpow2.f32 %v4373_v35  ;;  %v5286_v36 = vadd.f32 %v7137_v38, %v3454_v44  ;;  %v4516_v8 = vpack.c.bf16 %v3811_v58, %v3810_v0 }
 0x380   : > { %v3809_v25 = vadd.f32 %v7484_v49, %v3745_v34  ;;  %5734 = vrcp.f32 %v3653_v50  ;;  %v3656_v61 = vadd.f32 1.0, %v5717_v13  ;;  %v7406_v22 = vadd.f32 %v5283_v32, %v7151_v20  ;;  %v5719_v41 = vpop.eup %5718 }
 0x381   : > { %5736 = vrcp.f32 %v3658_v45  ;;  %v7409_v29 = vadd.f32 %v5286_v36, %v7151_v20  ;;  %v5289_v4 = vadd.f32 %v7146_v12, %v5196_v56  ;;  %v5721_v53 = vpop.eup %5720  ;;  %4564 = vst [vmem:[%s7292_s20 + $0x38] sm:$0xff] %v4516_v8   ;;  %v3659_v39 = vadd.f32 1.0, %v5719_v41 }
 0x382   : > { %v4511_v11 = vpack.c.bf16 %v3809_v25, %v3808_v5  ;;  %5738 = vrcp.f32 %v3656_v61  ;;  %v4376_v38 = vmul.f32 -1.442695, %v7406_v22  ;;  %v5292_v26 = vadd.f32 %v7140_v37, %v3457_v21  ;;  %v5723_v16 = vpop.eup %5722 }
 0x383   : > { %v3750_v14 = vmul.f32 %v5721_v53, %v7285_v30  ;;  %5740 = vpow2.f32 %v4371_v31  ;;  %v4374_v52 = vmul.f32 -1.442695, %v7409_v29  ;;  %v7419_v9 = vadd.f32 %v5289_v4, %v7151_v20  ;;  %v5725_v2 = vpop.eup %5724 }
 0x384   : > { %4563 = vst [vmem:[%s7292_s20 + $0x30] sm:$0xff] %v4511_v11   ;;  %v3748_v12 = vmul.f32 %v5723_v16, %v7297_v7  ;;  %5742 = vrcp.f32 %v3659_v39  ;;  %v7423_v33 = vadd.f32 %v5292_v26, %v7151_v20  ;;  %v5727_v46 = vpop.eup %5726  ;;  %v3751_v42 = vmul.f32 %v5725_v2, %v7305_v10 }
 0x385   : > { %v3814_v37 = vadd.f32 %v3782_v54, %v3750_v14  ;;  %5744 = vpow2.f32 %v4376_v38  ;;  %v4377_v30 = vmul.f32 -1.442695, %v7419_v9  ;;  %v5729_v28 = vpop.eup %5728  ;;  %v3657_v1 = vadd.f32 1.0, %v5727_v46  ;;  %v5785_v38 = vld [vmem:[%s5852_s29 + $0x60] sm:$0xff]  }
 0x386   : > { %v3812_v55 = vadd.f32 %v3780_v47, %v3748_v12  ;;  %5746 = vpow2.f32 %v4374_v52  ;;  %v5731_v7 = vpop.eup %5730  ;;  %v3815_v20 = vadd.f32 %v3783_v15, %v3751_v42  ;;  %v3662_v44 = vadd.f32 1.0, %v5729_v28  ;;  %v5783_v15 = vld [vmem:[%s5852_s29 + $0x50] sm:$0xff]  }
 0x387   : > { %5748 = vpow2.f32 %v4377_v30  ;;  %v4375_v10 = vmul.f32 -1.442695, %v7423_v33  ;;  %v3660_v54 = vadd.f32 1.0, %v5731_v7  ;;  %v3781_v63 = vunpack.c.h.bf16 %v7310_v3 }
 0x388   : > { %5750 = vrcp.f32 %v3657_v1  ;;  %v4526_v0 = vpack.c.bf16 %v3815_v20, %v3814_v37  ;;  %v3786_v56 = vunpack.c.l.bf16 %v5782_v51  ;;  %v3784_v24 = vunpack.c.l.bf16 %v5783_v15 }
 0x389   : > { %v5733_v23 = vpop.eup %5732  ;;  %5752 = vrcp.f32 %v3662_v44  ;;  %v3787_v3 = vunpack.c.h.bf16 %v5782_v51  ;;  %v3785_v8 = vunpack.c.h.bf16 %v5783_v15  ;;  %v3788_v26 = vunpack.c.l.bf16 %v5785_v38  ;;  %v5786_v44 = vld [vmem:[%s5852_s29 + $0x78] sm:$0xff]  }
 0x38a   : > { %v5735_v47 = vpop.eup %5734  ;;  %5754 = vrcp.f32 %v3660_v54  ;;  %v3663_v43 = vadd.f32 1.0, %v5733_v23  ;;  %4566 = vst [vmem:[%s7292_s20 + $0x48] sm:$0xff] %v4526_v0   ;;  %v3789_v7 = vunpack.c.h.bf16 %v5785_v38  ;;  %v3795_v51 = vunpack.c.h.bf16 %v5786_v44 }
 0x38b   : > { %v5737_v60 = vpop.eup %5736  ;;  %v3749_v5 = vmul.f32 %v5735_v47, %v7323_v27  ;;  %5756 = vpow2.f32 %v4375_v10  ;;  %v3794_v10 = vunpack.c.l.bf16 %v5786_v44 }
 0x38c   : > { %v5739_v34 = vpop.eup %5738  ;;  %v3754_v35 = vmul.f32 %v5737_v60, %v7333_v59  ;;  %5758 = vrcp.f32 %v3663_v43 }
 0x38d   : > { %v5741_v21 = vpop.eup %5740  ;;  %v3813_v62 = vadd.f32 %v3781_v63, %v3749_v5  ;;  %v3752_v58 = vmul.f32 %v5739_v34, %v7336_v19  ;;  %v5784_v19 = vld [vmem:[%s5852_s29 + $0x68] sm:$0xff]   ;;  %v5787_v63 = vld [vmem:[%s5852_s29 + $0x70] sm:$0xff]  }
 0x38e   : > { %v5743_v50 = vpop.eup %5742  ;;  %v3818_v31 = vadd.f32 %v3786_v56, %v3754_v35  ;;  %v3661_v32 = vadd.f32 1.0, %v5741_v21  ;;  %v3790_v4 = vunpack.c.l.bf16 %v5784_v19  ;;  %v3791_v12 = vunpack.c.h.bf16 %v5784_v19 }
 0x38f   : > { %v5745_v13 = vpop.eup %5744  ;;  %v4521_v49 = vpack.c.bf16 %v3813_v62, %v3812_v55  ;;  %v3816_v25 = vadd.f32 %v3784_v24, %v3752_v58  ;;  %v3755_v27 = vmul.f32 %v5743_v50, %v7351_v17  ;;  %v3792_v0 = vunpack.c.l.bf16 %v5787_v63 }
 0x390   : > { %v5747_v45 = vpop.eup %5746  ;;  %5760 = vrcp.f32 %v3661_v32  ;;  %v3666_v59 = vadd.f32 1.0, %v5745_v13  ;;  %v3793_v34 = vunpack.c.h.bf16 %v5787_v63 }
 0x391   : > { %v5749_v36 = vpop.eup %5748  ;;  %4565 = vst [vmem:[%s7292_s20 + $0x40] sm:$0xff] %v4521_v49   ;;  %v3819_v61 = vadd.f32 %v3787_v3, %v3755_v27  ;;  %v3664_v41 = vadd.f32 1.0, %v5747_v45 }
 0x392   : > { %v5751_v11 = vpop.eup %5750  ;;  %5762 = vrcp.f32 %v3666_v59  ;;  %v3667_v53 = vadd.f32 1.0, %v5749_v36 }
 0x393   : > { %v5753_v39 = vpop.eup %5752  ;;  %v4536_v16 = vpack.c.bf16 %v3819_v61, %v3818_v31  ;;  %v3753_v17 = vmul.f32 %v5751_v11, %v7354_v6  ;;  %5764 = vrcp.f32 %v3664_v41 }
 0x394   : > { %v5755_v14 = vpop.eup %5754  ;;  %v3758_v52 = vmul.f32 %v5753_v39, %v7368_v40  ;;  %5766 = vrcp.f32 %v3667_v53 }
 0x395   : > { %v5757_v2 = vpop.eup %5756  ;;  %4568 = vst [vmem:[%s7292_s20 + $0x58] sm:$0xff] %v4536_v16   ;;  %v3817_v46 = vadd.f32 %v3785_v8, %v3753_v17  ;;  %v3756_v37 = vmul.f32 %v5755_v14, %v7375_v57 }
 0x396   : > { %v5759_v42 = vpop.eup %5758  ;;  %v3822_v30 = vadd.f32 %v3790_v4, %v3758_v52  ;;  %v3665_v28 = vadd.f32 1.0, %v5757_v2 }
 0x397   : > { %v4531_v55 = vpack.c.bf16 %v3817_v46, %v3816_v25  ;;  %v3820_v1 = vadd.f32 %v3788_v26, %v3756_v37  ;;  %v3759_v6 = vmul.f32 %v5759_v42, %v7386_v48 }
 0x398   : > { %5768 = vrcp.f32 %v3665_v28 }
 0x399   : > { %4567 = vst [vmem:[%s7292_s20 + $0x50] sm:$0xff] %v4531_v55   ;;  %v3823_v40 = vadd.f32 %v3791_v12, %v3759_v6 }
 0x39a   : > { %v5761_v20 = vpop.eup %5760 }
 0x39b   : > { %v4546_v54 = vpack.c.bf16 %v3823_v40, %v3822_v30  ;;  %v3757_v23 = vmul.f32 %v5761_v20, %v7392_v18 }
 0x39c   : > { %v5763_v57 = vpop.eup %5762 }
 0x39d   : > { %v5765_v47 = vpop.eup %5764  ;;  %4570 = vst [vmem:[%s7292_s20 + $0x68] sm:$0xff] %v4546_v54   ;;  %v3821_v56 = vadd.f32 %v3789_v7, %v3757_v23  ;;  %v3762_v48 = vmul.f32 %v5763_v57, %v7406_v22 }
 0x39e   : > { %v5767_v43 = vpop.eup %5766  ;;  %v3760_v60 = vmul.f32 %v5765_v47, %v7409_v29 }
 0x39f   : > { %v4541_v15 = vpack.c.bf16 %v3821_v56, %v3820_v1  ;;  %v3826_v24 = vadd.f32 %v3794_v10, %v3762_v48  ;;  %v3763_v5 = vmul.f32 %v5767_v43, %v7419_v9 }
 0x3a0   : > { %v3824_v18 = vadd.f32 %v3792_v0, %v3760_v60 }
 0x3a1   : > { %4569 = vst [vmem:[%s7292_s20 + $0x60] sm:$0xff] %v4541_v15   ;;  %v3827_v35 = vadd.f32 %v3795_v51, %v3763_v5 }
 0x3a2   : > { %v5769_v21 = vpop.eup %5768 }
 0x3a3   : > { %v4556_v3 = vpack.c.bf16 %v3827_v35, %v3826_v24  ;;  %v3761_v62 = vmul.f32 %v5769_v21, %v7423_v33 }
 0x3a5   : > { %4572 = vst [vmem:[%s7292_s20 + $0x78] sm:$0xff] %v4556_v3   ;;  %v3825_v58 = vadd.f32 %v3793_v34, %v3761_v62 }
 0x3a7   : > { %v4551_v50 = vpack.c.bf16 %v3825_v58, %v3824_v18 }
 0x3a9   : > { %4571 = vst [vmem:[%s7292_s20 + $0x70] sm:$0xff] %v4551_v50  }
 0x3aa PF: > { %s15_s18 = sadd.s32 1, %s5794_s18  }
 0x3ab   : > { %p12_p4 = scmp.ge.s32.totalorder %s15_s18, 4  }
 0x3ad   :  { %14 = sbr.rel (!%p12_p4) target bundleno = 1 (0x1), region = 73 }

</bundles_post_ra>
